<compile_context>
chip_gen: v7x
topology: tpu7x:2x2x1
jax: 0.10.0
libtpu: 0.0.40
codegen_flags: <defaults>
</compile_context>

<pallas_src>
import jax
import jax.numpy as jnp
from jax import lax
from jax.experimental import pallas as pl
from jax.experimental.pallas import tpu as pltpu


# ----------------------------- Pallas kernel ------------------------------ #

def _vit_fcn_kernel(xc_ref, w1c_ref, w2_ref, s1_ref, s2_ref, w3t_ref, b3_ref,
                    rt_ref, out_ref, acc_ref, slab1_ref, a1pad_ref, slab2_ref):
    """Fused FCN head.  Grid axis = Cin chunks of conv1 (reduction).

    xc_ref   : [B, H+2, W+2, cc]   bf16  zero-padded NHWC input, Cin chunk k
    w1c_ref  : [9*cc, C1]          bf16  conv1 weight chunk k (BN folded)
    w2_ref   : [9*C1, C2]          bf16  conv2 weights (BN folded)
    s1_ref   : [1, C1]             f32   conv1 BN shift
    s2_ref   : [1, C2]             f32   conv2 BN shift
    w3t_ref  : [NC, C2]            f32   1x1 conv weights
    b3_ref   : [NC, 1]             f32   1x1 conv bias
    rt_ref   : [H*W, OH*OW]        f32   (Ry kron Rx)^T resize matrix
    out_ref  : [B*NC, OH*OW]       f32   lane-dense output slab
    acc_ref  : [B*HW, C1]          f32   conv1 accumulator (resident)
    slab1_ref: [B*HW, 9*cc]        bf16  conv1 tap-concatenated LHS
    a1pad_ref: [B, H+2, W+2, C1]   bf16  padded conv2 input
    slab2_ref: [B*HW, 9*C1]        bf16  conv2 tap-concatenated LHS
    """
    k = pl.program_id(0)
    nk = pl.num_programs(0)

    B, HP, WP, cc = xc_ref.shape
    H, W = HP - 2, WP - 2
    HW = H * W
    C1 = acc_ref.shape[1]
    NC = w3t_ref.shape[0]

    @pl.when(k == 0)
    def _():
        acc_ref[...] = jnp.zeros_like(acc_ref)

    # ---- conv1 partial sum for this Cin chunk -----------------------------
    # Build the tap-concatenated LHS once (9 static window slices, bf16),
    # then a single long-K MXU matmul against the streamed weight chunk.
    for t in range(9):
        dy, dx = t // 3, t % 3
        for b in range(B):
            slab1_ref[b * HW:(b + 1) * HW, t * cc:(t + 1) * cc] = (
                xc_ref[b, dy:dy + H, dx:dx + W, :].reshape(HW, cc))
    acc_ref[...] += jnp.dot(slab1_ref[...], w1c_ref[...],
                            preferred_element_type=jnp.float32)

    # ---- conv2 + 1x1 conv + resize run once, on the last grid step --------
    @pl.when(k == nk - 1)
    def _():
        # conv1 epilogue: BN shift + ReLU in f32, single cast to bf16.
        a1 = jnp.maximum(acc_ref[...] + s1_ref[...], 0.0).astype(jnp.bfloat16)
        a1pad_ref[...] = jnp.zeros_like(a1pad_ref)      # keep border ring zero
        for b in range(B):
            a1pad_ref[b, 1:1 + H, 1:1 + W, :] = (
                a1[b * HW:(b + 1) * HW, :].reshape(H, W, C1))

        # conv2: tap slab + ONE long-K (9*C1) matmul, BN shift + ReLU (f32).
        for t in range(9):
            dy, dx = t // 3, t % 3
            for b in range(B):
                slab2_ref[b * HW:(b + 1) * HW, t * C1:(t + 1) * C1] = (
                    a1pad_ref[b, dy:dy + H, dx:dx + W, :].reshape(HW, C1))
        a2 = jnp.maximum(
            jnp.dot(slab2_ref[...], w2_ref[...],
                    preferred_element_type=jnp.float32) + s2_ref[...], 0.0)

        # 1x1 conv (C2 -> NC) BEFORE the resize (linear ops commute), then the
        # bilinear resize is a tiny [NC, HW] x [HW, OH*OW] matmul writing a
        # lane-dense output slab.  The transpose of a2 is folded into the MXU
        # feed via dot_general (no explicit .T materialization).
        for b in range(B):
            a2_b = a2[b * HW:(b + 1) * HW, :]                       # [HW, C2]
            p_t = lax.dot_general(
                w3t_ref[...], a2_b, (((1,), (1,)), ((), ())),
                preferred_element_type=jnp.float32) + b3_ref[...]   # [NC, HW]
            out_ref[b * NC:(b + 1) * NC, :] = jnp.dot(
                p_t, rt_ref[...], preferred_element_type=jnp.float32)


# ------------------------ one-time parameter prep -------------------------- #

def _interp_matrix(n_in, n_out):
    """Bilinear (align_corners=True) interpolation matrix [n_out, n_in]."""
    src = jnp.linspace(0.0, n_in - 1.0, n_out)
    i0 = jnp.clip(jnp.floor(src).astype(jnp.int32), 0, n_in - 1)
    i1 = jnp.clip(i0 + 1, 0, n_in - 1)
    w1 = (src - i0.astype(jnp.float32)).astype(jnp.float32)
    w0 = 1.0 - w1
    idx = jnp.arange(n_out)
    R = jnp.zeros((n_out, n_in), jnp.float32)
    R = R.at[idx, i0].add(w0)
    R = R.at[idx, i1].add(w1)
    return R


def prepare_vit_fcn_params(p, H, W, out_size=(64, 64), eps=1e-5):
    """Fold BN, reshape weights for the kernel, build the resize matrix.

    Runs ONCE (eval-mode inference); keeps these XLA ops out of the per-call
    path (review #10).  Returns (prepared dict, nk) where nk is the number of
    Cin chunks conv1 is streamed over.
    """
    C1, Cin = p['w1'].shape[0], p['w1'].shape[1]
    C2 = p['w2'].shape[0]
    NC = p['w3'].shape[0]
    OH, OW = out_size

    # Cin chunking for the streamed conv1 reduction grid (lane-aligned chunks).
    if Cin % 256 == 0:
        nk = Cin // 256
    elif Cin % 128 == 0:
        nk = Cin // 128
    else:
        nk = 1
    cc = Cin // nk

    # conv1: fold BN scale into weights, keep shift separate.
    s1 = p['g1'] / jnp.sqrt(p['v1'] + eps)
    shift1 = (p['be1'] + (p['b1'] - p['m1']) * s1).reshape(1, C1).astype(jnp.float32)
    w1f = (jnp.transpose(p['w1'], (2, 3, 1, 0)).reshape(9, Cin, C1)
           * s1[None, None, :])                               # [tap, cin, cout]
    w1r = (w1f.reshape(9, nk, cc, C1).transpose(1, 0, 2, 3)
           .reshape(nk * 9 * cc, C1).astype(jnp.bfloat16))    # chunk-major rows

    # conv2: same folding, rows ordered (tap, cin) to match the tap slab.
    s2 = p['g2'] / jnp.sqrt(p['v2'] + eps)
    shift2 = (p['be2'] + (p['b2'] - p['m2']) * s2).reshape(1, C2).astype(jnp.float32)
    w2r = ((jnp.transpose(p['w2'], (2, 3, 1, 0)).reshape(9, C1, C2)
            * s2[None, None, :]).reshape(9 * C1, C2).astype(jnp.bfloat16))

    w3t = p['w3'].reshape(NC, C2).astype(jnp.float32)
    b3 = p['b3'].reshape(NC, 1).astype(jnp.float32)

    # (Ry kron Rx)^T, f32 (interpolation weights stay f32 per review note).
    rt = jnp.kron(_interp_matrix(H, OH), _interp_matrix(W, OW)).T.astype(jnp.float32)

    prep = dict(w1r=w1r, s1=shift1, w2r=w2r, s2=shift2, w3t=w3t, b3=b3, rt=rt)
    return prep, nk


# ------------------------------ forward (jit) ------------------------------ #

def vit_fcn_forward(x, prep, nk):
    """x: [B, 768, H, W] backbone feature map -> [B, num_classes, 64, 64]."""
    B, Cin, H, W = x.shape
    C1 = prep['s1'].shape[1]
    C2 = prep['s2'].shape[1]
    NC = prep['w3t'].shape[0]
    OH, OW = 64, 64                      # hard-coded in the PyTorch module
    HW = H * W
    cc = Cin // nk

    # Single layout transform at the boundary: NCHW -> zero-padded NHWC bf16.
    xpad = jnp.pad(jnp.transpose(x, (0, 2, 3, 1)).astype(jnp.bfloat16),
                   ((0, 0), (1, 1), (1, 1), (0, 0)))

    out = pl.pallas_call(
        _vit_fcn_kernel,
        out_shape=jax.ShapeDtypeStruct((B * NC, OH * OW), jnp.float32),
        grid_spec=pltpu.PrefetchScalarGridSpec(
            num_scalar_prefetch=0,
            grid=(nk,),                              # conv1 Cin-chunk reduction
            in_specs=[
                # streamed per chunk:
                pl.BlockSpec((B, H + 2, W + 2, cc), lambda k: (0, 0, 0, k)),
                pl.BlockSpec((9 * cc, C1), lambda k: (k, 0)),
                # grid-invariant (fetched once):
                pl.BlockSpec((9 * C1, C2), lambda k: (0, 0)),
                pl.BlockSpec((1, C1), lambda k: (0, 0)),
                pl.BlockSpec((1, C2), lambda k: (0, 0)),
                pl.BlockSpec((NC, C2), lambda k: (0, 0)),
                pl.BlockSpec((NC, 1), lambda k: (0, 0)),
                pl.BlockSpec((HW, OH * OW), lambda k: (0, 0)),
            ],
            out_specs=pl.BlockSpec((B * NC, OH * OW), lambda k: (0, 0)),
            scratch_shapes=[
                pltpu.VMEM((B * HW, C1), jnp.float32),          # conv1 acc
                pltpu.VMEM((B * HW, 9 * cc), jnp.bfloat16),     # conv1 tap slab
                pltpu.VMEM((B, H + 2, W + 2, C1), jnp.bfloat16),  # padded a1
                pltpu.VMEM((B * HW, 9 * C1), jnp.bfloat16),     # conv2 tap slab
            ]),
        compiler_params=pltpu.CompilerParams(
            dimension_semantics=("arbitrary",)),     # reduction axis
    )(xpad, prep['w1r'], prep['w2r'], prep['s1'], prep['s2'],
      prep['w3t'], prep['b3'], prep['rt'])

    # [B*NC, OH*OW] lane-dense slab reshapes straight into NCHW.
    return out.reshape(B, NC, OH, OW)


# --------------------------- pure-JAX reference ---------------------------- #

def _ref_forward(x, p, eps=1e-5):
    def conv(x, w, b, pad):
        y = jax.lax.conv_general_dilated(
            x, w, (1, 1), pad, dimension_numbers=('NCHW', 'OIHW', 'NCHW'))
        return y + b[None, :, None, None]

    def bn(y, g, be, m, v):
        return ((y - m[None, :, None, None])
                / jnp.sqrt(v + eps)[None, :, None, None]
                * g[None, :, None, None] + be[None, :, None, None])

    y = jax.nn.relu(bn(conv(x, p['w1'], p['b1'], [(1, 1), (1, 1)]),
                       p['g1'], p['be1'], p['m1'], p['v1']))
    y = jax.nn.relu(bn(conv(y, p['w2'], p['b2'], [(1, 1), (1, 1)]),
                       p['g2'], p['be2'], p['m2'], p['v2']))
    y = conv(y, p['w3'], p['b3'], [(0, 0), (0, 0)])
    B, C, H, W = y.shape
    ys = jnp.linspace(0.0, H - 1.0, 64)
    xs = jnp.linspace(0.0, W - 1.0, 64)
    y0 = jnp.clip(jnp.floor(ys).astype(jnp.int32), 0, H - 1)
    y1 = jnp.clip(y0 + 1, 0, H - 1)
    x0 = jnp.clip(jnp.floor(xs).astype(jnp.int32), 0, W - 1)
    x1 = jnp.clip(x0 + 1, 0, W - 1)
    wy = (ys - y0)[None, None, :, None]
    wx = (xs - x0)[None, None, None, :]
    g = lambda yi, xi: y[:, :, yi, :][:, :, :, xi]
    top = g(y0, x0) * (1 - wx) + g(y0, x1) * wx
    bot = g(y1, x0) * (1 - wx) + g(y1, x1) * wx
    return top * (1 - wy) + bot * wy


# --------------------------------- main ------------------------------------ #

if __name__ == "__main__":
    key = jax.random.PRNGKey(0)
    keys = jax.random.split(key, 8)
    num_classes = 4
    B, H, W = 1, 8, 8
    x = jax.random.normal(keys[0], (B, 768, H, W), jnp.float32)

    def bn_params(c):
        return (jnp.linspace(0.8, 1.2, c, dtype=jnp.float32),     # gamma
                jnp.linspace(-0.1, 0.1, c, dtype=jnp.float32),    # beta
                jnp.linspace(-0.05, 0.05, c, dtype=jnp.float32),  # running_mean
                jnp.linspace(0.9, 1.1, c, dtype=jnp.float32))     # running_var

    g1, be1, m1, v1 = bn_params(256)
    g2, be2, m2, v2 = bn_params(64)
    params = dict(
        w1=jax.random.normal(keys[1], (256, 768, 3, 3), jnp.float32) * 0.02,
        b1=jax.random.normal(keys[2], (256,), jnp.float32) * 0.1,
        g1=g1, be1=be1, m1=m1, v1=v1,
        w2=jax.random.normal(keys[3], (64, 256, 3, 3), jnp.float32) * 0.02,
        b2=jax.random.normal(keys[4], (64,), jnp.float32) * 0.1,
        g2=g2, be2=be2, m2=m2, v2=v2,
        w3=jax.random.normal(keys[5], (num_classes, 64, 1, 1), jnp.float32) * 0.05,
        b3=jax.random.normal(keys[6], (num_classes,), jnp.float32) * 0.1,
    )

    # One-time parameter preparation (outside the per-call jitted path).
    prep, nk = prepare_vit_fcn_params(params, H, W)
    prep = jax.tree_util.tree_map(jax.block_until_ready, prep)

    fwd = jax.jit(vit_fcn_forward, static_argnums=(2,))
    out = jax.block_until_ready(fwd(x, prep, nk))
    assert out.shape == (B, num_classes, 64, 64), out.shape

    ref = jax.block_until_ready(_ref_forward(x, params))
    err = float(jnp.max(jnp.abs(out - ref)))
    # bf16 activations/weights on the MXU (K up to 9*768) -> loose tolerance.
    assert jnp.allclose(out, ref, rtol=2e-2, atol=5e-2), err

    print("KERNEL_OK")
</pallas_src>

<mosaic_0001>
module attributes {stable_mosaic.version = 11 : i64} {
  func.func @_vit_fcn_kernel(%arg0: i32, %arg1: memref<1x10x10x256xbf16, #tpu.memory_space<vmem>>, %arg2: memref<2304x256xbf16, #tpu.memory_space<vmem>>, %arg3: memref<2304x64xbf16, #tpu.memory_space<vmem>>, %arg4: memref<1x256xf32, #tpu.memory_space<vmem>>, %arg5: memref<1x64xf32, #tpu.memory_space<vmem>>, %arg6: memref<4x64xf32, #tpu.memory_space<vmem>>, %arg7: memref<4x1xf32, #tpu.memory_space<vmem>>, %arg8: memref<64x4096xf32, #tpu.memory_space<vmem>>, %arg9: memref<4x4096xf32, #tpu.memory_space<vmem>>, %arg10: memref<64x256xf32, #tpu.memory_space<vmem>>, %arg11: memref<64x2304xbf16, #tpu.memory_space<vmem>>, %arg12: memref<1x10x10x256xbf16, #tpu.memory_space<vmem>>, %arg13: memref<64x2304xbf16, #tpu.memory_space<vmem>>) attributes {dimension_semantics = [#tpu.dimension_semantics<arbitrary>], iteration_bounds = array<i64: 3>, scalar_prefetch = 0 : i64, scratch_operands = 4 : i64, tpu.core_type = #tpu.core_type<tc>, window_params = [{transform_indices = @transform_0, window_bounds = array<i64: 1, 10, 10, 256>}, {transform_indices = @transform_1, window_bounds = array<i64: 2304, 256>}, {pipeline_mode = #tpu.pipeline_mode<synchronous>, transform_indices = @transform_2, window_bounds = array<i64: 2304, 64>}, {pipeline_mode = #tpu.pipeline_mode<synchronous>, transform_indices = @transform_3, window_bounds = array<i64: 1, 256>}, {pipeline_mode = #tpu.pipeline_mode<synchronous>, transform_indices = @transform_4, window_bounds = array<i64: 1, 64>}, {pipeline_mode = #tpu.pipeline_mode<synchronous>, transform_indices = @transform_5, window_bounds = array<i64: 4, 64>}, {pipeline_mode = #tpu.pipeline_mode<synchronous>, transform_indices = @transform_6, window_bounds = array<i64: 4, 1>}, {pipeline_mode = #tpu.pipeline_mode<synchronous>, transform_indices = @transform_7, window_bounds = array<i64: 64, 4096>}, {pipeline_mode = #tpu.pipeline_mode<synchronous>, transform_indices = @transform_8, window_bounds = array<i64: 4, 4096>}]} {
    %c0_i32 = arith.constant 0 : i32
    %0 = arith.cmpi eq, %arg0, %c0_i32 : i32
    %1 = arith.extui %0 : i1 to i32
    %c0_i32_0 = arith.constant 0 : i32
    %2 = arith.cmpi ne, %1, %c0_i32_0 : i32
    scf.if %2 {
      %cst_53 = arith.constant 0.000000e+00 : f32
      %48 = vector.broadcast %cst_53 : f32 to vector<64x256xf32>
      %c0_54 = arith.constant 0 : index
      %c0_55 = arith.constant 0 : index
      %49 = vector.load %arg10[%c0_54, %c0_55] : memref<64x256xf32, #tpu.memory_space<vmem>>, vector<64x256xf32>
      tpu.vector_store %arg10[%c0_54, %c0_55], %48 {strides = array<i32>} : memref<64x256xf32, #tpu.memory_space<vmem>>, vector<64x256xf32>,
    } else {
    }
    %c0 = arith.constant 0 : index
    %c0_1 = arith.constant 0 : index
    %c0_2 = arith.constant 0 : index
    %c0_3 = arith.constant 0 : index
    %3 = vector.load %arg1[%c0, %c0_1, %c0_2, %c0_3] : memref<1x10x10x256xbf16, #tpu.memory_space<vmem>>, vector<1x8x8x256xbf16>
    %4 = vector.shape_cast %3 : vector<1x8x8x256xbf16> to vector<8x8x256xbf16>
    %5 = vector.shape_cast %4 : vector<8x8x256xbf16> to vector<64x256xbf16>
    %c0_4 = arith.constant 0 : index
    %c0_5 = arith.constant 0 : index
    %6 = vector.load %arg11[%c0_4, %c0_5] : memref<64x2304xbf16, #tpu.memory_space<vmem>>, vector<64x256xbf16>
    tpu.vector_store %arg11[%c0_4, %c0_5], %5 {strides = array<i32>} : memref<64x2304xbf16, #tpu.memory_space<vmem>>, vector<64x256xbf16>,
    %c0_6 = arith.constant 0 : index
    %c0_7 = arith.constant 0 : index
    %c1 = arith.constant 1 : index
    %c0_8 = arith.constant 0 : index
    %7 = vector.load %arg1[%c0_6, %c0_7, %c1, %c0_8] : memref<1x10x10x256xbf16, #tpu.memory_space<vmem>>, vector<1x8x8x256xbf16>
    %8 = vector.shape_cast %7 : vector<1x8x8x256xbf16> to vector<8x8x256xbf16>
    %9 = vector.shape_cast %8 : vector<8x8x256xbf16> to vector<64x256xbf16>
    %c0_9 = arith.constant 0 : index
    %c256 = arith.constant 256 : index
    %10 = vector.load %arg11[%c0_9, %c256] : memref<64x2304xbf16, #tpu.memory_space<vmem>>, vector<64x256xbf16>
    tpu.vector_store %arg11[%c0_9, %c256], %9 {strides = array<i32>} : memref<64x2304xbf16, #tpu.memory_space<vmem>>, vector<64x256xbf16>,
    %c0_10 = arith.constant 0 : index
    %c0_11 = arith.constant 0 : index
    %c2 = arith.constant 2 : index
    %c0_12 = arith.constant 0 : index
    %11 = vector.load %arg1[%c0_10, %c0_11, %c2, %c0_12] : memref<1x10x10x256xbf16, #tpu.memory_space<vmem>>, vector<1x8x8x256xbf16>
    %12 = vector.shape_cast %11 : vector<1x8x8x256xbf16> to vector<8x8x256xbf16>
    %13 = vector.shape_cast %12 : vector<8x8x256xbf16> to vector<64x256xbf16>
    %c0_13 = arith.constant 0 : index
    %c512 = arith.constant 512 : index
    %14 = vector.load %arg11[%c0_13, %c512] : memref<64x2304xbf16, #tpu.memory_space<vmem>>, vector<64x256xbf16>
    tpu.vector_store %arg11[%c0_13, %c512], %13 {strides = array<i32>} : memref<64x2304xbf16, #tpu.memory_space<vmem>>, vector<64x256xbf16>,
    %c0_14 = arith.constant 0 : index
    %c1_15 = arith.constant 1 : index
    %c0_16 = arith.constant 0 : index
    %c0_17 = arith.constant 0 : index
    %15 = vector.load %arg1[%c0_14, %c1_15, %c0_16, %c0_17] : memref<1x10x10x256xbf16, #tpu.memory_space<vmem>>, vector<1x8x8x256xbf16>
    %16 = vector.shape_cast %15 : vector<1x8x8x256xbf16> to vector<8x8x256xbf16>
    %17 = vector.shape_cast %16 : vector<8x8x256xbf16> to vector<64x256xbf16>
    %c0_18 = arith.constant 0 : index
    %c768 = arith.constant 768 : index
    %18 = vector.load %arg11[%c0_18, %c768] : memref<64x2304xbf16, #tpu.memory_space<vmem>>, vector<64x256xbf16>
    tpu.vector_store %arg11[%c0_18, %c768], %17 {strides = array<i32>} : memref<64x2304xbf16, #tpu.memory_space<vmem>>, vector<64x256xbf16>,
    %c0_19 = arith.constant 0 : index
    %c1_20 = arith.constant 1 : index
    %c1_21 = arith.constant 1 : index
    %c0_22 = arith.constant 0 : index
    %19 = vector.load %arg1[%c0_19, %c1_20, %c1_21, %c0_22] : memref<1x10x10x256xbf16, #tpu.memory_space<vmem>>, vector<1x8x8x256xbf16>
    %20 = vector.shape_cast %19 : vector<1x8x8x256xbf16> to vector<8x8x256xbf16>
    %21 = vector.shape_cast %20 : vector<8x8x256xbf16> to vector<64x256xbf16>
    %c0_23 = arith.constant 0 : index
    %c1024 = arith.constant 1024 : index
    %22 = vector.load %arg11[%c0_23, %c1024] : memref<64x2304xbf16, #tpu.memory_space<vmem>>, vector<64x256xbf16>
    tpu.vector_store %arg11[%c0_23, %c1024], %21 {strides = array<i32>} : memref<64x2304xbf16, #tpu.memory_space<vmem>>, vector<64x256xbf16>,
    %c0_24 = arith.constant 0 : index
    %c1_25 = arith.constant 1 : index
    %c2_26 = arith.constant 2 : index
    %c0_27 = arith.constant 0 : index
    %23 = vector.load %arg1[%c0_24, %c1_25, %c2_26, %c0_27] : memref<1x10x10x256xbf16, #tpu.memory_space<vmem>>, vector<1x8x8x256xbf16>
    %24 = vector.shape_cast %23 : vector<1x8x8x256xbf16> to vector<8x8x256xbf16>
    %25 = vector.shape_cast %24 : vector<8x8x256xbf16> to vector<64x256xbf16>
    %c0_28 = arith.constant 0 : index
    %c1280 = arith.constant 1280 : index
    %26 = vector.load %arg11[%c0_28, %c1280] : memref<64x2304xbf16, #tpu.memory_space<vmem>>, vector<64x256xbf16>
    tpu.vector_store %arg11[%c0_28, %c1280], %25 {strides = array<i32>} : memref<64x2304xbf16, #tpu.memory_space<vmem>>, vector<64x256xbf16>,
    %c0_29 = arith.constant 0 : index
    %c2_30 = arith.constant 2 : index
    %c0_31 = arith.constant 0 : index
    %c0_32 = arith.constant 0 : index
    %27 = vector.load %arg1[%c0_29, %c2_30, %c0_31, %c0_32] : memref<1x10x10x256xbf16, #tpu.memory_space<vmem>>, vector<1x8x8x256xbf16>
    %28 = vector.shape_cast %27 : vector<1x8x8x256xbf16> to vector<8x8x256xbf16>
    %29 = vector.shape_cast %28 : vector<8x8x256xbf16> to vector<64x256xbf16>
    %c0_33 = arith.constant 0 : index
    %c1536 = arith.constant 1536 : index
    %30 = vector.load %arg11[%c0_33, %c1536] : memref<64x2304xbf16, #tpu.memory_space<vmem>>, vector<64x256xbf16>
    tpu.vector_store %arg11[%c0_33, %c1536], %29 {strides = array<i32>} : memref<64x2304xbf16, #tpu.memory_space<vmem>>, vector<64x256xbf16>,
    %c0_34 = arith.constant 0 : index
    %c2_35 = arith.constant 2 : index
    %c1_36 = arith.constant 1 : index
    %c0_37 = arith.constant 0 : index
    %31 = vector.load %arg1[%c0_34, %c2_35, %c1_36, %c0_37] : memref<1x10x10x256xbf16, #tpu.memory_space<vmem>>, vector<1x8x8x256xbf16>
    %32 = vector.shape_cast %31 : vector<1x8x8x256xbf16> to vector<8x8x256xbf16>
    %33 = vector.shape_cast %32 : vector<8x8x256xbf16> to vector<64x256xbf16>
    %c0_38 = arith.constant 0 : index
    %c1792 = arith.constant 1792 : index
    %34 = vector.load %arg11[%c0_38, %c1792] : memref<64x2304xbf16, #tpu.memory_space<vmem>>, vector<64x256xbf16>
    tpu.vector_store %arg11[%c0_38, %c1792], %33 {strides = array<i32>} : memref<64x2304xbf16, #tpu.memory_space<vmem>>, vector<64x256xbf16>,
    %c0_39 = arith.constant 0 : index
    %c2_40 = arith.constant 2 : index
    %c2_41 = arith.constant 2 : index
    %c0_42 = arith.constant 0 : index
    %35 = vector.load %arg1[%c0_39, %c2_40, %c2_41, %c0_42] : memref<1x10x10x256xbf16, #tpu.memory_space<vmem>>, vector<1x8x8x256xbf16>
    %36 = vector.shape_cast %35 : vector<1x8x8x256xbf16> to vector<8x8x256xbf16>
    %37 = vector.shape_cast %36 : vector<8x8x256xbf16> to vector<64x256xbf16>
    %c0_43 = arith.constant 0 : index
    %c2048 = arith.constant 2048 : index
    %38 = vector.load %arg11[%c0_43, %c2048] : memref<64x2304xbf16, #tpu.memory_space<vmem>>, vector<64x256xbf16>
    tpu.vector_store %arg11[%c0_43, %c2048], %37 {strides = array<i32>} : memref<64x2304xbf16, #tpu.memory_space<vmem>>, vector<64x256xbf16>,
    %c0_44 = arith.constant 0 : index
    %c0_45 = arith.constant 0 : index
    %39 = vector.load %arg10[%c0_44, %c0_45] : memref<64x256xf32, #tpu.memory_space<vmem>>, vector<64x256xf32>
    %c0_46 = arith.constant 0 : index
    %c0_47 = arith.constant 0 : index
    %40 = vector.load %arg11[%c0_46, %c0_47] : memref<64x2304xbf16, #tpu.memory_space<vmem>>, vector<64x2304xbf16>
    %c0_48 = arith.constant 0 : index
    %c0_49 = arith.constant 0 : index
    %41 = vector.load %arg2[%c0_48, %c0_49] : memref<2304x256xbf16, #tpu.memory_space<vmem>>, vector<2304x256xbf16>
    %cst = arith.constant dense<0.000000e+00> : vector<64x256xf32>
    %42 = tpu.matmul %40, %41, %cst {dimension_numbers = #tpu.dot_dimension_numbers<[1], [0], [0], [1], [0, 0, 1, 1], [], []>} : vector<64x2304xbf16>, vector<2304x256xbf16>, vector<64x256xf32> -> vector<64x256xf32>
    %43 = arith.addf %39, %42 : vector<64x256xf32>
    %c0_50 = arith.constant 0 : index
    %c0_51 = arith.constant 0 : index
    %44 = vector.load %arg10[%c0_50, %c0_51] : memref<64x256xf32, #tpu.memory_space<vmem>>, vector<64x256xf32>
    tpu.vector_store %arg10[%c0_50, %c0_51], %43 {strides = array<i32>} : memref<64x256xf32, #tpu.memory_space<vmem>>, vector<64x256xf32>,
    %c2_i32 = arith.constant 2 : i32
    %45 = arith.cmpi eq, %arg0, %c2_i32 : i32
    %46 = arith.extui %45 : i1 to i32
    %c0_i32_52 = arith.constant 0 : i32
    %47 = arith.cmpi ne, %46, %c0_i32_52 : i32
    scf.if %47 {
      %c0_53 = arith.constant 0 : index
      %c0_54 = arith.constant 0 : index
      %48 = vector.load %arg10[%c0_53, %c0_54] : memref<64x256xf32, #tpu.memory_space<vmem>>, vector<64x256xf32>
      %c0_55 = arith.constant 0 : index
      %c0_56 = arith.constant 0 : index
      %49 = vector.load %arg4[%c0_55, %c0_56] : memref<1x256xf32, #tpu.memory_space<vmem>>, vector<1x256xf32>
      %50 = vector.broadcast %49 : vector<1x256xf32> to vector<64x256xf32>
      %51 = arith.addf %48, %50 : vector<64x256xf32>
      %cst_57 = arith.constant 0.000000e+00 : f32
      %52 = vector.broadcast %cst_57 : f32 to vector<64x256xf32>
      %53 = arith.maximumf %51, %52 : vector<64x256xf32>
      %54 = arith.truncf %53 : vector<64x256xf32> to vector<64x256xbf16>
      %cst_58 = arith.constant 0.000000e+00 : bf16
      %55 = vector.broadcast %cst_58 : bf16 to vector<1x10x10x256xbf16>
      %c0_59 = arith.constant 0 : index
      %c0_60 = arith.constant 0 : index
      %c0_61 = arith.constant 0 : index
      %c0_62 = arith.constant 0 : index
      %56 = vector.load %arg12[%c0_59, %c0_60, %c0_61, %c0_62] : memref<1x10x10x256xbf16, #tpu.memory_space<vmem>>, vector<1x10x10x256xbf16>
      tpu.vector_store %arg12[%c0_59, %c0_60, %c0_61, %c0_62], %55 {strides = array<i32>} : memref<1x10x10x256xbf16, #tpu.memory_space<vmem>>, vector<1x10x10x256xbf16>,
      %57 = vector.shape_cast %54 : vector<64x256xbf16> to vector<8x8x256xbf16>
      %c0_63 = arith.constant 0 : index
      %c1_64 = arith.constant 1 : index
      %c1_65 = arith.constant 1 : index
      %c0_66 = arith.constant 0 : index
      %58 = vector.load %arg12[%c0_63, %c1_64, %c1_65, %c0_66] : memref<1x10x10x256xbf16, #tpu.memory_space<vmem>>, vector<1x8x8x256xbf16>
      %59 = vector.shape_cast %58 : vector<1x8x8x256xbf16> to vector<8x8x256xbf16>
      %60 = vector.shape_cast %57 : vector<8x8x256xbf16> to vector<1x8x8x256xbf16>
      tpu.vector_store %arg12[%c0_63, %c1_64, %c1_65, %c0_66], %60 {strides = array<i32>} : memref<1x10x10x256xbf16, #tpu.memory_space<vmem>>, vector<1x8x8x256xbf16>,
      %c0_67 = arith.constant 0 : index
      %c0_68 = arith.constant 0 : index
      %c0_69 = arith.constant 0 : index
      %c0_70 = arith.constant 0 : index
      %61 = vector.load %arg12[%c0_67, %c0_68, %c0_69, %c0_70] : memref<1x10x10x256xbf16, #tpu.memory_space<vmem>>, vector<1x8x8x256xbf16>
      %62 = vector.shape_cast %61 : vector<1x8x8x256xbf16> to vector<8x8x256xbf16>
      %63 = vector.shape_cast %62 : vector<8x8x256xbf16> to vector<64x256xbf16>
      %c0_71 = arith.constant 0 : index
      %c0_72 = arith.constant 0 : index
      %64 = vector.load %arg13[%c0_71, %c0_72] : memref<64x2304xbf16, #tpu.memory_space<vmem>>, vector<64x256xbf16>
      tpu.vector_store %arg13[%c0_71, %c0_72], %63 {strides = array<i32>} : memref<64x2304xbf16, #tpu.memory_space<vmem>>, vector<64x256xbf16>,
      %c0_73 = arith.constant 0 : index
      %c0_74 = arith.constant 0 : index
      %c1_75 = arith.constant 1 : index
      %c0_76 = arith.constant 0 : index
      %65 = vector.load %arg12[%c0_73, %c0_74, %c1_75, %c0_76] : memref<1x10x10x256xbf16, #tpu.memory_space<vmem>>, vector<1x8x8x256xbf16>
      %66 = vector.shape_cast %65 : vector<1x8x8x256xbf16> to vector<8x8x256xbf16>
      %67 = vector.shape_cast %66 : vector<8x8x256xbf16> to vector<64x256xbf16>
      %c0_77 = arith.constant 0 : index
      %c256_78 = arith.constant 256 : index
      %68 = vector.load %arg13[%c0_77, %c256_78] : memref<64x2304xbf16, #tpu.memory_space<vmem>>, vector<64x256xbf16>
      tpu.vector_store %arg13[%c0_77, %c256_78], %67 {strides = array<i32>} : memref<64x2304xbf16, #tpu.memory_space<vmem>>, vector<64x256xbf16>,
      %c0_79 = arith.constant 0 : index
      %c0_80 = arith.constant 0 : index
      %c2_81 = arith.constant 2 : index
      %c0_82 = arith.constant 0 : index
      %69 = vector.load %arg12[%c0_79, %c0_80, %c2_81, %c0_82] : memref<1x10x10x256xbf16, #tpu.memory_space<vmem>>, vector<1x8x8x256xbf16>
      %70 = vector.shape_cast %69 : vector<1x8x8x256xbf16> to vector<8x8x256xbf16>
      %71 = vector.shape_cast %70 : vector<8x8x256xbf16> to vector<64x256xbf16>
      %c0_83 = arith.constant 0 : index
      %c512_84 = arith.constant 512 : index
      %72 = vector.load %arg13[%c0_83, %c512_84] : memref<64x2304xbf16, #tpu.memory_space<vmem>>, vector<64x256xbf16>
      tpu.vector_store %arg13[%c0_83, %c512_84], %71 {strides = array<i32>} : memref<64x2304xbf16, #tpu.memory_space<vmem>>, vector<64x256xbf16>,
      %c0_85 = arith.constant 0 : index
      %c1_86 = arith.constant 1 : index
      %c0_87 = arith.constant 0 : index
      %c0_88 = arith.constant 0 : index
      %73 = vector.load %arg12[%c0_85, %c1_86, %c0_87, %c0_88] : memref<1x10x10x256xbf16, #tpu.memory_space<vmem>>, vector<1x8x8x256xbf16>
      %74 = vector.shape_cast %73 : vector<1x8x8x256xbf16> to vector<8x8x256xbf16>
      %75 = vector.shape_cast %74 : vector<8x8x256xbf16> to vector<64x256xbf16>
      %c0_89 = arith.constant 0 : index
      %c768_90 = arith.constant 768 : index
      %76 = vector.load %arg13[%c0_89, %c768_90] : memref<64x2304xbf16, #tpu.memory_space<vmem>>, vector<64x256xbf16>
      tpu.vector_store %arg13[%c0_89, %c768_90], %75 {strides = array<i32>} : memref<64x2304xbf16, #tpu.memory_space<vmem>>, vector<64x256xbf16>,
      %c0_91 = arith.constant 0 : index
      %c1_92 = arith.constant 1 : index
      %c1_93 = arith.constant 1 : index
      %c0_94 = arith.constant 0 : index
      %77 = vector.load %arg12[%c0_91, %c1_92, %c1_93, %c0_94] : memref<1x10x10x256xbf16, #tpu.memory_space<vmem>>, vector<1x8x8x256xbf16>
      %78 = vector.shape_cast %77 : vector<1x8x8x256xbf16> to vector<8x8x256xbf16>
      %79 = vector.shape_cast %78 : vector<8x8x256xbf16> to vector<64x256xbf16>
      %c0_95 = arith.constant 0 : index
      %c1024_96 = arith.constant 1024 : index
      %80 = vector.load %arg13[%c0_95, %c1024_96] : memref<64x2304xbf16, #tpu.memory_space<vmem>>, vector<64x256xbf16>
      tpu.vector_store %arg13[%c0_95, %c1024_96], %79 {strides = array<i32>} : memref<64x2304xbf16, #tpu.memory_space<vmem>>, vector<64x256xbf16>,
      %c0_97 = arith.constant 0 : index
      %c1_98 = arith.constant 1 : index
      %c2_99 = arith.constant 2 : index
      %c0_100 = arith.constant 0 : index
      %81 = vector.load %arg12[%c0_97, %c1_98, %c2_99, %c0_100] : memref<1x10x10x256xbf16, #tpu.memory_space<vmem>>, vector<1x8x8x256xbf16>
      %82 = vector.shape_cast %81 : vector<1x8x8x256xbf16> to vector<8x8x256xbf16>
      %83 = vector.shape_cast %82 : vector<8x8x256xbf16> to vector<64x256xbf16>
      %c0_101 = arith.constant 0 : index
      %c1280_102 = arith.constant 1280 : index
      %84 = vector.load %arg13[%c0_101, %c1280_102] : memref<64x2304xbf16, #tpu.memory_space<vmem>>, vector<64x256xbf16>
      tpu.vector_store %arg13[%c0_101, %c1280_102], %83 {strides = array<i32>} : memref<64x2304xbf16, #tpu.memory_space<vmem>>, vector<64x256xbf16>,
      %c0_103 = arith.constant 0 : index
      %c2_104 = arith.constant 2 : index
      %c0_105 = arith.constant 0 : index
      %c0_106 = arith.constant 0 : index
      %85 = vector.load %arg12[%c0_103, %c2_104, %c0_105, %c0_106] : memref<1x10x10x256xbf16, #tpu.memory_space<vmem>>, vector<1x8x8x256xbf16>
      %86 = vector.shape_cast %85 : vector<1x8x8x256xbf16> to vector<8x8x256xbf16>
      %87 = vector.shape_cast %86 : vector<8x8x256xbf16> to vector<64x256xbf16>
      %c0_107 = arith.constant 0 : index
      %c1536_108 = arith.constant 1536 : index
      %88 = vector.load %arg13[%c0_107, %c1536_108] : memref<64x2304xbf16, #tpu.memory_space<vmem>>, vector<64x256xbf16>
      tpu.vector_store %arg13[%c0_107, %c1536_108], %87 {strides = array<i32>} : memref<64x2304xbf16, #tpu.memory_space<vmem>>, vector<64x256xbf16>,
      %c0_109 = arith.constant 0 : index
      %c2_110 = arith.constant 2 : index
      %c1_111 = arith.constant 1 : index
      %c0_112 = arith.constant 0 : index
      %89 = vector.load %arg12[%c0_109, %c2_110, %c1_111, %c0_112] : memref<1x10x10x256xbf16, #tpu.memory_space<vmem>>, vector<1x8x8x256xbf16>
      %90 = vector.shape_cast %89 : vector<1x8x8x256xbf16> to vector<8x8x256xbf16>
      %91 = vector.shape_cast %90 : vector<8x8x256xbf16> to vector<64x256xbf16>
      %c0_113 = arith.constant 0 : index
      %c1792_114 = arith.constant 1792 : index
      %92 = vector.load %arg13[%c0_113, %c1792_114] : memref<64x2304xbf16, #tpu.memory_space<vmem>>, vector<64x256xbf16>
      tpu.vector_store %arg13[%c0_113, %c1792_114], %91 {strides = array<i32>} : memref<64x2304xbf16, #tpu.memory_space<vmem>>, vector<64x256xbf16>,
      %c0_115 = arith.constant 0 : index
      %c2_116 = arith.constant 2 : index
      %c2_117 = arith.constant 2 : index
      %c0_118 = arith.constant 0 : index
      %93 = vector.load %arg12[%c0_115, %c2_116, %c2_117, %c0_118] : memref<1x10x10x256xbf16, #tpu.memory_space<vmem>>, vector<1x8x8x256xbf16>
      %94 = vector.shape_cast %93 : vector<1x8x8x256xbf16> to vector<8x8x256xbf16>
      %95 = vector.shape_cast %94 : vector<8x8x256xbf16> to vector<64x256xbf16>
      %c0_119 = arith.constant 0 : index
      %c2048_120 = arith.constant 2048 : index
      %96 = vector.load %arg13[%c0_119, %c2048_120] : memref<64x2304xbf16, #tpu.memory_space<vmem>>, vector<64x256xbf16>
      tpu.vector_store %arg13[%c0_119, %c2048_120], %95 {strides = array<i32>} : memref<64x2304xbf16, #tpu.memory_space<vmem>>, vector<64x256xbf16>,
      %c0_121 = arith.constant 0 : index
      %c0_122 = arith.constant 0 : index
      %97 = vector.load %arg13[%c0_121, %c0_122] : memref<64x2304xbf16, #tpu.memory_space<vmem>>, vector<64x2304xbf16>
      %c0_123 = arith.constant 0 : index
      %c0_124 = arith.constant 0 : index
      %98 = vector.load %arg3[%c0_123, %c0_124] : memref<2304x64xbf16, #tpu.memory_space<vmem>>, vector<2304x64xbf16>
      %cst_125 = arith.constant dense<0.000000e+00> : vector<64x64xf32>
      %99 = tpu.matmul %97, %98, %cst_125 {dimension_numbers = #tpu.dot_dimension_numbers<[1], [0], [0], [1], [0, 0, 1, 1], [], []>} : vector<64x2304xbf16>, vector<2304x64xbf16>, vector<64x64xf32> -> vector<64x64xf32>
      %c0_126 = arith.constant 0 : index
      %c0_127 = arith.constant 0 : index
      %100 = vector.load %arg5[%c0_126, %c0_127] : memref<1x64xf32, #tpu.memory_space<vmem>>, vector<1x64xf32>
      %101 = vector.broadcast %100 : vector<1x64xf32> to vector<64x64xf32>
      %102 = arith.addf %99, %101 : vector<64x64xf32>
      %cst_128 = arith.constant 0.000000e+00 : f32
      %103 = vector.broadcast %cst_128 : f32 to vector<64x64xf32>
      %104 = arith.maximumf %102, %103 : vector<64x64xf32>
      %c0_129 = arith.constant 0 : index
      %c0_130 = arith.constant 0 : index
      %105 = vector.load %arg6[%c0_129, %c0_130] : memref<4x64xf32, #tpu.memory_space<vmem>>, vector<4x64xf32>
      %cst_131 = arith.constant dense<0.000000e+00> : vector<4x64xf32>
      %106 = tpu.matmul %105, %104, %cst_131 {dimension_numbers = #tpu.dot_dimension_numbers<[1], [1], [0], [0], [0, 0, 1, 0], [], []>} : vector<4x64xf32>, vector<64x64xf32>, vector<4x64xf32> -> vector<4x64xf32>
      %c0_132 = arith.constant 0 : index
      %c0_133 = arith.constant 0 : index
      %107 = vector.load %arg7[%c0_132, %c0_133] : memref<4x1xf32, #tpu.memory_space<vmem>>, vector<4x1xf32>
      %108 = vector.broadcast %107 : vector<4x1xf32> to vector<4x64xf32>
      %109 = arith.addf %106, %108 : vector<4x64xf32>
      %c0_134 = arith.constant 0 : index
      %c0_135 = arith.constant 0 : index
      %110 = vector.load %arg8[%c0_134, %c0_135] : memref<64x4096xf32, #tpu.memory_space<vmem>>, vector<64x4096xf32>
      %cst_136 = arith.constant dense<0.000000e+00> : vector<4x4096xf32>
      %111 = tpu.matmul %109, %110, %cst_136 {dimension_numbers = #tpu.dot_dimension_numbers<[1], [0], [0], [1], [0, 0, 1, 1], [], []>} : vector<4x64xf32>, vector<64x4096xf32>, vector<4x4096xf32> -> vector<4x4096xf32>
      %c0_137 = arith.constant 0 : index
      %c0_138 = arith.constant 0 : index
      %112 = vector.load %arg9[%c0_137, %c0_138] : memref<4x4096xf32, #tpu.memory_space<vmem>>, vector<4x4096xf32>
      tpu.vector_store %arg9[%c0_137, %c0_138], %111 {strides = array<i32>} : memref<4x4096xf32, #tpu.memory_space<vmem>>, vector<4x4096xf32>,
    } else {
    }
    return
  }
  func.func @transform_0(%arg0: i32) -> (i32, i32, i32, i32) {
    %c0_i32 = arith.constant 0 : i32
    %c0_i32_0 = arith.constant 0 : i32
    %c0_i32_1 = arith.constant 0 : i32
    %c0_i32_2 = arith.constant 0 : i32
    return %c0_i32, %c0_i32_0, %c0_i32_1, %arg0 : i32, i32, i32, i32
  }
  func.func @transform_1(%arg0: i32) -> (i32, i32) {
    %c0_i32 = arith.constant 0 : i32
    %c0_i32_0 = arith.constant 0 : i32
    return %arg0, %c0_i32 : i32, i32
  }
  func.func @transform_2(%arg0: i32) -> (i32, i32) {
    %c0_i32 = arith.constant 0 : i32
    %c0_i32_0 = arith.constant 0 : i32
    %c0_i32_1 = arith.constant 0 : i32
    return %c0_i32, %c0_i32_0 : i32, i32
  }
  func.func @transform_3(%arg0: i32) -> (i32, i32) {
    %c0_i32 = arith.constant 0 : i32
    %c0_i32_0 = arith.constant 0 : i32
    %c0_i32_1 = arith.constant 0 : i32
    return %c0_i32, %c0_i32_0 : i32, i32
  }
  func.func @transform_4(%arg0: i32) -> (i32, i32) {
    %c0_i32 = arith.constant 0 : i32
    %c0_i32_0 = arith.constant 0 : i32
    %c0_i32_1 = arith.constant 0 : i32
    return %c0_i32, %c0_i32_0 : i32, i32
  }
  func.func @transform_5(%arg0: i32) -> (i32, i32) {
    %c0_i32 = arith.constant 0 : i32
    %c0_i32_0 = arith.constant 0 : i32
    %c0_i32_1 = arith.constant 0 : i32
    return %c0_i32, %c0_i32_0 : i32, i32
  }
  func.func @transform_6(%arg0: i32) -> (i32, i32) {
    %c0_i32 = arith.constant 0 : i32
    %c0_i32_0 = arith.constant 0 : i32
    %c0_i32_1 = arith.constant 0 : i32
    return %c0_i32, %c0_i32_0 : i32, i32
  }
  func.func @transform_7(%arg0: i32) -> (i32, i32) {
    %c0_i32 = arith.constant 0 : i32
    %c0_i32_0 = arith.constant 0 : i32
    %c0_i32_1 = arith.constant 0 : i32
    return %c0_i32, %c0_i32_0 : i32, i32
  }
  func.func @transform_8(%arg0: i32) -> (i32, i32) {
    %c0_i32 = arith.constant 0 : i32
    %c0_i32_0 = arith.constant 0 : i32
    %c0_i32_1 = arith.constant 0 : i32
    return %c0_i32, %c0_i32_0 : i32, i32
  }
}

</mosaic_0001>

<bundles_post_ra>
// kernel: vit_fcn_forward.1
= control target key start
LH: loop header
LB: loop body
LE: loop exit
PB: predicated region body
PF: predicated region fallthrough
CT: control target
= control target key end

     0   :  { %13 = vsyncpa [#allocation8], 0  ;;  %s13158_s0 = inlined_call_operand.vmem [shape: bf16[1,10,10,768], index: 0, kind: input, shape index: {}]   ;;  %s13159_s1 = inlined_call_operand.hbm [shape: bf16[6912,256], index: 1, kind: input, shape index: {}]   ;;  %s13160_s2 = inlined_call_operand.vmem [shape: bf16[2304,64], index: 2, kind: input, shape index: {}]   ;;  %s13161_s3 = inlined_call_operand.hbm [shape: f32[1,256], index: 3, kind: input, shape index: {}]   ;;  %s13162_s4 = inlined_call_operand.hbm [shape: f32[1,64], index: 4, kind: input, shape index: {}]   ;;  %s13163_s5 = inlined_call_operand.hbm [shape: f32[4,64], index: 5, kind: input, shape index: {}]   ;;  %s13164_s6 = inlined_call_operand.vmem [shape: f32[4,1], index: 6, kind: input, shape index: {}]   ;;  %s13165_s7 = inlined_call_operand.hbm [shape: f32[64,4096], index: 7, kind: input, shape index: {}]   ;;  %s13166_s8 = inlined_call_operand.vmem [shape: f32[4,4096], index: 8, kind: output, shape index: {}]  }
   0x1   :  { %15 = vsyncpa [#allocation8 + $0x1], 0 }
   0x2   :  { %16 = vsyncpa [#allocation10], 0 }
   0x3   :  { %17 = vsyncpa [#allocation13], 0  ;;  %s11295_s27 = smov 0   ;;  %s11297_s28 = smov 0  }
   0x4   :  { %s11299_s29 = smov 0   ;;  %s11301_s30 = smov 0  }
   0x5 LB: > { %s11314_s9 = sadd.s32 4294967295, %s11234_s30   ;;  %s11317_s10 = sadd.s32 1, %s11234_s30   ;;  %s11234_s30 = sphi %s11301_s30, %s13200_s30   ;;  %s11230_s29 = sphi %s11299_s29, %s13199_s29   ;;  %s11226_s28 = sphi %s11297_s28, %s13198_s28   ;;  %s11222_s27 = sphi %s11295_s27, %s13197_s27  }
   0x6   : > { %s27_s11 = ssub.s32 %s11234_s30, %s11317_s10  ;;  %s30_s12 = sadd.s32 1, %s11230_s29 }
   0x7   : > { %p28_p0 = scmp.eq.s32.totalorder %s27_s11, 0  ;;  %p37_p1 = scmp.ne.s32.totalorder %s11230_s29, %s11226_s28 }
   0x8   : > { %p38_p2 = scmp.eq.s32.totalorder %s11234_s30, 0  ;;  %p69_p3 = scmp.ne.s32.totalorder %s11226_s28, %s11222_s27 }
   0x9   : > { %s11327_s13 = scalar_select %p28_p0, %s11230_s29, %s30_s12  }
   0xa   : > { %p11329_p4 = por %p38_p2, %p37_p1  ;;  %p13167_p5 = scmp.eq.s32.totalorder %s11314_s9, 0 }
   0xb   : > { %13171 = sst [smem:[#allocation18_spill]] %s11327_s13  ;;  %p8767_p6 = scmp.ge.s32.totalorder %s11234_s30, 1 }
   0xc   : > { %s13172_s14 = scalar_select %p11329_p4, 1, 0 }
   0xd   : > { %p227_p7 = scmp.lt.s32.totalorder %s11234_s30, 4  ;;  %p11338_p8 = por %p13167_p5, %p69_p3 }
   0xe   : > { %s11236_s17 = smov [#allocation9]   ;;  %s11237_s19 = smov [#allocation12]  }
   0xf   : > { %s13173_s15 = scalar_select %p11338_p8, 1, 0 }
  0x10   : > { %p11343_p10 = pnand %p8767_p6, %p227_p7  ;;  %s243_s18 = sshll.u32 %s11236_s17, 4  ;;  %s244_s18 = int_to_ptr.vmem [resolvable:$true] %s243_s18 }
  0x11   : > { %s265_s20 = sshll.u32 %s11237_s19, 4  ;;  %s11238_s22 = smov [#allocation11]   ;;  %s11355_s20 = int_to_ptr.vmem [resolvable:$true] %s265_s20 }
  0x12   : > { %s13174_s16 = scalar_select %p11343_p10, 1, 0 }
  0x13   : > { %p10378_p11 = pneg %p11343_p10  ;;  %s254_s23 = sshll.u32 %s11238_s22, 4  ;;  %s11357_s23 = int_to_ptr.vmem [resolvable:$true] %s254_s23 }
  0x14   : > { %s11052_s26 = scalar_lea.hbm %s13161_s3, 32 }
  0x15   : > { %p11351_p12 = pnand %p10378_p11, %p13167_p5  ;;  %p11053_p13 = scmp.ne.s32.totalorder %s13161_s3, %s11052_s26 }
  0x16   : > { %p11059_p3 = scmp.lt.u32.totalorder %s11052_s26, %s13161_s3 }
  0x17   : > { %p11367_p0 = pneg %p11351_p12 }
  0x19   : > { %p11055_p1 = pnand %p11367_p0, %p11053_p13 }
  0x1b   : > { %p11056_p2 = pneg %p11055_p1 }
  0x1d   : > { %p11061_p6 = pnand %p11059_p3, %p11056_p2 }
  0x1f   : > { %11064 = shalt.err (!%p11061_p6)
}
  0x20   : > { %s11065_s22 = scalar_lea.vmem %s244_s18, 32  ;;  %p11073_p5 = scmp.lt.s32.totalorder %s244_s18, %s244_s18 }
  0x21   : > { %p11066_p7 = scmp.ne.s32.totalorder %s244_s18, %s11065_s22  ;;  %p11074_p8 = scmp.lt.s32.totalorder %s11065_s22, %s11065_s22 }
  0x23   : > { %p11068_p11 = pnand %p11066_p7, %p11367_p0  ;;  %p11075_p10 = por %p11074_p8, %p11073_p5 }
  0x25   : > { %p11069_p9 = pneg %p11068_p11 }
  0x27   : > { %p11076_p4 = pnand %p11075_p10, %p11069_p9 }
  0x29   : > { %11079 = shalt.err (!%p11076_p4)
}
  0x2a   : > { %10381 = dma.hbm_to_vmem [thread:$0]  (!%p11351_p12), %s13161_s3, 32, %s244_s18, [#allocation10]  }
  0x2b   : > { %s11080_s11 = scalar_lea.hbm %s13163_s5, 64 }
  0x2c   : > { %p11081_p13 = scmp.ne.s32.totalorder %s13163_s5, %s11080_s11  ;;  %p11087_p4 = scmp.lt.u32.totalorder %s11080_s11, %s13163_s5 }
  0x2e   : > { %p11083_p1 = pnand %p11081_p13, %p11367_p0 }
  0x30   : > { %p11084_p5 = pneg %p11083_p1 }
  0x32   : > { %p11089_p8 = pnand %p11087_p4, %p11084_p5 }
  0x34   : > { %11092 = shalt.err (!%p11089_p8)
}
  0x35   : > { %s11093_s18 = scalar_lea.vmem %s11355_s20, 64  ;;  %p11101_p3 = scmp.lt.s32.totalorder %s11355_s20, %s11355_s20 }
  0x36   : > { %p11094_p9 = scmp.ne.s32.totalorder %s11355_s20, %s11093_s18  ;;  %p11102_p6 = scmp.lt.s32.totalorder %s11093_s18, %s11093_s18 }
  0x38   : > { %p11096_p10 = pnand %p11094_p9, %p11367_p0  ;;  %p11103_p7 = por %p11102_p6, %p11101_p3 }
  0x3a   : > { %p11097_p2 = pneg %p11096_p10 }
  0x3c   : > { %p11104_p11 = pnand %p11103_p7, %p11097_p2 }
  0x3e   : > { %11107 = shalt.err (!%p11104_p11)
}
  0x3f   : > { %10387 = dma.hbm_to_vmem [thread:$0]  (!%p11351_p12), %s13163_s5, 64, %s11355_s20, [#allocation13]  }
  0x40   : > { %s11108_s27 = scalar_lea.hbm %s13162_s4, 16 }
  0x41   : > { %p11109_p13 = scmp.ne.s32.totalorder %s13162_s4, %s11108_s27  ;;  %p11115_p4 = scmp.lt.u32.totalorder %s11108_s27, %s13162_s4 }
  0x43   : > { %p11111_p1 = pnand %p11109_p13, %p11367_p0 }
  0x45   : > { %p11112_p5 = pneg %p11111_p1 }
  0x47   : > { %p11117_p8 = pnand %p11115_p4, %p11112_p5 }
  0x49   : > { %11120 = shalt.err (!%p11117_p8)
}
  0x4a   : > { %s11121_s20 = scalar_lea.vmem %s11357_s23, 16  ;;  %s11128_s18 = scalar_lea.vmem %s11357_s23, 32 }
  0x4b   : > { %p11122_p9 = scmp.ne.s32.totalorder %s11357_s23, %s11121_s20  ;;  %p11129_p3 = scmp.lt.s32.totalorder %s11357_s23, %s11357_s23 }
  0x4c   : > { %p11130_p6 = scmp.lt.s32.totalorder %s11128_s18, %s11121_s20 }
  0x4d   : > { %p11124_p10 = pnand %p11122_p9, %p11367_p0 }
  0x4e   : > { %p11131_p7 = por %p11130_p6, %p11129_p3 }
  0x4f   : > { %p11125_p2 = pneg %p11124_p10 }
  0x51   : > { %p11132_p11 = pnand %p11131_p7, %p11125_p2 }
  0x53   : > { %11135 = shalt.err (!%p11132_p11)
}
  0x54   : > { %10384 = dma.hbm_to_vmem [thread:$0]  (!%p11351_p12), %s13162_s4, 16, %s11357_s23, [#allocation10]  }
  0x55   : > { %s11239_s25 = smov [#allocation14]   ;;  %s11136_s17 = scalar_lea.hbm %s13165_s7, 32768 }
  0x56   : > { %s278_s26 = sshll.u32 %s11239_s25, 4  ;;  %p11137_p13 = scmp.ne.s32.totalorder %s13165_s7, %s11136_s17  ;;  %s279_s26 = int_to_ptr.vmem [resolvable:$true] %s278_s26 }
  0x57   : > { %p11143_p4 = scmp.lt.u32.totalorder %s11136_s17, %s13165_s7 }
  0x58   : > { %p11139_p1 = pnand %p11137_p13, %p11367_p0 }
  0x5a   : > { %p11140_p5 = pneg %p11139_p1 }
  0x5c   : > { %p11145_p8 = pnand %p11143_p4, %p11140_p5 }
  0x5e   : > { %11148 = shalt.err (!%p11145_p8)
}
  0x5f   : > { %s11149_s23 = scalar_lea.vmem %s279_s26, 32768  ;;  %p11157_p3 = scmp.lt.s32.totalorder %s279_s26, %s279_s26 }
  0x60   : > { %p11150_p9 = scmp.ne.s32.totalorder %s279_s26, %s11149_s23  ;;  %p11158_p6 = scmp.lt.s32.totalorder %s11149_s23, %s11149_s23 }
  0x62   : > { %p11152_p10 = pnand %p11150_p9, %p11367_p0  ;;  %p11159_p7 = por %p11158_p6, %p11157_p3 }
  0x64   : > { %p11153_p2 = pneg %p11152_p10 }
  0x66   : > { %p11160_p11 = pnand %p11159_p7, %p11153_p2 }
  0x68   : > { %11163 = shalt.err (!%p11160_p11)
}
  0x69   : > { %s11240_s13 = smov 4096   ;;  %s11241_s24 = smov 256  }
  0x6a   : > { %10390 = dma.hbm_to_vmem [thread:$0]  (!%p11351_p12), %s13165_s7, 32768, %s279_s26, [#allocation13], %s11240_s13, %s11240_s13, %s11241_s24  }
  0x6b   : > { %p8772_p13 = scmp.ge.s32.totalorder %s11234_s30, 3 }
  0x6c   : > { %p13177_p1 = scmp.ne.s32.totalorder (!%p8772_p13), %s13172_s14, 0 }
  0x6d   : > { %288 = sbr.rel (%p8772_p13) target bundleno = 158 (0x9e), region = 40 }
  0x74   : > { %291 = sbr.rel (!%p13177_p1) target bundleno = 131 (0x83), region = 44  ;;  %s293_s12 = sand.u32 (%p13177_p1), 1, %s11230_s29  }
  0x75   : > { %s9524_s11 = sshll.u32 (%p13177_p1), %s11234_s30, 3  ;;  %s10356_s17 = smul.u32 (%p13177_p1), 160, %s293_s12 }
  0x76   : > { %s11456_s20 = scalar_lea.vmem (%p13177_p1), %s13158_s0, %s9524_s11 }
  0x77   : > { %v364_v0 = vld [vmem:[%s11456_s20] sm:$0xff] (%p13177_p1)  ;;  %v366_v1 = vld [vmem:[%s11456_s20 + $0x18] sm:$0xff] (%p13177_p1)  ;;  %v368_v2 = vld [vmem:[%s11456_s20 + $0x30] sm:$0xff] (%p13177_p1)  ;;  %s11464_s21 = scalar_lea.vmem (%p13177_p1), [#allocation6], %s10356_s17 }
  0x78   : > { %v370_v3 = vld [vmem:[%s11456_s20 + $0x48] sm:$0xff] (%p13177_p1)  ;;  %v372_v4 = vld [vmem:[%s11456_s20 + $0x60] sm:$0xff] (%p13177_p1)  ;;  %v374_v5 = vld [vmem:[%s11456_s20 + $0x78] sm:$0xff] (%p13177_p1)  ;;  %365 = vst [vmem:[%s11464_s21] sm:$0xff] (%p13177_p1), %v364_v0 }
  0x79   : > { %367 = vst [vmem:[%s11464_s21 + $0x8] sm:$0xff] (%p13177_p1), %v366_v1  ;;  %369 = vst [vmem:[%s11464_s21 + $0x10] sm:$0xff] (%p13177_p1), %v368_v2  ;;  %v376_v6 = vld [vmem:[%s11456_s20 + $0x90] sm:$0xff] (%p13177_p1)  ;;  %v378_v7 = vld [vmem:[%s11456_s20 + $0xa8] sm:$0xff] (%p13177_p1) }
  0x7a   : > { %371 = vst [vmem:[%s11464_s21 + $0x18] sm:$0xff] (%p13177_p1), %v370_v3  ;;  %373 = vst [vmem:[%s11464_s21 + $0x20] sm:$0xff] (%p13177_p1), %v372_v4  ;;  %v380_v8 = vld [vmem:[%s11456_s20 + $0xc0] sm:$0xff] (%p13177_p1)  ;;  %v382_v9 = vld [vmem:[%s11456_s20 + $0xd8] sm:$0xff] (%p13177_p1) }
  0x7b   : > { %375 = vst [vmem:[%s11464_s21 + $0x28] sm:$0xff] %v374_v5  ;;  %377 = vst [vmem:[%s11464_s21 + $0x30] sm:$0xff] %v376_v6  ;;  %v384_v10 = vld [vmem:[%s11456_s20 + $0xf0] sm:$0xff]  ;;  %v386_v11 = vld [vmem:[%s11456_s20 + $0x108] sm:$0xff] }
  0x7c   : > { %379 = vst [vmem:[%s11464_s21 + $0x38] sm:$0xff] %v378_v7  ;;  %381 = vst [vmem:[%s11464_s21 + $0x40] sm:$0xff] %v380_v8  ;;  %v388_v12 = vld [vmem:[%s11456_s20 + $0x120] sm:$0xff]  ;;  %v390_v13 = vld [vmem:[%s11456_s20 + $0x138] sm:$0xff] }
  0x7d   : > { %383 = vst [vmem:[%s11464_s21 + $0x48] sm:$0xff] %v382_v9  ;;  %385 = vst [vmem:[%s11464_s21 + $0x50] sm:$0xff] %v384_v10  ;;  %v392_v14 = vld [vmem:[%s11456_s20 + $0x150] sm:$0xff]  ;;  %v394_v15 = vld [vmem:[%s11456_s20 + $0x168] sm:$0xff] }
  0x7e   : > { %387 = vst [vmem:[%s11464_s21 + $0x58] sm:$0xff] %v386_v11  ;;  %389 = vst [vmem:[%s11464_s21 + $0x60] sm:$0xff] %v388_v12  ;;  %v396_v16 = vld [vmem:[%s11456_s20 + $0x180] sm:$0xff]  ;;  %v398_v17 = vld [vmem:[%s11456_s20 + $0x198] sm:$0xff] }
  0x7f   : > { %391 = vst [vmem:[%s11464_s21 + $0x68] sm:$0xff] %v390_v13  ;;  %393 = vst [vmem:[%s11464_s21 + $0x70] sm:$0xff] %v392_v14  ;;  %v400_v18 = vld [vmem:[%s11456_s20 + $0x1b0] sm:$0xff]  ;;  %v402_v19 = vld [vmem:[%s11456_s20 + $0x1c8] sm:$0xff] }
  0x80   : > { %395 = vst [vmem:[%s11464_s21 + $0x78] sm:$0xff] %v394_v15  ;;  %397 = vst [vmem:[%s11464_s21 + $0x80] sm:$0xff] %v396_v16 }
  0x81   : > { %399 = vst [vmem:[%s11464_s21 + $0x88] sm:$0xff] %v398_v17  ;;  %401 = vst [vmem:[%s11464_s21 + $0x90] sm:$0xff] %v400_v18 }
  0x82   : > { %403 = vst [vmem:[%s11464_s21 + $0x98] sm:$0xff] %v402_v19 }
  0x83 PF: > { %s410_s26 = sand.u32 1, %s11230_s29   ;;  %s9535_s18 = smul.u32 36864, %s11234_s30 }
  0x84   : > { %s10357_s23 = smul.u32 2304, %s410_s26  ;;  %s11509_s11 = scalar_lea.sflag [#allocation8], %s410_s26 }
  0x85   : > { %s11505_s25 = scalar_lea.hbm %s13159_s1, %s9535_s18  ;;  %p13178_p0 = scmp.ne.s32.totalorder %s13172_s14, 0 }
  0x86   : > { %s414_s27 = scalar_lea.vmem [#allocation7], %s10357_s23  ;;  %s11164_s17 = scalar_lea.hbm %s11505_s25, 36864 }
  0x87   : > { %s422_s12 = sshll.u32 %s414_s27, 4  ;;  %p11165_p12 = scmp.ne.s32.totalorder %s11505_s25, %s11164_s17  ;;  %s11507_s12 = int_to_ptr.vmem [resolvable:$true] %s422_s12 }
  0x88   : > { %s11168_s22 = scalar_lea.hbm %s13159_s1, 110592  ;;  %p11169_p8 = scmp.lt.u32.totalorder %s11505_s25, %s13159_s1 }
  0x89   : > { %p11166_p5 = pnand %p11165_p12, %p13178_p0  ;;  %p11170_p9 = scmp.lt.u32.totalorder %s11168_s22, %s11164_s17 }
  0x8a   : > { %p11172_p2 = scmp.lt.u32.totalorder %s11164_s17, %s11505_s25 }
  0x8b   : > { %p11167_p4 = pneg %p11166_p5  ;;  %p11171_p10 = por %p11170_p9, %p11169_p8 }
  0x8d   : > { %p11173_p3 = por %p11172_p2, %p11171_p10 }
  0x8f   : > { %p11174_p6 = pnand %p11173_p3, %p11167_p4 }
  0x91   : > { %11177 = shalt.err (!%p11174_p6)
}
  0x92   : > { %s11178_s26 = scalar_lea.vmem %s11507_s12, 36864  ;;  %s11242_s18 = smov [#allocation7]  }
  0x93   : > { %p11179_p7 = scmp.ne.s32.totalorder %s11507_s12, %s11178_s26  ;;  %s11182_s23 = sshll.u32 %s11242_s18, 4  ;;  %s11183_s23 = int_to_ptr.vmem [resolvable:$false] %s11182_s23 }
  0x94   : > { %s11184_s13 = scalar_lea.vmem %s11183_s23, 73728  ;;  %p11185_p1 = scmp.lt.s32.totalorder %s11507_s12, %s11183_s23 }
  0x95   : > { %p11180_p11 = pnand %p11179_p7, %p13178_p0  ;;  %p11186_p12 = scmp.lt.s32.totalorder %s11184_s13, %s11178_s26 }
  0x97   : > { %p11181_p13 = pneg %p11180_p11  ;;  %p11187_p5 = por %p11186_p12, %p11185_p1 }
  0x99   : > { %p11188_p8 = pnand %p11187_p5, %p11181_p13 }
  0x9b   : > { %11191 = shalt.err (!%p11188_p8)
}
  0x9c   : > { %s11243_s24 = smov 128   ;;  %s11244_s27 = smov 8  }
  0x9d   : > { %10368 = dma.hbm_to_vmem [thread:$0]  (%p13178_p0), %s11505_s25, 36864, %s11507_s12, %s11509_s11, %s11243_s24, %s11243_s24, %s11244_s27  }
  0x9e PF: > { %p13179_p4 = scmp.ne.s32.totalorder %s13174_s16, 0 }
  0x9f   : > { %s437_s17 = sand.u32 (!%p13179_p4), 1, %s11226_s28   ;;  %p13180_p9 = scmp.ne.s32.totalorder (!%p13179_p4), %s13173_s15, 0 }
  0xa0   : > { %434 = sbr.rel (%p13179_p4) target bundleno = 1702 (0x6a6), region = 86  ;;  %s444_s20 = scalar_lea.sflag (!%p13179_p4), [#allocation8], %s437_s17 }
  0xa1   : > { %s10358_s30 = smul.u32 (!%p13179_p4), 160, %s437_s17 }
  0xa2   : > { %s10359_s19 = smul.u32 (!%p13179_p4), 2304, %s437_s17 }
  0xa3   : > { %s11536_s22 = scalar_lea.vmem (!%p13179_p4), [#allocation6], %s10358_s30 }
  0xa4   : > { %s11538_s21 = scalar_lea.vmem (!%p13179_p4), [#allocation7], %s10359_s19 }
  0xa7   : > { %11209 = dma.done.wait (%p13180_p9), %s444_s20, 36864  }
  0xa8   : > { %11211 = vsyncadd (%p13180_p9), %s444_s20, 4294930432  ;;  %p13181_p0 = scmp.eq.s32.totalorder %s11314_s9, 0 }
  0xaa   : > { %11213 = dma.done.wait (%p13181_p0), [#allocation10], 48   ;;  %p13182_p10 = pmov %p13181_p0 }
  0xab   : > { %p13183_p2 = pmov %p13181_p0 }
  0xac   : > { %11215 = vsyncadd (%p13182_p10), [#allocation10], 4294967248 }
  0xad   : > { %11217 = dma.done.wait (%p13183_p2), [#allocation13], 32832   ;;  %p13184_p3 = pmov %p13181_p0 }
  0xae   : > { %p13185_p6 = scmp.ne.s32.totalorder %s11314_s9, 0 }
  0xaf   : > { %11219 = vsyncadd (%p13184_p3), [#allocation13], 4294934464  ;;  %v11245_v20 = vmov (!%p13185_p6), 0.0  }
  0xb0   : > { %501 = sbr.rel (%p13185_p6) target bundleno = 184 (0xb8), region = 114  ;;  %502 = vst [vmem:[#allocation2] sm:$0xff] (!%p13185_p6), %v11245_v20  ;;  %503 = vst [vmem:[#allocation2 + $0x8] sm:$0xff] (!%p13185_p6), %v11245_v20 }
  0xb1   : > { %504 = vst [vmem:[#allocation2 + $0x10] sm:$0xff] (!%p13185_p6), %v11245_v20  ;;  %505 = vst [vmem:[#allocation2 + $0x18] sm:$0xff] (!%p13185_p6), %v11245_v20 }
  0xb2   : > { %506 = vst [vmem:[#allocation2 + $0x20] sm:$0xff] (!%p13185_p6), %v11245_v20  ;;  %507 = vst [vmem:[#allocation2 + $0x28] sm:$0xff] (!%p13185_p6), %v11245_v20 }
  0xb3   : > { %508 = vst [vmem:[#allocation2 + $0x30] sm:$0xff] (!%p13185_p6), %v11245_v20  ;;  %509 = vst [vmem:[#allocation2 + $0x38] sm:$0xff] (!%p13185_p6), %v11245_v20 }
  0xb4   : > { %510 = vst [vmem:[#allocation2 + $0x40] sm:$0xff] (!%p13185_p6), %v11245_v20  ;;  %511 = vst [vmem:[#allocation2 + $0x48] sm:$0xff] (!%p13185_p6), %v11245_v20 }
  0xb5   : > { %512 = vst [vmem:[#allocation2 + $0x50] sm:$0xff] (!%p13185_p6), %v11245_v20  ;;  %513 = vst [vmem:[#allocation2 + $0x58] sm:$0xff] (!%p13185_p6), %v11245_v20 }
  0xb6   : > { %514 = vst [vmem:[#allocation2 + $0x60] sm:$0xff] (!%p13185_p6), %v11245_v20  ;;  %515 = vst [vmem:[#allocation2 + $0x68] sm:$0xff] (!%p13185_p6), %v11245_v20 }
  0xb7   : > { %516 = vst [vmem:[#allocation2 + $0x70] sm:$0xff] %v11245_v20  ;;  %517 = vst [vmem:[#allocation2 + $0x78] sm:$0xff] %v11245_v20 }
  0xb8 PF: > { %v10444_v21 = vld [vmem:[%s11538_s21 + $0x4] ss:$8 sps:$4 sm:$0xff]   ;;  %v10448_v23 = vld [vmem:[%s11538_s21] ss:$8 sps:$4 sm:$0xff]   ;;  %v10450_v25 = vld [vmem:[%s11538_s21 + $0x14] ss:$8 sps:$4 sm:$0xff]  }
  0xb9   : > { %v10446_v22 = vld [vmem:[%s11538_s21 + $0x404] ss:$8 sps:$4 sm:$0xff]   ;;  %3326 = vmatprep.subr.bf16.mxu1 %v10444_v21  ;;  %v10449_v24 = vld [vmem:[%s11538_s21 + $0x400] ss:$8 sps:$4 sm:$0xff]   ;;  %v10452_v26 = vld [vmem:[%s11538_s21 + $0x414] ss:$8 sps:$4 sm:$0xff]  }
  0xba   : > { %3618 = vmatprep.subr.bf16.mxu0 %v10446_v22  ;;  %3327 = vmatpush1.bf16.msra.mxu1 %v10448_v23  ;;  %v10454_v27 = vld [vmem:[%s11538_s21 + $0x10] ss:$8 sps:$4 sm:$0xff]   ;;  %v10456_v29 = vld [vmem:[%s11538_s21 + $0x24] ss:$8 sps:$4 sm:$0xff]   ;;  %v10460_v31 = vld [vmem:[%s11538_s21 + $0x20] ss:$8 sps:$4 sm:$0xff]  }
  0xbb   : > { %3619 = vmatpush1.bf16.msra.mxu0 %v10449_v24  ;;  %3328 = vmatprep.subr.bf16.mxu1 %v10450_v25  ;;  %v10455_v28 = vld [vmem:[%s11538_s21 + $0x410] ss:$8 sps:$4 sm:$0xff]   ;;  %v10458_v30 = vld [vmem:[%s11538_s21 + $0x424] ss:$8 sps:$4 sm:$0xff]   ;;  %v10461_v32 = vld [vmem:[%s11538_s21 + $0x420] ss:$8 sps:$4 sm:$0xff]  }
  0xbc   : > { %3620 = vmatprep.subr.bf16.mxu0 %v10452_v26  ;;  %v10462_v33 = vld [vmem:[%s11538_s21 + $0x34] ss:$8 sps:$4 sm:$0xff]   ;;  %v10466_v35 = vld [vmem:[%s11538_s21 + $0x30] ss:$8 sps:$4 sm:$0xff]   ;;  %v10468_v37 = vld [vmem:[%s11538_s21 + $0x44] ss:$8 sps:$4 sm:$0xff]  }
  0xbd   : > { %v10464_v34 = vld [vmem:[%s11538_s21 + $0x434] ss:$8 sps:$4 sm:$0xff]   ;;  %v10467_v36 = vld [vmem:[%s11538_s21 + $0x430] ss:$8 sps:$4 sm:$0xff]   ;;  %v10470_v38 = vld [vmem:[%s11538_s21 + $0x444] ss:$8 sps:$4 sm:$0xff]  }
  0xbe   : > { %3329 = vmatpush1.bf16.msra.mxu1 %v10454_v27  ;;  %v10472_v39 = vld [vmem:[%s11538_s21 + $0x40] ss:$8 sps:$4 sm:$0xff]   ;;  %v10474_v41 = vld [vmem:[%s11538_s21 + $0x54] ss:$8 sps:$4 sm:$0xff]   ;;  %v10478_v43 = vld [vmem:[%s11538_s21 + $0x50] ss:$8 sps:$4 sm:$0xff]  }
  0xbf   : > { %3621 = vmatpush1.bf16.msra.mxu0 %v10455_v28  ;;  %3330 = vmatprep.subr.bf16.mxu1 %v10456_v29  ;;  %v10473_v40 = vld [vmem:[%s11538_s21 + $0x440] ss:$8 sps:$4 sm:$0xff]   ;;  %v10476_v42 = vld [vmem:[%s11538_s21 + $0x454] ss:$8 sps:$4 sm:$0xff]   ;;  %v10479_v44 = vld [vmem:[%s11538_s21 + $0x450] ss:$8 sps:$4 sm:$0xff]  }
  0xc0   : > { %3622 = vmatprep.subr.bf16.mxu0 %v10458_v30  ;;  %v10480_v45 = vld [vmem:[%s11538_s21 + $0x64] ss:$8 sps:$4 sm:$0xff]   ;;  %v10484_v47 = vld [vmem:[%s11538_s21 + $0x60] ss:$8 sps:$4 sm:$0xff]   ;;  %v10486_v49 = vld [vmem:[%s11538_s21 + $0x74] ss:$8 sps:$4 sm:$0xff]  }
  0xc1   : > { %v10482_v46 = vld [vmem:[%s11538_s21 + $0x464] ss:$8 sps:$4 sm:$0xff]   ;;  %v10485_v48 = vld [vmem:[%s11538_s21 + $0x460] ss:$8 sps:$4 sm:$0xff]   ;;  %v10488_v50 = vld [vmem:[%s11538_s21 + $0x474] ss:$8 sps:$4 sm:$0xff]  }
  0xc2   : > { %3331 = vmatpush1.bf16.msra.mxu1 %v10460_v31  ;;  %v10490_v51 = vld [vmem:[%s11538_s21 + $0x70] ss:$8 sps:$4 sm:$0xff]   ;;  %v10492_v53 = vld [vmem:[%s11538_s21 + $0x84] ss:$8 sps:$4 sm:$0xff]   ;;  %v10496_v55 = vld [vmem:[%s11538_s21 + $0x80] ss:$8 sps:$4 sm:$0xff]  }
  0xc3   : > { %3623 = vmatpush1.bf16.msra.mxu0 %v10461_v32  ;;  %3332 = vmatprep.subr.bf16.mxu1 %v10462_v33  ;;  %v10491_v52 = vld [vmem:[%s11538_s21 + $0x470] ss:$8 sps:$4 sm:$0xff]   ;;  %v10494_v54 = vld [vmem:[%s11538_s21 + $0x484] ss:$8 sps:$4 sm:$0xff]   ;;  %v10497_v56 = vld [vmem:[%s11538_s21 + $0x480] ss:$8 sps:$4 sm:$0xff]  }
  0xc4   : > { %3624 = vmatprep.subr.bf16.mxu0 %v10464_v34  ;;  %v10498_v57 = vld [vmem:[%s11538_s21 + $0x94] ss:$8 sps:$4 sm:$0xff]   ;;  %v10502_v59 = vld [vmem:[%s11538_s21 + $0x90] ss:$8 sps:$4 sm:$0xff]   ;;  %v10504_v61 = vld [vmem:[%s11538_s21 + $0xa4] ss:$8 sps:$4 sm:$0xff]  }
  0xc5   : > { %v10500_v58 = vld [vmem:[%s11538_s21 + $0x494] ss:$8 sps:$4 sm:$0xff]   ;;  %v10503_v60 = vld [vmem:[%s11538_s21 + $0x490] ss:$8 sps:$4 sm:$0xff]   ;;  %v10506_v62 = vld [vmem:[%s11538_s21 + $0x4a4] ss:$8 sps:$4 sm:$0xff]  }
  0xc6   : > { %3333 = vmatpush1.bf16.msra.mxu1 %v10466_v35  ;;  %v10508_v63 = vld [vmem:[%s11538_s21 + $0xa0] ss:$8 sps:$4 sm:$0xff]   ;;  %v10510_v1 = vld [vmem:[%s11538_s21 + $0xb4] ss:$8 sps:$4 sm:$0xff]   ;;  %vm590_vm0 = vsmask.f32 3328 }
  0xc7   : > { %3625 = vmatpush1.bf16.msra.mxu0 %v10467_v36  ;;  %3334 = vmatprep.subr.bf16.mxu1 %v10468_v37  ;;  %v10509_v0 = vld [vmem:[%s11538_s21 + $0x4a0] ss:$8 sps:$4 sm:$0xff]   ;;  %v10512_v2 = vld [vmem:[%s11538_s21 + $0x4b4] ss:$8 sps:$4 sm:$0xff]   ;;  %v10514_v3 = vld [vmem:[%s11538_s21 + $0xb0] ss:$8 sps:$4 sm:$0xff]  }
  0xc8   : > { %3626 = vmatprep.subr.bf16.mxu0 %v10470_v38  ;;  %v10515_v4 = vld [vmem:[%s11538_s21 + $0x4b0] ss:$8 sps:$4 sm:$0xff]   ;;  %v11603_v5 = vld [vmem:[%s11536_s22] sm:$0xff]  ;;  %vm591_vm1 = vsmask.f32 7440  ;;  %vm777_vm3 = vcmask 1042432  }
  0xc9   : > { %v11606_v6 = vld [vmem:[%s11536_s22 + $0x10] sm:$0xff]  ;;  %v10516_v7 = vld [vmem:[%s11538_s21 + $0xc4] ss:$8 sps:$4 sm:$0xff]   ;;  %v8832_v12 = vld [vmem:[%s11536_s22 + $0x18] sm:$0x11]  ;;  %vm778_vm4 = vcmask 1046532  }
  0xca   : > { %3335 = vmatpush1.bf16.msra.mxu1 %v10472_v39  ;;  %v10518_v8 = vld [vmem:[%s11538_s21 + $0x4c4] ss:$8 sps:$4 sm:$0xff]   ;;  %v8784_v9 = vcombine.high %v11603_v5, %v11606_v6  ;;  %v926_v10 = vshrl.u32 %v11606_v6, 16  ;;  %v929_v11 = vshll.u32 %v11606_v6, 16  ;;  %v935_v17 = vshll.u32 %v8832_v12, 16  ;;  %vm11627_vm2 = vmor %vm590_vm0, %vm591_vm1  ;;  %p9247_p7 = scmp.ne.s32.totalorder %s11314_s9, 2 }
  0xcb   : > { %3627 = vmatpush1.bf16.msra.mxu0 %v10473_v40  ;;  %3336 = vmatprep.subr.bf16.mxu1 %v10474_v41  ;;  %v11616_v13 = vld [vmem:[%s11536_s22 + $0x20] sm:$0xff]  ;;  %v8834_v14 = vld [vmem:[%s11536_s22 + $0x28] sm:$0x11]  ;;  %v10522_v23 = vld [vmem:[%s11538_s21 + $0xd4] ss:$8 sps:$4 sm:$0xff]   ;;  %vm4220_vm6 = vcmask (!%p9247_p7), 1043456  }
  0xcc   : > { %3628 = vmatprep.subr.bf16.mxu0 %v10476_v42  ;;  %3358 = vmatprep.mubr.bf16.mxu1 %v8784_v9  ;;  %v928_v15 = vrot.slane %v926_v10, 4  ;;  %v931_v16 = vrot.slane %v929_v11, 5  ;;  %v940_v18 = vshrl.u32 %v11616_v13, 16  ;;  %v10520_v19 = vld [vmem:[%s11538_s21 + $0xc0] ss:$8 sps:$4 sm:$0xff]   ;;  %v943_v21 = vshll.u32 %v11616_v13, 16  ;;  %vm11751_vm5 = vmor %vm777_vm3, %vm778_vm4 }
  0xcd   : > { %v10521_v20 = vld [vmem:[%s11538_s21 + $0x4c0] ss:$8 sps:$4 sm:$0xff]   ;;  %v949_v22 = vshll.u32 %v8834_v14, 16  ;;  %v10524_v26 = vld [vmem:[%s11538_s21 + $0x4d4] ss:$8 sps:$4 sm:$0xff]   ;;  %v937_v27 = vrot.slane %v935_v17, 5 }
  0xce   : > { %3337 = vmatpush1.bf16.msra.mxu1 %v10478_v43  ;;  %v932_v24 = vor.u32 %v931_v16, %v928_v15  ;;  %v942_v25 = vrot.slane %v940_v18, 4  ;;  %v945_v28 = vrot.slane %v943_v21, 5  ;;  %v10526_v31 = vld [vmem:[%s11538_s21 + $0xd0] ss:$8 sps:$4 sm:$0xff]   ;;  %v10528_v35 = vld [vmem:[%s11538_s21 + $0xe4] ss:$8 sps:$4 sm:$0xff]  }
  0xcf   : > { %3629 = vmatpush1.bf16.msra.mxu0 %v10479_v44  ;;  %3338 = vmatprep.subr.bf16.mxu1 %v10480_v45  ;;  %v10527_v32 = vld [vmem:[%s11538_s21 + $0x4d0] ss:$8 sps:$4 sm:$0xff]   ;;  %v951_v34 = vrot.slane %v949_v22, 5  ;;  %v10530_v36 = vld [vmem:[%s11538_s21 + $0x4e4] ss:$8 sps:$4 sm:$0xff]   ;;  %v594_v22 = vshrl.u32 %v11603_v5, 16 }
  0xd0   : > { %3630 = vmatprep.subr.bf16.mxu0 %v10482_v46  ;;  %v11631_v30 = vrot.slane %v932_v24, 4  ;;  %v946_v33 = vor.u32 %v945_v28, %v942_v25  ;;  %v10532_v39 = vld [vmem:[%s11538_s21 + $0xe0] ss:$8 sps:$4 sm:$0xff]   ;;  %v10534_v42 = vld [vmem:[%s11538_s21 + $0xf4] ss:$8 sps:$4 sm:$0xff]   ;;  %vm4223_vm7 = vcmask (!%p9247_p7), 1047556  }
  0xd1   : > { %v10533_v40 = vld [vmem:[%s11538_s21 + $0x4e0] ss:$8 sps:$4 sm:$0xff]   ;;  %v10536_v44 = vld [vmem:[%s11538_s21 + $0x4f4] ss:$8 sps:$4 sm:$0xff]   ;;  %v10538_v45 = vld [vmem:[%s11538_s21 + $0xf0] ss:$8 sps:$4 sm:$0xff]  }
  0xd2   : > { %3339 = vmatpush1.bf16.msra.mxu1 %v10484_v47  ;;  %v938_v37 = vsel %vm11627_vm2, %v11631_v30, %v937_v27  ;;  %v11640_v38 = vrot.slane %v946_v33, 4  ;;  %v10539_v46 = vld [vmem:[%s11538_s21 + $0x4f0] ss:$8 sps:$4 sm:$0xff]   ;;  %v10544_v47 = vld [vmem:[%s11538_s21 + $0x104] ss:$8 sps:$4 sm:$0xff]   ;;  %vm4230_vm8 = vcmask (!%p9247_p7), 1040384  }
  0xd3   : > { %3631 = vmatpush1.bf16.msra.mxu0 %v10485_v48  ;;  %3340 = vmatprep.subr.bf16.mxu1 %v10486_v49  ;;  %v10547_v48 = vld [vmem:[%s11538_s21 + $0x504] ss:$8 sps:$4 sm:$0xff]   ;;  %v8783_v49 = vcombine.low %v11603_v5, %v11606_v6  ;;  %v10566_v24 = vld [vmem:[%s11538_s21 + $0x140] ss:$8 sps:$4 sm:$0xff]   ;;  %v523_v28 = vld [vmem:[%s11536_s22 + $0x50] sm:$0xff]  ;;  %vm4233_vm14 = vcmask (!%p9247_p7), 1044484  }
  0xd4   : > { %3632 = vmatprep.subr.bf16.mxu0 %v10488_v50  ;;  %v952_v41 = vsel %vm11627_vm2, %v11640_v38, %v951_v34  ;;  %v10542_v50 = vld [vmem:[%s11538_s21 + $0x100] ss:$8 sps:$4 sm:$0xff]   ;;  %v10568_v15 = vld [vmem:[%s11538_s21 + $0x144] ss:$8 sps:$4 sm:$0xff]   ;;  %v982_v34 = vshrl.u32 %v523_v28, 16 }
  0xd5   : > { %v8848_v43 = vcombine.high %v938_v37, %v952_v41  ;;  %v8838_v6 = vld [vmem:[%s11536_s22 + $0x48] sm:$0x11]  ;;  %vm4221_vm9 = vsmask.f32 (!%p9247_p7), 7938  ;;  %vm4224_vm11 = vsmask.f32 (!%p9247_p7), 7954 }
  0xd6   : > { %3341 = vmatpush1.bf16.msra.mxu1 %v10490_v51  ;;  %v8847_v51 = vcombine.low %v938_v37, %v952_v41  ;;  %v977_v14 = vshll.u32 %v8838_v6, 16  ;;  %v10571_v18 = vld [vmem:[%s11538_s21 + $0x544] ss:$8 sps:$4 sm:$0xff]   ;;  %v10569_v25 = vld [vmem:[%s11538_s21 + $0x540] ss:$8 sps:$4 sm:$0xff]   ;;  %vm4222_vm10 = vmand (!%p9247_p7), %vm4220_vm6, %vm4221_vm9 }
  0xd7   : > { %3633 = vmatpush1.bf16.msra.mxu0 %v10491_v52  ;;  %3342 = vmatprep.subr.bf16.mxu1 %v10492_v53  ;;  %v10545_v52 = vld [vmem:[%s11538_s21 + $0x500] ss:$8 sps:$4 sm:$0xff]   ;;  %v10550_v53 = vld [vmem:[%s11538_s21 + $0x114] ss:$8 sps:$4 sm:$0xff]   ;;  %vm4225_vm12 = vmand (!%p9247_p7), %vm4223_vm7, %vm4224_vm11  ;;  %vm4231_vm13 = vsmask.f32 (!%p9247_p7), 256 }
  0xd8   : > { %3634 = vmatprep.subr.bf16.mxu0 %v10494_v54  ;;  %3650 = vmatprep.mubr.bf16.mxu0 %v8848_v43  ;;  %v10553_v54 = vld [vmem:[%s11538_s21 + $0x514] ss:$8 sps:$4 sm:$0xff]   ;;  %v979_v27 = vrot.slane %v977_v14, 5  ;;  %v11695_v37 = vld [vmem:[%s11536_s22 + $0x60] sm:$0xff]  ;;  %v984_v43 = vrot.slane %v982_v34, 4  ;;  %vm12369_vm15 = vmor (!%p9247_p7), %vm4225_vm12, %vm4222_vm10 }
  0xd9   : > { %vm4234_vm0 = vsmask.f32 (!%p9247_p7), 4352  ;;  %vm4232_vm1 = vmand (!%p9247_p7), %vm4230_vm8, %vm4231_vm13 }
  0xda   : > { %3343 = vmatpush1.bf16.msra.mxu1 %v10496_v55  ;;  %v10548_v55 = vld [vmem:[%s11538_s21 + $0x110] ss:$8 sps:$4 sm:$0xff]   ;;  %vm4235_vm3 = vmand (!%p9247_p7), %vm4233_vm14, %vm4234_vm0 }
  0xdb   : > { %3635 = vmatpush1.bf16.msra.mxu0 %v10497_v56  ;;  %3344 = vmatprep.subr.bf16.mxu1 %v10498_v57  ;;  %v10551_v56 = vld [vmem:[%s11538_s21 + $0x510] ss:$8 sps:$4 sm:$0xff]   ;;  %v10556_v57 = vld [vmem:[%s11538_s21 + $0x124] ss:$8 sps:$4 sm:$0xff]   ;;  %vm12381_vm4 = vmor (!%p9247_p7), %vm4235_vm3, %vm4232_vm1 }
  0xdc   : > { %3636 = vmatprep.subr.bf16.mxu0 %v10500_v58  ;;  %v10559_v58 = vld [vmem:[%s11538_s21 + $0x524] ss:$8 sps:$4 sm:$0xff]  }
  0xde   : > { %3345 = vmatpush1.bf16.msra.mxu1 %v10502_v59  ;;  %v10554_v59 = vld [vmem:[%s11538_s21 + $0x120] ss:$8 sps:$4 sm:$0xff]  }
  0xdf   : > { %3637 = vmatpush1.bf16.msra.mxu0 %v10503_v60  ;;  %3346 = vmatprep.subr.bf16.mxu1 %v10504_v61  ;;  %v10557_v60 = vld [vmem:[%s11538_s21 + $0x520] ss:$8 sps:$4 sm:$0xff]   ;;  %v521_v61 = vld [vmem:[%s11536_s22 + $0x30] sm:$0xff] }
  0xe0   : > { %3638 = vmatprep.subr.bf16.mxu0 %v10506_v62  ;;  %v10562_v62 = vld [vmem:[%s11538_s21 + $0x134] ss:$8 sps:$4 sm:$0xff]   ;;  %v8785_v10 = vcombine.low %v11616_v13, %v521_v61 }
  0xe2   : > { %3347 = vmatpush1.bf16.msra.mxu1 %v10508_v63  ;;  %v10565_v63 = vld [vmem:[%s11538_s21 + $0x534] ss:$8 sps:$4 sm:$0xff]  }
  0xe3   : > { %3639 = vmatpush1.bf16.msra.mxu0 %v10509_v0  ;;  %3348 = vmatprep.subr.bf16.mxu1 %v10510_v1  ;;  %v8786_v0 = vcombine.high %v11616_v13, %v521_v61  ;;  %v8836_v1 = vld [vmem:[%s11536_s22 + $0x38] sm:$0x11] }
  0xe4   : > { %3640 = vmatprep.subr.bf16.mxu0 %v10512_v2  ;;  %v10560_v2 = vld [vmem:[%s11538_s21 + $0x130] ss:$8 sps:$4 sm:$0xff]   ;;  %v963_v9 = vshll.u32 %v8836_v1, 16 }
  0xe6   : > { %3349 = vmatpush1.bf16.msra.mxu1 %v10514_v3  ;;  %v10563_v3 = vld [vmem:[%s11538_s21 + $0x530] ss:$8 sps:$4 sm:$0xff]   ;;  %v965_v21 = vrot.slane %v963_v9, 5 }
  0xe7   : > { %3641 = vmatpush1.bf16.msra.mxu0 %v10515_v4  ;;  %3350 = vmatprep.subr.bf16.mxu1 %v10516_v7  ;;  %v11673_v4 = vld [vmem:[%s11536_s22 + $0x40] sm:$0xff]  ;;  %v954_v7 = vshrl.u32 %v521_v61, 16  ;;  %v8844_v9 = vld [vmem:[%s11536_s22 + $0x78] sm:$0x11] }
  0xe8   : > { %3642 = vmatprep.subr.bf16.mxu0 %v10518_v8  ;;  %v957_v8 = vshll.u32 %v521_v61, 16  ;;  %v968_v11 = vshrl.u32 %v11673_v4, 16  ;;  %v971_v12 = vshll.u32 %v11673_v4, 16  ;;  %v8788_v33 = vcombine.high %v11673_v4, %v523_v28 }
  0xe9   : > { %v956_v16 = vrot.slane %v954_v7, 4 }
  0xea   : > { %3351 = vmatpush1.bf16.msra.mxu1 %v10520_v19  ;;  %v959_v17 = vrot.slane %v957_v8, 5  ;;  %v970_v19 = vrot.slane %v968_v11, 4  ;;  %v973_v13 = vrot.slane %v971_v12, 5  ;;  %v8846_v11 = vld [vmem:[%s11536_s22 + $0x88] sm:$0x11] }
  0xeb   : > { %3643 = vmatpush1.bf16.msra.mxu0 %v10521_v20  ;;  %3352 = vmatprep.subr.bf16.mxu1 %v10522_v23  ;;  %v597_v23 = vshll.u32 %v11603_v5, 16  ;;  %v10577_v5 = vld [vmem:[%s11538_s21 + $0x554] ss:$8 sps:$4 sm:$0xff]  }
  0xec   : > { %3644 = vmatprep.subr.bf16.mxu0 %v10524_v26  ;;  %v960_v20 = vor.u32 %v959_v17, %v956_v16  ;;  %v974_v26 = vor.u32 %v973_v13, %v970_v19 }
  0xee   : > { %3353 = vmatpush1.bf16.msra.mxu1 %v10526_v31  ;;  %v10574_v31 = vld [vmem:[%s11538_s21 + $0x154] ss:$8 sps:$4 sm:$0xff]  }
  0xef   : > { %3645 = vmatpush1.bf16.msra.mxu0 %v10527_v32  ;;  %3354 = vmatprep.subr.bf16.mxu1 %v10528_v35  ;;  %v11687_v32 = vrot.slane %v960_v20, 4  ;;  %v11691_v35 = vrot.slane %v974_v26, 4 }
  0xf0   : > { %3646 = vmatprep.subr.bf16.mxu0 %v10530_v36  ;;  %v8840_v36 = vld [vmem:[%s11536_s22 + $0x58] sm:$0x11] }
  0xf1   : > { %v966_v41 = vsel %vm11627_vm2, %v11687_v32, %v965_v21  ;;  %v1033_v21 = vshll.u32 %v8846_v11, 16 }
  0xf2   : > { %3355 = vmatpush1.bf16.msra.mxu1 %v10532_v39  ;;  %v8787_v39 = vcombine.low %v11673_v4, %v523_v28  ;;  %v10589_v4 = vld [vmem:[%s11538_s21 + $0x574] ss:$8 sps:$4 sm:$0xff]  }
  0xf3   : > { %3647 = vmatpush1.bf16.msra.mxu0 %v10533_v40  ;;  %3356 = vmatprep.subr.bf16.mxu1 %v10534_v42  ;;  %v10572_v40 = vld [vmem:[%s11538_s21 + $0x150] ss:$8 sps:$4 sm:$0xff]   ;;  %v8842_v42 = vld [vmem:[%s11536_s22 + $0x68] sm:$0x11] }
  0xf4   : > { %3648 = vmatprep.subr.bf16.mxu0 %v10536_v44  ;;  %v985_v44 = vshll.u32 %v523_v28, 16  ;;  %v10592_v28 = vld [vmem:[%s11538_s21 + $0x184] ss:$8 sps:$4 sm:$0xff]  }
  0xf6   : > { %3357 = vmatpush1.bf16.msra.mxu1 %v10538_v45  ;;  %v991_v45 = vshll.u32 %v8840_v36, 16  ;;  %v10593_v36 = vld [vmem:[%s11538_s21 + $0x580] ss:$8 sps:$4 sm:$0xff]  }
  0xf7   : > { %3649 = vmatpush1.bf16.msra.mxu0 %v10539_v46  ;;  %3399 = vmatprep.subr.bf16.mxu1 %v10544_v47  ;;  %v10575_v46 = vld [vmem:[%s11538_s21 + $0x550] ss:$8 sps:$4 sm:$0xff]   ;;  %v980_v47 = vsel %vm11627_vm2, %v11691_v35, %v979_v27 }
  0xf8   : > { %3691 = vmatprep.subr.bf16.mxu0 %v10547_v48  ;;  %v996_v48 = vshrl.u32 %v11695_v37, 16 }
  0xf9   : > { %3359 = vmatmul.mubr.bf16.vlgmr.msra.gmra.mrb[0].mxu1 %v8783_v49  ;;  %v999_v49 = vshll.u32 %v11695_v37, 16 }
  0xfa   : > { %3651 = vmatmul.mubr.bf16.vlgmr.msra.gmra.mrb[0].mxu0 %v8847_v51  ;;  %3400 = vmatpush1.bf16.msra.mxu1 %v10542_v50  ;;  %v1005_v50 = vshll.u32 %v8842_v42, 16  ;;  %v10580_v51 = vld [vmem:[%s11538_s21 + $0x164] ss:$8 sps:$4 sm:$0xff]  }
  0xfb   : > { %3692 = vmatpush1.bf16.msra.mxu0 %v10545_v52  ;;  %3401 = vmatprep.subr.bf16.mxu1 %v10550_v53  ;;  %v8850_v52 = vcombine.high %v966_v41, %v980_v47  ;;  %v8849_v53 = vcombine.low %v966_v41, %v980_v47  ;;  %v1035_v41 = vrot.slane %v1033_v21, 5  ;;  %v575_v42 = vld [vmem:[%s11536_s22 + $0x8] sm:$0x11] }
  0xfc   : > { %3693 = vmatprep.subr.bf16.mxu0 %v10553_v54  ;;  %3368 = vmatprep.mubr.bf16.mxu1 %v8786_v0  ;;  %v987_v54 = vrot.slane %v985_v44, 5  ;;  %v1007_v1 = vrot.slane %v1005_v50, 5  ;;  %v10622_v21 = vld [vmem:[%s11538_s21 + $0x5c4] ss:$8 sps:$4 sm:$0xff]  }
  0xfd   : > { %3660 = vmatprep.mubr.bf16.mxu0 %v8850_v52 }
  0xfe   : > { %3402 = vmatpush1.bf16.msra.mxu1 %v10548_v55  ;;  %v11710_v55 = vrot.slane %v594_v22, 4  ;;  %v988_v61 = vor.u32 %v987_v54, %v984_v43  ;;  %v10584_v22 = vld [vmem:[%s11538_s21 + $0x170] ss:$8 sps:$4 sm:$0xff]  }
  0xff   : > { %3694 = vmatpush1.bf16.msra.mxu0 %v10551_v56  ;;  %3403 = vmatprep.subr.bf16.mxu1 %v10556_v57  ;;  %v10583_v56 = vld [vmem:[%s11538_s21 + $0x564] ss:$8 sps:$4 sm:$0xff]   ;;  %v998_v57 = vrot.slane %v996_v48, 4  ;;  %v577_v43 = vld [vmem:[%s11536_s22 + $0x18] sm:$0x11] }
 0x100   : > { %3695 = vmatprep.subr.bf16.mxu0 %v10559_v58  ;;  %v1001_v58 = vrot.slane %v999_v49, 5  ;;  %v11718_v6 = vrot.slane %v988_v61, 4  ;;  %v617_v47 = vshll.u32 %v577_v43, 16  ;;  %v10598_v48 = vld [vmem:[%s11538_s21 + $0x194] ss:$8 sps:$4 sm:$0xff]  }
 0x101   : > { %3369 = vmatmul.mubr.bf16.gmra.mrb[4].mxu1 %v8785_v10  ;;  %v8845_v10 = vld [vmem:[%s11536_s22 + $0x80] sm:$0xff]  ;;  %v10601_v49 = vld [vmem:[%s11538_s21 + $0x594] ss:$8 sps:$4 sm:$0xff]  }
 0x102   : > { %3404 = vmatpush1.bf16.msra.mxu1 %v10554_v59  ;;  %3378 = vmatprep.mubr.bf16.mxu1 %v8788_v33  ;;  %v599_v59 = vrot.slane %v597_v23, 5  ;;  %v1002_v0 = vor.u32 %v1001_v58, %v998_v57  ;;  %v1024_v13 = vshrl.u32 %v8845_v10, 16  ;;  %v1027_v20 = vshll.u32 %v8845_v10, 16  ;;  %v10587_v23 = vld [vmem:[%s11538_s21 + $0x570] ss:$8 sps:$4 sm:$0xff]  }
 0x103   : > { %3696 = vmatpush1.bf16.msra.mxu0 %v10557_v60  ;;  %3405 = vmatprep.subr.bf16.mxu1 %v10562_v62  ;;  %v10578_v60 = vld [vmem:[%s11538_s21 + $0x160] ss:$8 sps:$4 sm:$0xff]   ;;  %v993_v62 = vrot.slane %v991_v45, 5  ;;  %v581_v43 = vld [vmem:[%s11536_s22 + $0x38] sm:$0x11] }
 0x104   : > { %3697 = vmatprep.subr.bf16.mxu0 %v10565_v63  ;;  %v10581_v63 = vld [vmem:[%s11538_s21 + $0x560] ss:$8 sps:$4 sm:$0xff]   ;;  %3661 = vmatmul.mubr.bf16.gmra.mrb[4].mxu0 %v8849_v53  ;;  %v11721_v8 = vrot.slane %v1002_v0, 4  ;;  %v600_v14 = vor.u32 %v599_v59, %v11710_v55  ;;  %v1026_v33 = vrot.slane %v1024_v13, 4  ;;  %v1029_v34 = vrot.slane %v1027_v20, 5 }
 0x105   : > { %v619_v53 = vrot.slane %v617_v47, 5  ;;  %v8855_v55 = vld [vmem:[%s11536_s22 + $0x10] sm:$0xee]  ;;  %v8857_v58 = vld [vmem:[%s11536_s22 + $0x20] sm:$0xee] }
 0x106   : > { %3406 = vmatpush1.bf16.msra.mxu1 %v10560_v2  ;;  %v525_v2 = vld [vmem:[%s11536_s22 + $0x70] sm:$0xff]  ;;  %v1008_v19 = vsel %vm11627_vm2, %v11721_v8, %v1007_v1  ;;  %v601_v44 = vrot.slane %v600_v14, 4  ;;  %v8858_v59 = vld [vmem:[%s11536_s22 + $0x28] sm:$0x11] }
 0x107   : > { %3698 = vmatpush1.bf16.msra.mxu0 %v10563_v3  ;;  %3407 = vmatprep.subr.bf16.mxu1 %v10568_v15  ;;  %v10586_v3 = vld [vmem:[%s11538_s21 + $0x174] ss:$8 sps:$4 sm:$0xff]   ;;  %v8790_v7 = vcombine.high %v11695_v37, %v525_v2  ;;  %v8789_v12 = vcombine.low %v11695_v37, %v525_v2  ;;  %v994_v15 = vsel %vm11627_vm2, %v11718_v6, %v993_v62  ;;  %v1010_v16 = vshrl.u32 %v525_v2, 16  ;;  %v10596_v62 = vld [vmem:[%s11538_s21 + $0x190] ss:$8 sps:$4 sm:$0xff]  }
 0x108   : > { %3699 = vmatprep.subr.bf16.mxu0 %v10571_v18  ;;  %v1013_v17 = vshll.u32 %v525_v2, 16  ;;  %v1019_v18 = vshll.u32 %v8844_v9, 16  ;;  %v11772_v9 = vsel %vm11627_vm2, %v11631_v30, %v619_v53  ;;  %v1115_v11 = vrot.slane %v8858_v59, 5  ;;  %v10603_v30 = vld [vmem:[%s11538_s21 + $0x1a0] ss:$8 sps:$4 sm:$0xff]  }
 0x109   : > { %3379 = vmatmul.mubr.bf16.gmra.mrb[8].mxu1 %v8787_v39  ;;  %v1012_v26 = vrot.slane %v1010_v16, 4  ;;  %v10613_v13 = vld [vmem:[%s11538_s21 + $0x5b0] ss:$8 sps:$4 sm:$0xff]   ;;  %v10619_v20 = vld [vmem:[%s11538_s21 + $0x1c4] ss:$8 sps:$4 sm:$0xff]  }
 0x10a   : > { %3408 = vmatpush1.bf16.msra.mxu1 %v10566_v24  ;;  %3388 = vmatprep.mubr.bf16.mxu1 %v8790_v7  ;;  %v8852_v24 = vcombine.high %v994_v15, %v1008_v19  ;;  %v1015_v27 = vrot.slane %v1013_v17, 5  ;;  %v1021_v39 = vrot.slane %v1019_v18, 5  ;;  %v10608_v7 = vld [vmem:[%s11538_s21 + $0x5a4] ss:$8 sps:$4 sm:$0xff]   ;;  %v10612_v17 = vld [vmem:[%s11538_s21 + $0x1b4] ss:$8 sps:$4 sm:$0xff]  }
 0x10b   : > { %3700 = vmatpush1.bf16.msra.mxu0 %v10569_v25  ;;  %3409 = vmatprep.subr.bf16.mxu1 %v10574_v31  ;;  %v8851_v25 = vcombine.low %v994_v15, %v1008_v19  ;;  %v10595_v31 = vld [vmem:[%s11538_s21 + $0x584] ss:$8 sps:$4 sm:$0xff]   ;;  %v10606_v15 = vld [vmem:[%s11538_s21 + $0x5a0] ss:$8 sps:$4 sm:$0xff]   ;;  %v10615_v18 = vld [vmem:[%s11538_s21 + $0x5b4] ss:$8 sps:$4 sm:$0xff]  }
 0x10c   : > { %3701 = vmatprep.subr.bf16.mxu0 %v10577_v5  ;;  %v10590_v5 = vld [vmem:[%s11538_s21 + $0x180] ss:$8 sps:$4 sm:$0xff]   ;;  %3670 = vmatprep.mubr.bf16.mxu0 %v8852_v24  ;;  %v1016_v37 = vor.u32 %v1015_v27, %v1012_v26  ;;  %v10610_v19 = vld [vmem:[%s11538_s21 + $0x1b0] ss:$8 sps:$4 sm:$0xff]   ;;  %v10626_v24 = vld [vmem:[%s11538_s21 + $0x1d4] ss:$8 sps:$4 sm:$0xff]  }
 0x10d   : > { %3671 = vmatmul.mubr.bf16.gmra.mrb[8].mxu0 %v8851_v25  ;;  %v10629_v25 = vld [vmem:[%s11538_s21 + $0x5d4] ss:$8 sps:$4 sm:$0xff]   ;;  %v10624_v26 = vld [vmem:[%s11538_s21 + $0x1d0] ss:$8 sps:$4 sm:$0xff]   ;;  %v10647_v47 = vld [vmem:[%s11538_s21 + $0x600] ss:$8 sps:$4 sm:$0xff]  }
 0x10e   : > { %3410 = vmatpush1.bf16.msra.mxu1 %v10572_v40  ;;  %v1030_v40 = vor.u32 %v1029_v34, %v1026_v33  ;;  %v11742_v45 = vrot.slane %v1016_v37, 4  ;;  %v10627_v27 = vld [vmem:[%s11538_s21 + $0x5d0] ss:$8 sps:$4 sm:$0xff]   ;;  %v10631_v33 = vld [vmem:[%s11538_s21 + $0x1e0] ss:$8 sps:$4 sm:$0xff]  }
 0x10f   : > { %3702 = vmatpush1.bf16.msra.mxu0 %v10575_v46  ;;  %3411 = vmatprep.subr.bf16.mxu1 %v10580_v51  ;;  %v603_v46 = vshll.u32 %v575_v42, 16  ;;  %v10634_v34 = vld [vmem:[%s11538_s21 + $0x5e0] ss:$8 sps:$4 sm:$0xff]   ;;  %v10638_v37 = vld [vmem:[%s11538_s21 + $0x1f0] ss:$8 sps:$4 sm:$0xff]  }
 0x110   : > { %3703 = vmatprep.subr.bf16.mxu0 %v10583_v56  ;;  %v1031_v50 = vrot.slane %v1030_v40, 4  ;;  %v1022_v51 = vsel %vm11627_vm2, %v11742_v45, %v1021_v39  ;;  %v8856_v56 = vld [vmem:[%s11536_s22 + $0x18] sm:$0x11]  ;;  %v10646_v40 = vld [vmem:[%s11538_s21 + $0x204] ss:$8 sps:$4 sm:$0xff]  }
 0x111   : > { %3389 = vmatmul.mubr.bf16.gmra.mrb[12].mxu1 %v8789_v12  ;;  %v605_v52 = vrot.slane %v603_v46, 5  ;;  %v1111_v61 = vrot.slane %v8856_v56, 5  ;;  %v10641_v39 = vld [vmem:[%s11538_s21 + $0x5f0] ss:$8 sps:$4 sm:$0xff]   ;;  %v579_v42 = vld [vmem:[%s11536_s22 + $0x28] sm:$0x11] }
 0x112   : > { %3412 = vmatpush1.bf16.msra.mxu1 %v10578_v60  ;;  %v1036_v57 = vsel %vm11627_vm2, %v1031_v50, %v1035_v41  ;;  %v8871_v60 = vrot.slane %v8855_v55, 9  ;;  %v10649_v41 = vld [vmem:[%s11538_s21 + $0x604] ss:$8 sps:$4 sm:$0xff]   ;;  %v10644_v46 = vld [vmem:[%s11538_s21 + $0x200] ss:$8 sps:$4 sm:$0xff]  }
 0x113   : > { %3704 = vmatpush1.bf16.msra.mxu0 %v10581_v63  ;;  %3413 = vmatprep.subr.bf16.mxu1 %v10586_v3  ;;  %v10599_v63 = vld [vmem:[%s11538_s21 + $0x590] ss:$8 sps:$4 sm:$0xff]   ;;  %v8854_v0 = vcombine.high %v1022_v51, %v1036_v57  ;;  %v8853_v1 = vcombine.low %v1022_v51, %v1036_v57  ;;  %v11765_v2 = vsel %vm11627_vm2, %v601_v44, %v605_v52  ;;  %v8872_v3 = vrot.slane %v8857_v58, 9  ;;  %v10652_v51 = vld [vmem:[%s11538_s21 + $0x214] ss:$8 sps:$4 sm:$0xff]  }
 0x114   : > { %3705 = vmatprep.subr.bf16.mxu0 %v10589_v4  ;;  %v10605_v4 = vld [vmem:[%s11538_s21 + $0x1a4] ss:$8 sps:$4 sm:$0xff]   ;;  %v11776_v10 = vsel %vm11751_vm5, %v8871_v60, %v1111_v61  ;;  %v8792_v12 = vcombine.high %v11765_v2, %v11772_v9  ;;  %v631_v44 = vshll.u32 %v579_v42, 16  ;;  %v8859_v53 = vld [vmem:[%s11536_s22 + $0x30] sm:$0xee] }
 0x115   : > { %3680 = vmatprep.mubr.bf16.mxu0 %v8854_v0  ;;  %v11782_v14 = vsel %vm11751_vm5, %v8872_v3, %v1115_v11  ;;  %v8860_v55 = vld [vmem:[%s11536_s22 + $0x38] sm:$0x11]  ;;  %v8861_v57 = vld [vmem:[%s11536_s22 + $0x40] sm:$0xee]  ;;  %v8862_v58 = vld [vmem:[%s11536_s22 + $0x48] sm:$0x11] }
 0x116   : > { %3414 = vmatpush1.bf16.msra.mxu1 %v10584_v22  ;;  %3681 = vmatmul.mubr.bf16.gmra.mrb[12].mxu0 %v8853_v1  ;;  %v8880_v16 = vcombine.high %v11776_v10, %v11782_v14  ;;  %v10617_v22 = vld [vmem:[%s11538_s21 + $0x1c0] ss:$8 sps:$4 sm:$0xff]   ;;  %v8879_v50 = vcombine.low %v11776_v10, %v11782_v14  ;;  %v633_v52 = vrot.slane %v631_v44, 5  ;;  %v8873_v59 = vrot.slane %v8859_v53, 9  ;;  %v10655_v60 = vld [vmem:[%s11538_s21 + $0x614] ss:$8 sps:$4 sm:$0xff]  }
 0x117   : > { %3706 = vmatpush1.bf16.msra.mxu0 %v10587_v23  ;;  %3415 = vmatprep.subr.bf16.mxu1 %v10592_v28  ;;  %v10620_v23 = vld [vmem:[%s11538_s21 + $0x5c0] ss:$8 sps:$4 sm:$0xff]   ;;  %v10633_v28 = vld [vmem:[%s11538_s21 + $0x1e4] ss:$8 sps:$4 sm:$0xff]   ;;  %v1123_v0 = vrot.slane %v8862_v58, 5 }
 0x118   : > { %3707 = vmatprep.subr.bf16.mxu0 %v10595_v31  ;;  %3431 = vmatprep.mubr.bf16.mxu1 %v8792_v12  ;;  %v10636_v31 = vld [vmem:[%s11538_s21 + $0x5e4] ss:$8 sps:$4 sm:$0xff]   ;;  %v634_v61 = vsel %vm11627_vm2, %v11640_v38, %v633_v52  ;;  %v10650_v1 = vld [vmem:[%s11538_s21 + $0x210] ss:$8 sps:$4 sm:$0xff]  }
 0x119   : > { %3723 = vmatprep.mubr.bf16.mxu0 %v8880_v16  ;;  %v10653_v3 = vld [vmem:[%s11538_s21 + $0x610] ss:$8 sps:$4 sm:$0xff]   ;;  %v10661_v10 = vld [vmem:[%s11538_s21 + $0x624] ss:$8 sps:$4 sm:$0xff]  }
 0x11a   : > { %3416 = vmatpush1.bf16.msra.mxu1 %v10590_v5  ;;  %v10640_v5 = vld [vmem:[%s11538_s21 + $0x1f4] ss:$8 sps:$4 sm:$0xff]   ;;  %v8870_v58 = vld [vmem:[%s11536_s22 + $0x88] sm:$0x11] }
 0x11b   : > { %3708 = vmatpush1.bf16.msra.mxu0 %v10593_v36  ;;  %3417 = vmatprep.subr.bf16.mxu1 %v10598_v48  ;;  %v10643_v36 = vld [vmem:[%s11538_s21 + $0x5f4] ss:$8 sps:$4 sm:$0xff]   ;;  %v645_v48 = vshll.u32 %v581_v43, 16 }
 0x11c   : > { %3709 = vmatprep.subr.bf16.mxu0 %v10601_v49  ;;  %v8791_v49 = vcombine.low %v11765_v2, %v11772_v9  ;;  %v10658_v9 = vld [vmem:[%s11538_s21 + $0x224] ss:$8 sps:$4 sm:$0xff]   ;;  %v585_v12 = vld [vmem:[%s11536_s22 + $0x58] sm:$0x11]  ;;  %v8867_v53 = vld [vmem:[%s11536_s22 + $0x70] sm:$0xee] }
 0x11d   : > { %v647_v56 = vrot.slane %v645_v48, 5  ;;  %v673_v16 = vshll.u32 %v585_v12, 16  ;;  %v589_v43 = vld [vmem:[%s11536_s22 + $0x78] sm:$0x11] }
 0x11e   : > { %3418 = vmatpush1.bf16.msra.mxu1 %v10596_v62  ;;  %v1119_v62 = vrot.slane %v8860_v55, 5  ;;  %v701_v48 = vshll.u32 %v589_v43, 16  ;;  %v8868_v55 = vld [vmem:[%s11536_s22 + $0x78] sm:$0x11]  ;;  %v10707_v43 = vld [vmem:[%s11538_s21 + $0x6a0] ss:$8 sps:$4 sm:$0xff]  }
 0x11f   : > { %3710 = vmatpush1.bf16.msra.mxu0 %v10599_v63  ;;  %3419 = vmatprep.subr.bf16.mxu1 %v10605_v4  ;;  %v8874_v63 = vrot.slane %v8861_v57, 9  ;;  %v648_v2 = vsel %vm11627_vm2, %v11687_v32, %v647_v56  ;;  %v583_v32 = vld [vmem:[%s11536_s22 + $0x48] sm:$0x11]  ;;  %v8869_v57 = vld [vmem:[%s11536_s22 + $0x80] sm:$0xee] }
 0x120   : > { %3711 = vmatprep.subr.bf16.mxu0 %v10608_v7  ;;  %v8794_v4 = vcombine.high %v634_v61, %v648_v2  ;;  %v1120_v7 = vsel %vm11751_vm5, %v8873_v59, %v1119_v62  ;;  %v659_v14 = vshll.u32 %v583_v32, 16  ;;  %v703_v56 = vrot.slane %v701_v48, 5  ;;  %v747_v32 = vld [vmem:[%s11536_s22 + $0x10] sm:$0xee]  ;;  %v748_v12 = vld [vmem:[%s11536_s22 + $0x18] sm:$0x11] }
 0x121   : > { %v1124_v38 = vsel %vm11751_vm5, %v8874_v63, %v1123_v0  ;;  %v8877_v59 = vrot.slane %v8867_v53, 9  ;;  %v1135_v62 = vrot.slane %v8868_v55, 5  ;;  %v8878_v63 = vrot.slane %v8869_v57, 9  ;;  %v10713_v48 = vld [vmem:[%s11538_s21 + $0x6b0] ss:$8 sps:$4 sm:$0xff]  }
 0x122   : > { %3420 = vmatpush1.bf16.msra.mxu1 %v10603_v30  ;;  %v8882_v11 = vcombine.high %v1120_v7, %v1124_v38  ;;  %v10656_v30 = vld [vmem:[%s11538_s21 + $0x220] ss:$8 sps:$4 sm:$0xff]   ;;  %v1139_v0 = vrot.slane %v8870_v58, 5  ;;  %v10724_v53 = vld [vmem:[%s11538_s21 + $0x2d4] ss:$8 sps:$4 sm:$0xff]  }
 0x123   : > { %3712 = vmatpush1.bf16.msra.mxu0 %v10606_v15  ;;  %3421 = vmatprep.subr.bf16.mxu1 %v10612_v17  ;;  %v10659_v15 = vld [vmem:[%s11538_s21 + $0x620] ss:$8 sps:$4 sm:$0xff]   ;;  %v10664_v17 = vld [vmem:[%s11538_s21 + $0x234] ss:$8 sps:$4 sm:$0xff]   ;;  %v10725_v57 = vld [vmem:[%s11538_s21 + $0x6d0] ss:$8 sps:$4 sm:$0xff]  }
 0x124   : > { %3713 = vmatprep.subr.bf16.mxu0 %v10615_v18  ;;  %v8793_v18 = vcombine.low %v634_v61, %v648_v2  ;;  %v704_v2 = vsel %vm11627_vm2, %v11742_v45, %v703_v56  ;;  %v745_v45 = vld [vmem:[%s11536_s22] sm:$0xee]  ;;  %v10727_v55 = vld [vmem:[%s11538_s21 + $0x6d4] ss:$8 sps:$4 sm:$0xff]   ;;  %v10722_v56 = vld [vmem:[%s11538_s21 + $0x2d0] ss:$8 sps:$4 sm:$0xff]  }
 0x125   : > { %v11939_v58 = vld [vmem:[%s11536_s22 + $0x40] sm:$0xff] }
 0x126   : > { %3422 = vmatpush1.bf16.msra.mxu1 %v10610_v19  ;;  %v8881_v19 = vcombine.low %v1120_v7, %v1124_v38  ;;  %v1136_v7 = vsel %vm11751_vm5, %v8877_v59, %v1135_v62  ;;  %v10682_v38 = vld [vmem:[%s11538_s21 + $0x264] ss:$8 sps:$4 sm:$0xff]   ;;  %v10728_v62 = vld [vmem:[%s11538_s21 + $0x2e0] ss:$8 sps:$4 sm:$0xff]  }
 0x127   : > { %3714 = vmatpush1.bf16.msra.mxu0 %v10613_v13  ;;  %3423 = vmatprep.subr.bf16.mxu1 %v10619_v20  ;;  %v661_v13 = vrot.slane %v659_v14, 5  ;;  %v8863_v20 = vld [vmem:[%s11536_s22 + $0x50] sm:$0xee]  ;;  %v8799_v14 = vrot.slane %v745_v45, 9  ;;  %v10730_v59 = vld [vmem:[%s11538_s21 + $0x2e4] ss:$8 sps:$4 sm:$0xff]  }
 0x128   : > { %3715 = vmatprep.subr.bf16.mxu0 %v10622_v21  ;;  %v8864_v21 = vld [vmem:[%s11536_s22 + $0x58] sm:$0x11] }
 0x12a   : > { %3424 = vmatpush1.bf16.msra.mxu1 %v10617_v22  ;;  %v675_v22 = vrot.slane %v673_v16, 5  ;;  %v786_v16 = vrot.slane %v748_v12, 5 }
 0x12b   : > { %3716 = vmatpush1.bf16.msra.mxu0 %v10620_v23  ;;  %3425 = vmatprep.subr.bf16.mxu1 %v10626_v24  ;;  %v8865_v23 = vld [vmem:[%s11536_s22 + $0x60] sm:$0xee]  ;;  %v8866_v24 = vld [vmem:[%s11536_s22 + $0x68] sm:$0x11] }
 0x12c   : > { %3717 = vmatprep.subr.bf16.mxu0 %v10629_v25  ;;  %v8875_v25 = vrot.slane %v8863_v20, 9  ;;  %v11893_v20 = vld [vmem:[%s11536_s22 + $0x20] sm:$0xff] }
 0x12e   : > { %3426 = vmatpush1.bf16.msra.mxu1 %v10624_v26  ;;  %v10667_v26 = vld [vmem:[%s11538_s21 + $0x634] ss:$8 sps:$4 sm:$0xff]  }
 0x12f   : > { %3718 = vmatpush1.bf16.msra.mxu0 %v10627_v27  ;;  %3427 = vmatprep.subr.bf16.mxu1 %v10633_v28  ;;  %v662_v27 = vsel %vm11627_vm2, %v11691_v35, %v661_v13  ;;  %v1127_v28 = vrot.slane %v8864_v21, 5 }
 0x130   : > { %3719 = vmatprep.subr.bf16.mxu0 %v10636_v31  ;;  %v8876_v31 = vrot.slane %v8865_v23, 9  ;;  %v11904_v23 = vld [vmem:[%s11536_s22 + $0x30] sm:$0xff] }
 0x132   : > { %3428 = vmatpush1.bf16.msra.mxu1 %v10631_v33  ;;  %v1131_v33 = vrot.slane %v8866_v24, 5  ;;  %v10688_v24 = vld [vmem:[%s11538_s21 + $0x274] ss:$8 sps:$4 sm:$0xff]  }
 0x133   : > { %3720 = vmatpush1.bf16.msra.mxu0 %v10634_v34  ;;  %3429 = vmatprep.subr.bf16.mxu1 %v10640_v5  ;;  %v10662_v34 = vld [vmem:[%s11538_s21 + $0x230] ss:$8 sps:$4 sm:$0xff]   ;;  %v676_v5 = vsel %vm11627_vm2, %v11718_v6, %v675_v22  ;;  %v587_v6 = vld [vmem:[%s11536_s22 + $0x68] sm:$0x11] }
 0x134   : > { %3721 = vmatprep.subr.bf16.mxu0 %v10643_v36  ;;  %v10665_v36 = vld [vmem:[%s11538_s21 + $0x630] ss:$8 sps:$4 sm:$0xff]   ;;  %v1132_v35 = vsel %vm11751_vm5, %v8876_v31, %v1131_v33  ;;  %v687_v44 = vshll.u32 %v587_v6, 16  ;;  %v10694_v33 = vld [vmem:[%s11538_s21 + $0x284] ss:$8 sps:$4 sm:$0xff]  }
 0x135   : > { %v10689_v31 = vld [vmem:[%s11538_s21 + $0x670] ss:$8 sps:$4 sm:$0xff]   ;;  %v10704_v6 = vld [vmem:[%s11538_s21 + $0x2a0] ss:$8 sps:$4 sm:$0xff]  }
 0x136   : > { %3430 = vmatpush1.bf16.msra.mxu1 %v10638_v37  ;;  %v8796_v37 = vcombine.high %v662_v27, %v676_v5  ;;  %v689_v52 = vrot.slane %v687_v44, 5  ;;  %v10712_v44 = vld [vmem:[%s11538_s21 + $0x2b4] ss:$8 sps:$4 sm:$0xff]  }
 0x137   : > { %3722 = vmatpush1.bf16.msra.mxu0 %v10641_v39  ;;  %3472 = vmatprep.subr.bf16.mxu1 %v10646_v40  ;;  %v1128_v39 = vsel %vm11751_vm5, %v8875_v25, %v1127_v28  ;;  %v10670_v40 = vld [vmem:[%s11538_s21 + $0x244] ss:$8 sps:$4 sm:$0xff]   ;;  %v10691_v25 = vld [vmem:[%s11538_s21 + $0x674] ss:$8 sps:$4 sm:$0xff]   ;;  %v10686_v28 = vld [vmem:[%s11538_s21 + $0x270] ss:$8 sps:$4 sm:$0xff]  }
 0x138   : > { %3764 = vmatprep.subr.bf16.mxu0 %v10649_v41  ;;  %v10673_v41 = vld [vmem:[%s11538_s21 + $0x644] ss:$8 sps:$4 sm:$0xff]   ;;  %v8884_v42 = vcombine.high %v1128_v39, %v1132_v35  ;;  %v690_v61 = vsel %vm11627_vm2, %v11721_v8, %v689_v52  ;;  %v1140_v8 = vsel %vm11751_vm5, %v8878_v63, %v1139_v0  ;;  %v10719_v52 = vld [vmem:[%s11538_s21 + $0x6c0] ss:$8 sps:$4 sm:$0xff]  }
 0x139   : > { %3432 = vmatmul.mubr.bf16.vlgmr.msra.gmra.mrb[0].mxu1 %v8791_v49  ;;  %v10676_v49 = vld [vmem:[%s11538_s21 + $0x254] ss:$8 sps:$4 sm:$0xff]   ;;  %v8885_v13 = vcombine.low %v1136_v7, %v1140_v8  ;;  %v10731_v63 = vld [vmem:[%s11538_s21 + $0x6e0] ss:$8 sps:$4 sm:$0xff]  }
 0x13a   : > { %3724 = vmatmul.mubr.bf16.vlgmr.msra.gmra.mrb[0].mxu0 %v8879_v50  ;;  %3473 = vmatpush1.bf16.msra.mxu1 %v10644_v46  ;;  %v10668_v46 = vld [vmem:[%s11538_s21 + $0x240] ss:$8 sps:$4 sm:$0xff]   ;;  %v8795_v50 = vcombine.low %v662_v27, %v676_v5  ;;  %v8896_v27 = vcombine.high %v11893_v20, %v11904_v23 }
 0x13b   : > { %3765 = vmatpush1.bf16.msra.mxu0 %v10647_v47  ;;  %3474 = vmatprep.subr.bf16.mxu1 %v10652_v51  ;;  %v10671_v47 = vld [vmem:[%s11538_s21 + $0x640] ss:$8 sps:$4 sm:$0xff]   ;;  %v8883_v51 = vcombine.low %v1128_v39, %v1132_v35  ;;  %v10703_v39 = vld [vmem:[%s11538_s21 + $0x694] ss:$8 sps:$4 sm:$0xff]   ;;  %v10698_v35 = vld [vmem:[%s11538_s21 + $0x290] ss:$8 sps:$4 sm:$0xff]  }
 0x13c   : > { %3766 = vmatprep.subr.bf16.mxu0 %v10655_v60  ;;  %3441 = vmatprep.mubr.bf16.mxu1 %v8794_v4  ;;  %v10679_v60 = vld [vmem:[%s11538_s21 + $0x654] ss:$8 sps:$4 sm:$0xff]   ;;  %v8798_v4 = vcombine.high %v690_v61, %v704_v2  ;;  %v10692_v5 = vld [vmem:[%s11538_s21 + $0x280] ss:$8 sps:$4 sm:$0xff]  }
 0x13d   : > { %3733 = vmatprep.mubr.bf16.mxu0 %v8882_v11  ;;  %v746_v11 = vld [vmem:[%s11536_s22 + $0x8] sm:$0x11]  ;;  %v749_v0 = vld [vmem:[%s11536_s22 + $0x20] sm:$0xee] }
 0x13e   : > { %3475 = vmatpush1.bf16.msra.mxu1 %v10650_v1  ;;  %v10674_v1 = vld [vmem:[%s11538_s21 + $0x250] ss:$8 sps:$4 sm:$0xff]   ;;  %v8801_v45 = vrot.slane %v749_v0, 9 }
 0x13f   : > { %3767 = vmatpush1.bf16.msra.mxu0 %v10653_v3  ;;  %3476 = vmatprep.subr.bf16.mxu1 %v10658_v9  ;;  %v10677_v3 = vld [vmem:[%s11538_s21 + $0x650] ss:$8 sps:$4 sm:$0xff]   ;;  %v10685_v9 = vld [vmem:[%s11538_s21 + $0x664] ss:$8 sps:$4 sm:$0xff]  }
 0x140   : > { %3768 = vmatprep.subr.bf16.mxu0 %v10661_v10  ;;  %v8886_v10 = vcombine.high %v1136_v7, %v1140_v8  ;;  %v10736_v7 = vld [vmem:[%s11538_s21 + $0x2f4] ss:$8 sps:$4 sm:$0xff]  }
 0x141   : > { %3442 = vmatmul.mubr.bf16.gmra.mrb[4].mxu1 %v8793_v18  ;;  %v10683_v18 = vld [vmem:[%s11538_s21 + $0x660] ss:$8 sps:$4 sm:$0xff]   ;;  %v10739_v8 = vld [vmem:[%s11538_s21 + $0x6f4] ss:$8 sps:$4 sm:$0xff]  }
 0x142   : > { %3734 = vmatmul.mubr.bf16.gmra.mrb[4].mxu0 %v8881_v19  ;;  %3477 = vmatpush1.bf16.msra.mxu1 %v10656_v30  ;;  %v782_v30 = vrot.slane %v746_v11, 5  ;;  %v8797_v19 = vcombine.low %v690_v61, %v704_v2  ;;  %v10733_v61 = vld [vmem:[%s11538_s21 + $0x6e4] ss:$8 sps:$4 sm:$0xff]   ;;  %v759_v0 = vld [vmem:[%s11536_s22 + $0x70] sm:$0xee] }
 0x143   : > { %3769 = vmatpush1.bf16.msra.mxu0 %v10659_v15  ;;  %3478 = vmatprep.subr.bf16.mxu1 %v10664_v17  ;;  %v8800_v15 = vrot.slane %v747_v32, 9  ;;  %v10680_v17 = vld [vmem:[%s11538_s21 + $0x260] ss:$8 sps:$4 sm:$0xff]  }
 0x144   : > { %3770 = vmatprep.subr.bf16.mxu0 %v10667_v26  ;;  %3451 = vmatprep.mubr.bf16.mxu1 %v8796_v37  ;;  %v11897_v21 = vsel %vm11751_vm5, %v8799_v14, %v782_v30  ;;  %v10700_v37 = vld [vmem:[%s11538_s21 + $0x294] ss:$8 sps:$4 sm:$0xff]   ;;  %v750_v2 = vld [vmem:[%s11536_s22 + $0x28] sm:$0x11]  ;;  %v11962_v30 = vld [vmem:[%s11536_s22 + $0x60] sm:$0xff] }
 0x145   : > { %3743 = vmatprep.mubr.bf16.mxu0 %v8884_v42  ;;  %v11901_v22 = vsel %vm11751_vm5, %v8800_v15, %v786_v16  ;;  %v10709_v42 = vld [vmem:[%s11538_s21 + $0x6a4] ss:$8 sps:$4 sm:$0xff]   ;;  %v790_v11 = vrot.slane %v750_v2, 5  ;;  %v11959_v14 = vld [vmem:[%s11536_s22 + $0x50] sm:$0xff]  ;;  %v760_v2 = vld [vmem:[%s11536_s22 + $0x78] sm:$0x11] }
 0x146   : > { %3479 = vmatpush1.bf16.msra.mxu1 %v10662_v34  ;;  %v8808_v26 = vcombine.high %v11897_v21, %v11901_v22  ;;  %v10697_v34 = vld [vmem:[%s11538_s21 + $0x684] ss:$8 sps:$4 sm:$0xff]   ;;  %v8828_v16 = vcombine.high %v11959_v14, %v11962_v30 }
 0x147   : > { %3771 = vmatpush1.bf16.msra.mxu0 %v10665_v36  ;;  %3480 = vmatprep.subr.bf16.mxu1 %v10670_v40  ;;  %v10695_v36 = vld [vmem:[%s11538_s21 + $0x680] ss:$8 sps:$4 sm:$0xff]   ;;  %v10701_v40 = vld [vmem:[%s11538_s21 + $0x690] ss:$8 sps:$4 sm:$0xff]   ;;  %v10747_v15 = vld [vmem:[%s11538_s21 + $0x704] ss:$8 sps:$4 sm:$0xff]  }
 0x148   : > { %3772 = vmatprep.subr.bf16.mxu0 %v10673_v41  ;;  %v10706_v41 = vld [vmem:[%s11538_s21 + $0x2a4] ss:$8 sps:$4 sm:$0xff]  }
 0x149   : > { %3452 = vmatmul.mubr.bf16.gmra.mrb[8].mxu1 %v8795_v50  ;;  %v10721_v50 = vld [vmem:[%s11538_s21 + $0x6c4] ss:$8 sps:$4 sm:$0xff]  }
 0x14a   : > { %3744 = vmatmul.mubr.bf16.gmra.mrb[8].mxu0 %v8883_v51  ;;  %3481 = vmatpush1.bf16.msra.mxu1 %v10668_v46  ;;  %v10715_v46 = vld [vmem:[%s11538_s21 + $0x6b4] ss:$8 sps:$4 sm:$0xff]   ;;  %v10716_v51 = vld [vmem:[%s11538_s21 + $0x2c0] ss:$8 sps:$4 sm:$0xff]  }
 0x14b   : > { %3773 = vmatpush1.bf16.msra.mxu0 %v10671_v47  ;;  %3482 = vmatprep.subr.bf16.mxu1 %v10676_v49  ;;  %v10710_v47 = vld [vmem:[%s11538_s21 + $0x2b0] ss:$8 sps:$4 sm:$0xff]   ;;  %v10718_v49 = vld [vmem:[%s11538_s21 + $0x2c4] ss:$8 sps:$4 sm:$0xff]  }
 0x14c   : > { %3774 = vmatprep.subr.bf16.mxu0 %v10679_v60  ;;  %3461 = vmatprep.mubr.bf16.mxu1 %v8798_v4  ;;  %v8826_v60 = vcombine.high %v11904_v23, %v11939_v58  ;;  %v752_v4 = vld [vmem:[%s11536_s22 + $0x38] sm:$0x11] }
 0x14d   : > { %3753 = vmatprep.mubr.bf16.mxu0 %v8886_v10  ;;  %v10742_v10 = vld [vmem:[%s11538_s21 + $0x304] ss:$8 sps:$4 sm:$0xff]   ;;  %v794_v12 = vrot.slane %v752_v4, 5  ;;  %v10765_v4 = vld [vmem:[%s11538_s21 + $0x734] ss:$8 sps:$4 sm:$0xff]  }
 0x14e   : > { %3483 = vmatpush1.bf16.msra.mxu1 %v10674_v1  ;;  %v8825_v1 = vcombine.low %v11904_v23, %v11939_v58 }
 0x14f   : > { %3775 = vmatpush1.bf16.msra.mxu0 %v10677_v3  ;;  %3484 = vmatprep.subr.bf16.mxu1 %v10682_v38  ;;  %v751_v3 = vld [vmem:[%s11536_s22 + $0x30] sm:$0xee] }
 0x150   : > { %3776 = vmatprep.subr.bf16.mxu0 %v10685_v9  ;;  %v10734_v38 = vld [vmem:[%s11538_s21 + $0x2f0] ss:$8 sps:$4 sm:$0xff]   ;;  %v8802_v32 = vrot.slane %v751_v3, 9  ;;  %v10762_v3 = vld [vmem:[%s11538_s21 + $0x334] ss:$8 sps:$4 sm:$0xff]  }
 0x151   : > { %3462 = vmatmul.mubr.bf16.gmra.mrb[12].mxu1 %v8797_v19  ;;  %v10737_v9 = vld [vmem:[%s11538_s21 + $0x6f0] ss:$8 sps:$4 sm:$0xff]   ;;  %v10745_v19 = vld [vmem:[%s11538_s21 + $0x700] ss:$8 sps:$4 sm:$0xff]  }
 0x152   : > { %3754 = vmatmul.mubr.bf16.gmra.mrb[12].mxu0 %v8885_v13  ;;  %3485 = vmatpush1.bf16.msra.mxu1 %v10680_v17  ;;  %v8807_v17 = vcombine.low %v11897_v21, %v11901_v22  ;;  %v8895_v13 = vcombine.low %v11893_v20, %v11904_v23  ;;  %v8827_v21 = vcombine.low %v11959_v14, %v11962_v30  ;;  %v755_v22 = vld [vmem:[%s11536_s22 + $0x50] sm:$0xee] }
 0x153   : > { %3777 = vmatpush1.bf16.msra.mxu0 %v10683_v18  ;;  %3486 = vmatprep.subr.bf16.mxu1 %v10688_v24  ;;  %v10740_v18 = vld [vmem:[%s11538_s21 + $0x300] ss:$8 sps:$4 sm:$0xff]   ;;  %v11975_v24 = vsel %vm11751_vm5, %v8801_v45, %v790_v11 }
 0x154   : > { %3778 = vmatprep.subr.bf16.mxu0 %v10691_v25  ;;  %3504 = vmatprep.mubr.bf16.mxu1 %v8808_v26  ;;  %v795_v25 = vsel %vm11751_vm5, %v8802_v32, %v794_v12  ;;  %v753_v26 = vld [vmem:[%s11536_s22 + $0x40] sm:$0xee] }
 0x155   : > { %3796 = vmatprep.mubr.bf16.mxu0 %v8896_v27  ;;  %v754_v27 = vld [vmem:[%s11536_s22 + $0x48] sm:$0x11] }
 0x156   : > { %3487 = vmatpush1.bf16.msra.mxu1 %v10686_v28  ;;  %v756_v28 = vld [vmem:[%s11536_s22 + $0x58] sm:$0x11] }
 0x157   : > { %3779 = vmatpush1.bf16.msra.mxu0 %v10689_v31  ;;  %3488 = vmatprep.subr.bf16.mxu1 %v10694_v33  ;;  %v10750_v31 = vld [vmem:[%s11538_s21 + $0x314] ss:$8 sps:$4 sm:$0xff]  }
 0x158   : > { %3780 = vmatprep.subr.bf16.mxu0 %v10697_v34  ;;  %v10753_v33 = vld [vmem:[%s11538_s21 + $0x714] ss:$8 sps:$4 sm:$0xff]   ;;  %v8810_v34 = vcombine.high %v11975_v24, %v795_v25 }
 0x15a   : > { %3489 = vmatpush1.bf16.msra.mxu1 %v10692_v5  ;;  %v8898_v5 = vcombine.high %v11939_v58, %v11959_v14 }
 0x15b   : > { %3781 = vmatpush1.bf16.msra.mxu0 %v10695_v36  ;;  %3490 = vmatprep.subr.bf16.mxu1 %v10700_v37  ;;  %v8803_v36 = vrot.slane %v753_v26, 9  ;;  %v11991_v37 = vld [vmem:[%s11536_s22 + $0x70] sm:$0xff] }
 0x15c   : > { %3782 = vmatprep.subr.bf16.mxu0 %v10703_v39  ;;  %v11994_v39 = vld [vmem:[%s11536_s22 + $0x80] sm:$0xff] }
 0x15e   : > { %3491 = vmatpush1.bf16.msra.mxu1 %v10698_v35  ;;  %v1255_v35 = vshrl.u32 %v11893_v20, 16 }
 0x15f   : > { %3783 = vmatpush1.bf16.msra.mxu0 %v10701_v40  ;;  %3492 = vmatprep.subr.bf16.mxu1 %v10706_v41  ;;  %v798_v40 = vrot.slane %v754_v27, 5  ;;  %v8804_v41 = vrot.slane %v755_v22, 9  ;;  %v8899_v27 = vcombine.low %v11962_v30, %v11991_v37 }
 0x160   : > { %3784 = vmatprep.subr.bf16.mxu0 %v10709_v42  ;;  %v802_v42 = vrot.slane %v756_v28, 5  ;;  %v10766_v28 = vld [vmem:[%s11538_s21 + $0x340] ss:$8 sps:$4 sm:$0xff]  }
 0x162   : > { %3493 = vmatpush1.bf16.msra.mxu1 %v10704_v6  ;;  %v8830_v6 = vcombine.high %v11991_v37, %v11994_v39 }
 0x163   : > { %3785 = vmatpush1.bf16.msra.mxu0 %v10707_v43  ;;  %3494 = vmatprep.subr.bf16.mxu1 %v10712_v44  ;;  %v10748_v43 = vld [vmem:[%s11538_s21 + $0x310] ss:$8 sps:$4 sm:$0xff]  }
 0x164   : > { %3786 = vmatprep.subr.bf16.mxu0 %v10715_v46  ;;  %v10751_v44 = vld [vmem:[%s11538_s21 + $0x710] ss:$8 sps:$4 sm:$0xff]   ;;  %v1258_v46 = vshll.u32 %v11893_v20, 16 }
 0x166   : > { %3495 = vmatpush1.bf16.msra.mxu1 %v10710_v47  ;;  %v10756_v47 = vld [vmem:[%s11538_s21 + $0x324] ss:$8 sps:$4 sm:$0xff]  }
 0x167   : > { %3787 = vmatpush1.bf16.msra.mxu0 %v10713_v48  ;;  %3496 = vmatprep.subr.bf16.mxu1 %v10718_v49  ;;  %v10759_v48 = vld [vmem:[%s11538_s21 + $0x724] ss:$8 sps:$4 sm:$0xff]   ;;  %v1269_v49 = vshrl.u32 %v11904_v23, 16 }
 0x168   : > { %3788 = vmatprep.subr.bf16.mxu0 %v10721_v50  ;;  %v8829_v50 = vcombine.low %v11991_v37, %v11994_v39 }
 0x169   : > { %v1271_v45 = vrot.slane %v1269_v49, 4 }
 0x16a   : > { %3497 = vmatpush1.bf16.msra.mxu1 %v10716_v51  ;;  %v10754_v51 = vld [vmem:[%s11538_s21 + $0x320] ss:$8 sps:$4 sm:$0xff]  }
 0x16b   : > { %3789 = vmatpush1.bf16.msra.mxu0 %v10719_v52  ;;  %3498 = vmatprep.subr.bf16.mxu1 %v10724_v53  ;;  %v10757_v52 = vld [vmem:[%s11538_s21 + $0x720] ss:$8 sps:$4 sm:$0xff]   ;;  %v1257_v53 = vrot.slane %v1255_v35, 4 }
 0x16c   : > { %3790 = vmatprep.subr.bf16.mxu0 %v10727_v55  ;;  %v1272_v55 = vshll.u32 %v11904_v23, 16  ;;  %v10769_v35 = vld [vmem:[%s11538_s21 + $0x740] ss:$8 sps:$4 sm:$0xff]  }
 0x16d   : > { %v10862_v23 = vld [vmem:[%s11538_s21 + $0x840] ss:$8 sps:$4 sm:$0xff]  }
 0x16e   : > { %3499 = vmatpush1.bf16.msra.mxu1 %v10722_v56  ;;  %v8809_v56 = vcombine.low %v11975_v24, %v795_v25  ;;  %v1274_v11 = vrot.slane %v1272_v55, 5  ;;  %v10771_v24 = vld [vmem:[%s11538_s21 + $0x744] ss:$8 sps:$4 sm:$0xff]   ;;  %v10778_v55 = vld [vmem:[%s11538_s21 + $0x360] ss:$8 sps:$4 sm:$0xff]  }
 0x16f   : > { %3791 = vmatpush1.bf16.msra.mxu0 %v10725_v57  ;;  %3500 = vmatprep.subr.bf16.mxu1 %v10730_v59  ;;  %v8897_v57 = vcombine.low %v11939_v58, %v11959_v14  ;;  %v799_v59 = vsel %vm11751_vm5, %v8803_v36, %v798_v40  ;;  %v10774_v40 = vld [vmem:[%s11538_s21 + $0x354] ss:$8 sps:$4 sm:$0xff]  }
 0x170   : > { %3792 = vmatprep.subr.bf16.mxu0 %v10733_v61  ;;  %v803_v61 = vsel %vm11751_vm5, %v8804_v41, %v802_v42  ;;  %v1275_v22 = vor.u32 %v1274_v11, %v1271_v45  ;;  %v10777_v41 = vld [vmem:[%s11538_s21 + $0x754] ss:$8 sps:$4 sm:$0xff]   ;;  %v10793_v45 = vld [vmem:[%s11538_s21 + $0x780] ss:$8 sps:$4 sm:$0xff]  }
 0x171   : > { %v8811_v26 = vcombine.low %v799_v59, %v803_v61  ;;  %v10798_v11 = vld [vmem:[%s11538_s21 + $0x394] ss:$8 sps:$4 sm:$0xff]  }
 0x172   : > { %3501 = vmatpush1.bf16.msra.mxu1 %v10728_v62  ;;  %v757_v62 = vld [vmem:[%s11536_s22 + $0x60] sm:$0xee] }
 0x173   : > { %3793 = vmatpush1.bf16.msra.mxu0 %v10731_v63  ;;  %3502 = vmatprep.subr.bf16.mxu1 %v10736_v7  ;;  %v758_v63 = vld [vmem:[%s11536_s22 + $0x68] sm:$0x11]  ;;  %v1260_v7 = vrot.slane %v1258_v46, 5  ;;  %v8805_v32 = vrot.slane %v757_v62, 9 }
 0x174   : > { %3794 = vmatprep.subr.bf16.mxu0 %v10739_v8  ;;  %v10760_v8 = vld [vmem:[%s11538_s21 + $0x330] ss:$8 sps:$4 sm:$0xff]   ;;  %v806_v12 = vrot.slane %v758_v63, 5  ;;  %v10781_v63 = vld [vmem:[%s11538_s21 + $0x760] ss:$8 sps:$4 sm:$0xff]  }
 0x175   : > { %v1261_v25 = vor.u32 %v1260_v7, %v1257_v53  ;;  %v10783_v53 = vld [vmem:[%s11538_s21 + $0x764] ss:$8 sps:$4 sm:$0xff]   ;;  %v10784_v7 = vld [vmem:[%s11538_s21 + $0x370] ss:$8 sps:$4 sm:$0xff]  }
 0x176   : > { %3503 = vmatpush1.bf16.msra.mxu1 %v10734_v38  ;;  %v10763_v38 = vld [vmem:[%s11538_s21 + $0x730] ss:$8 sps:$4 sm:$0xff]  }
 0x177   : > { %3795 = vmatpush1.bf16.msra.mxu0 %v10737_v9  ;;  %3545 = vmatprep.subr.bf16.mxu1 %v10742_v10  ;;  %v8812_v9 = vcombine.high %v799_v59, %v803_v61  ;;  %v8900_v10 = vcombine.high %v11962_v30, %v11991_v37  ;;  %v1262_v46 = vrot.slane %v1261_v25, 4  ;;  %v12054_v59 = vld [vmem:[%s11536_s22 + $0x10] sm:$0xff] }
 0x178   : > { %3837 = vmatprep.subr.bf16.mxu0 %v10747_v15  ;;  %v8806_v15 = vrot.slane %v759_v0, 9  ;;  %v10786_v0 = vld [vmem:[%s11538_s21 + $0x374] ss:$8 sps:$4 sm:$0xff]  }
 0x179   : > { %3505 = vmatmul.mubr.bf16.vlgmr.msra.gmra.mrb[0].mxu1 %v8807_v17  ;;  %v810_v17 = vrot.slane %v760_v2, 5  ;;  %v10789_v2 = vld [vmem:[%s11538_s21 + $0x774] ss:$8 sps:$4 sm:$0xff]  }
 0x17a   : > { %3797 = vmatmul.mubr.bf16.vlgmr.msra.gmra.mrb[0].mxu0 %v8895_v13  ;;  %3546 = vmatpush1.bf16.msra.mxu1 %v10740_v18  ;;  %v10768_v18 = vld [vmem:[%s11538_s21 + $0x344] ss:$8 sps:$4 sm:$0xff]   ;;  %v8906_v13 = vld [vmem:[%s11536_s22 + $0x38] sm:$0x11] }
 0x17b   : > { %3838 = vmatpush1.bf16.msra.mxu0 %v10745_v19  ;;  %3547 = vmatprep.subr.bf16.mxu1 %v10750_v31  ;;  %v8904_v19 = vld [vmem:[%s11536_s22 + $0x28] sm:$0x11]  ;;  %v807_v31 = vsel %vm11751_vm5, %v8805_v32, %v806_v12  ;;  %v1278_v36 = vshll.u32 %v8906_v13, 16  ;;  %v10801_v32 = vld [vmem:[%s11538_s21 + $0x794] ss:$8 sps:$4 sm:$0xff]  }
 0x17c   : > { %3839 = vmatprep.subr.bf16.mxu0 %v10753_v33  ;;  %3514 = vmatprep.mubr.bf16.mxu1 %v8810_v34  ;;  %v811_v33 = vsel %vm11751_vm5, %v8806_v15, %v810_v17  ;;  %v12039_v34 = vld [vmem:[%s11536_s22 + $0x90] sm:$0xff]  ;;  %v10805_v17 = vld [vmem:[%s11538_s21 + $0x3a4] ss:$8 sps:$4 sm:$0xff]   ;;  %v10807_v13 = vld [vmem:[%s11538_s21 + $0x7a0] ss:$8 sps:$4 sm:$0xff]  }
 0x17d   : > { %3806 = vmatprep.mubr.bf16.mxu0 %v8898_v5  ;;  %v1264_v5 = vshll.u32 %v8904_v19, 16  ;;  %v8814_v42 = vcombine.high %v807_v31, %v811_v33  ;;  %v1280_v49 = vrot.slane %v1278_v36, 5  ;;  %v10796_v12 = vld [vmem:[%s11538_s21 + $0x390] ss:$8 sps:$4 sm:$0xff]   ;;  %v10803_v19 = vld [vmem:[%s11538_s21 + $0x3a0] ss:$8 sps:$4 sm:$0xff]  }
 0x17e   : > { %3548 = vmatpush1.bf16.msra.mxu1 %v10748_v43  ;;  %v8902_v43 = vcombine.high %v11994_v39, %v12039_v34  ;;  %v10799_v15 = vld [vmem:[%s11538_s21 + $0x790] ss:$8 sps:$4 sm:$0xff]   ;;  %v10815_v25 = vld [vmem:[%s11538_s21 + $0x7b4] ss:$8 sps:$4 sm:$0xff]   ;;  %v1300_v36 = vshll.u32 %v11959_v14, 16 }
 0x17f   : > { %3840 = vmatpush1.bf16.msra.mxu0 %v10751_v44  ;;  %3549 = vmatprep.subr.bf16.mxu1 %v10756_v47  ;;  %v10772_v44 = vld [vmem:[%s11538_s21 + $0x350] ss:$8 sps:$4 sm:$0xff]   ;;  %v1266_v47 = vrot.slane %v1264_v5, 5  ;;  %v1297_v5 = vshrl.u32 %v11959_v14, 16 }
 0x180   : > { %3841 = vmatprep.subr.bf16.mxu0 %v10759_v48  ;;  %v1276_v48 = vrot.slane %v1275_v22, 4  ;;  %v10819_v22 = vld [vmem:[%s11538_s21 + $0x3c4] ss:$8 sps:$4 sm:$0xff]  }
 0x181   : > { %3515 = vmatmul.mubr.bf16.gmra.mrb[4].mxu1 %v8809_v56  ;;  %v8813_v56 = vcombine.low %v807_v31, %v811_v33  ;;  %v12058_v61 = vsel %vm11627_vm2, %v1262_v46, %v1266_v47  ;;  %v1283_v31 = vshrl.u32 %v11939_v58, 16  ;;  %v1286_v33 = vshll.u32 %v11939_v58, 16  ;;  %v10824_v46 = vld [vmem:[%s11538_s21 + $0x3d0] ss:$8 sps:$4 sm:$0xff]  }
 0x182   : > { %3807 = vmatmul.mubr.bf16.gmra.mrb[4].mxu0 %v8897_v57  ;;  %3550 = vmatpush1.bf16.msra.mxu1 %v10754_v51  ;;  %v10775_v51 = vld [vmem:[%s11538_s21 + $0x750] ss:$8 sps:$4 sm:$0xff]   ;;  %v8901_v57 = vcombine.low %v11994_v39, %v12039_v34  ;;  %v12062_v62 = vsel %vm11627_vm2, %v1276_v48, %v1280_v49  ;;  %v1299_v47 = vrot.slane %v1297_v5, 4  ;;  %v1302_v48 = vrot.slane %v1300_v36, 5 }
 0x183   : > { %3842 = vmatpush1.bf16.msra.mxu0 %v10757_v52  ;;  %3551 = vmatprep.subr.bf16.mxu1 %v10762_v3  ;;  %v10780_v52 = vld [vmem:[%s11538_s21 + $0x364] ss:$8 sps:$4 sm:$0xff]   ;;  %v8824_v3 = vcombine.high %v12054_v59, %v11893_v20  ;;  %v1311_v49 = vshrl.u32 %v11962_v30, 16  ;;  %v8823_v5 = vcombine.low %v12054_v59, %v11893_v20  ;;  %v8919_v36 = vcombine.low %v12058_v61, %v12062_v62  ;;  %v10851_v20 = vld [vmem:[%s11538_s21 + $0x814] ss:$8 sps:$4 sm:$0xff]  }
 0x184   : > { %3843 = vmatprep.subr.bf16.mxu0 %v10765_v4  ;;  %3524 = vmatprep.mubr.bf16.mxu1 %v8812_v9  ;;  %v8920_v4 = vcombine.high %v12058_v61, %v12062_v62  ;;  %v10795_v9 = vld [vmem:[%s11538_s21 + $0x784] ss:$8 sps:$4 sm:$0xff]  }
 0x185   : > { %3816 = vmatprep.mubr.bf16.mxu0 %v8900_v10  ;;  %v10790_v10 = vld [vmem:[%s11538_s21 + $0x380] ss:$8 sps:$4 sm:$0xff]  }
 0x186   : > { %3552 = vmatpush1.bf16.msra.mxu1 %v10760_v8  ;;  %v10787_v8 = vld [vmem:[%s11538_s21 + $0x770] ss:$8 sps:$4 sm:$0xff]  }
 0x187   : > { %3844 = vmatpush1.bf16.msra.mxu0 %v10763_v38  ;;  %3553 = vmatprep.subr.bf16.mxu1 %v10768_v18  ;;  %v10792_v38 = vld [vmem:[%s11538_s21 + $0x384] ss:$8 sps:$4 sm:$0xff]  }
 0x188   : > { %3845 = vmatprep.subr.bf16.mxu0 %v10771_v24  ;;  %v10809_v18 = vld [vmem:[%s11538_s21 + $0x7a4] ss:$8 sps:$4 sm:$0xff]   ;;  %v10812_v24 = vld [vmem:[%s11538_s21 + $0x3b4] ss:$8 sps:$4 sm:$0xff]  }
 0x189   : > { %3525 = vmatmul.mubr.bf16.gmra.mrb[8].mxu1 %v8811_v26  ;;  %v10810_v26 = vld [vmem:[%s11538_s21 + $0x3b0] ss:$8 sps:$4 sm:$0xff]  }
 0x18a   : > { %3817 = vmatmul.mubr.bf16.gmra.mrb[8].mxu0 %v8899_v27  ;;  %3554 = vmatpush1.bf16.msra.mxu1 %v10766_v28  ;;  %v10813_v27 = vld [vmem:[%s11538_s21 + $0x7b0] ss:$8 sps:$4 sm:$0xff]   ;;  %v10823_v28 = vld [vmem:[%s11538_s21 + $0x7c4] ss:$8 sps:$4 sm:$0xff]  }
 0x18b   : > { %3846 = vmatpush1.bf16.msra.mxu0 %v10769_v35  ;;  %3555 = vmatprep.subr.bf16.mxu1 %v10774_v40  ;;  %v10817_v35 = vld [vmem:[%s11538_s21 + $0x3c0] ss:$8 sps:$4 sm:$0xff]  }
 0x18c   : > { %3847 = vmatprep.subr.bf16.mxu0 %v10777_v41  ;;  %3534 = vmatprep.mubr.bf16.mxu1 %v8814_v42  ;;  %v10821_v40 = vld [vmem:[%s11538_s21 + $0x7c0] ss:$8 sps:$4 sm:$0xff]   ;;  %v10826_v41 = vld [vmem:[%s11538_s21 + $0x3d4] ss:$8 sps:$4 sm:$0xff]  }
 0x18d   : > { %3826 = vmatprep.mubr.bf16.mxu0 %v8902_v43  ;;  %v10829_v42 = vld [vmem:[%s11538_s21 + $0x7d4] ss:$8 sps:$4 sm:$0xff]   ;;  %v1285_v43 = vrot.slane %v1283_v31, 4  ;;  %v1339_v31 = vshrl.u32 %v11994_v39, 16 }
 0x18e   : > { %3556 = vmatpush1.bf16.msra.mxu1 %v10772_v44  ;;  %v1288_v44 = vrot.slane %v1286_v33, 5  ;;  %v1342_v33 = vshll.u32 %v11994_v39, 16  ;;  %v10879_v39 = vld [vmem:[%s11538_s21 + $0x890] ss:$8 sps:$4 sm:$0xff]  }
 0x18f   : > { %3848 = vmatpush1.bf16.msra.mxu0 %v10775_v51  ;;  %3557 = vmatprep.subr.bf16.mxu1 %v10780_v52  ;;  %v1314_v51 = vshll.u32 %v11962_v30, 16  ;;  %v10827_v52 = vld [vmem:[%s11538_s21 + $0x7d0] ss:$8 sps:$4 sm:$0xff]   ;;  %v1341_v61 = vrot.slane %v1339_v31, 4 }
 0x190   : > { %3849 = vmatprep.subr.bf16.mxu0 %v10783_v53  ;;  %v8908_v53 = vld [vmem:[%s11536_s22 + $0x48] sm:$0x11] }
 0x191   : > { %3535 = vmatmul.mubr.bf16.gmra.mrb[12].mxu1 %v8813_v56  ;;  %v10833_v56 = vld [vmem:[%s11538_s21 + $0x3e4] ss:$8 sps:$4 sm:$0xff]  }
 0x192   : > { %3827 = vmatmul.mubr.bf16.gmra.mrb[12].mxu0 %v8901_v57  ;;  %3558 = vmatpush1.bf16.msra.mxu1 %v10778_v55  ;;  %v8910_v55 = vld [vmem:[%s11536_s22 + $0x58] sm:$0x11]  ;;  %v10837_v57 = vld [vmem:[%s11538_s21 + $0x7e4] ss:$8 sps:$4 sm:$0xff]  }
 0x193   : > { %3850 = vmatpush1.bf16.msra.mxu0 %v10781_v63  ;;  %3559 = vmatprep.subr.bf16.mxu1 %v10786_v0  ;;  %v1325_v63 = vshrl.u32 %v11991_v37, 16  ;;  %v1328_v0 = vshll.u32 %v11991_v37, 16  ;;  %v10881_v37 = vld [vmem:[%s11538_s21 + $0x894] ss:$8 sps:$4 sm:$0xff]  }
 0x194   : > { %3851 = vmatprep.subr.bf16.mxu0 %v10789_v2  ;;  %3577 = vmatprep.mubr.bf16.mxu1 %v8824_v3  ;;  %v1289_v2 = vor.u32 %v1288_v44, %v1285_v43  ;;  %v1292_v3 = vshll.u32 %v8908_v53, 16  ;;  %v8916_v53 = vld [vmem:[%s11536_s22 + $0x88] sm:$0x11] }
 0x195   : > { %3869 = vmatprep.mubr.bf16.mxu0 %v8920_v4  ;;  %v1303_v4 = vor.u32 %v1302_v48, %v1299_v47 }
 0x196   : > { %3560 = vmatpush1.bf16.msra.mxu1 %v10784_v7  ;;  %v1306_v7 = vshll.u32 %v8910_v55, 16  ;;  %v8918_v55 = vld [vmem:[%s11536_s22 + $0x98] sm:$0x11] }
 0x197   : > { %3852 = vmatpush1.bf16.msra.mxu0 %v10787_v8  ;;  %3561 = vmatprep.subr.bf16.mxu1 %v10792_v38  ;;  %v10831_v8 = vld [vmem:[%s11538_s21 + $0x3e0] ss:$8 sps:$4 sm:$0xff]  }
 0x198   : > { %3853 = vmatprep.subr.bf16.mxu0 %v10795_v9  ;;  %v10835_v38 = vld [vmem:[%s11538_s21 + $0x7e0] ss:$8 sps:$4 sm:$0xff]   ;;  %v1313_v9 = vrot.slane %v1311_v49, 4 }
 0x19a   : > { %3562 = vmatpush1.bf16.msra.mxu1 %v10790_v10  ;;  %v1316_v10 = vrot.slane %v1314_v51, 5 }
 0x19b   : > { %3854 = vmatpush1.bf16.msra.mxu0 %v10793_v45  ;;  %3563 = vmatprep.subr.bf16.mxu1 %v10798_v11  ;;  %v10840_v45 = vld [vmem:[%s11538_s21 + $0x3f4] ss:$8 sps:$4 sm:$0xff]  }
 0x19c   : > { %3855 = vmatprep.subr.bf16.mxu0 %v10801_v32  ;;  %v10843_v11 = vld [vmem:[%s11538_s21 + $0x7f4] ss:$8 sps:$4 sm:$0xff]   ;;  %v1327_v32 = vrot.slane %v1325_v63, 4 }
 0x19e   : > { %3564 = vmatpush1.bf16.msra.mxu1 %v10796_v12  ;;  %v1330_v12 = vrot.slane %v1328_v0, 5  ;;  %v1348_v0 = vshll.u32 %v8916_v53, 16  ;;  %v10890_v53 = vld [vmem:[%s11538_s21 + $0x8c4] ss:$8 sps:$4 sm:$0xff]  }
 0x19f   : > { %3856 = vmatpush1.bf16.msra.mxu0 %v10799_v15  ;;  %3565 = vmatprep.subr.bf16.mxu1 %v10805_v17  ;;  %v10838_v15 = vld [vmem:[%s11538_s21 + $0x3f0] ss:$8 sps:$4 sm:$0xff]   ;;  %v1290_v17 = vrot.slane %v1289_v2, 4 }
 0x1a0   : > { %3857 = vmatprep.subr.bf16.mxu0 %v10809_v18  ;;  %v1294_v18 = vrot.slane %v1292_v3, 5  ;;  %v1362_v3 = vshll.u32 %v8918_v55, 16  ;;  %v10888_v55 = vld [vmem:[%s11538_s21 + $0x8c0] ss:$8 sps:$4 sm:$0xff]  }
 0x1a2   : > { %3566 = vmatpush1.bf16.msra.mxu1 %v10803_v19  ;;  %v1304_v19 = vrot.slane %v1303_v4, 4 }
 0x1a3   : > { %3858 = vmatpush1.bf16.msra.mxu0 %v10807_v13  ;;  %3567 = vmatprep.subr.bf16.mxu1 %v10812_v24  ;;  %v1308_v13 = vrot.slane %v1306_v7, 5  ;;  %v10841_v24 = vld [vmem:[%s11538_s21 + $0x7f0] ss:$8 sps:$4 sm:$0xff]  }
 0x1a4   : > { %3859 = vmatprep.subr.bf16.mxu0 %v10815_v25  ;;  %v8912_v25 = vld [vmem:[%s11536_s22 + $0x68] sm:$0x11] }
 0x1a5   : > { %v1320_v43 = vshll.u32 %v8912_v25, 16  ;;  %v8935_v25 = vld [vmem:[%s11536_s22 + $0x60] sm:$0xee] }
 0x1a6   : > { %3568 = vmatpush1.bf16.msra.mxu1 %v10810_v26  ;;  %v8914_v26 = vld [vmem:[%s11536_s22 + $0x78] sm:$0x11] }
 0x1a7   : > { %3860 = vmatpush1.bf16.msra.mxu0 %v10813_v27  ;;  %3569 = vmatprep.subr.bf16.mxu1 %v10819_v22  ;;  %v10848_v27 = vld [vmem:[%s11538_s21 + $0x804] ss:$8 sps:$4 sm:$0xff]   ;;  %v1317_v22 = vor.u32 %v1316_v10, %v1313_v9  ;;  %v1334_v44 = vshll.u32 %v8914_v26, 16  ;;  %v1322_v51 = vrot.slane %v1320_v43, 5  ;;  %v10859_v9 = vld [vmem:[%s11538_s21 + $0x834] ss:$8 sps:$4 sm:$0xff]  }
 0x1a8   : > { %3861 = vmatprep.subr.bf16.mxu0 %v10823_v28  ;;  %v1331_v28 = vor.u32 %v1330_v12, %v1327_v32  ;;  %v1364_v32 = vrot.slane %v1362_v3, 5  ;;  %v10857_v12 = vld [vmem:[%s11538_s21 + $0x830] ss:$8 sps:$4 sm:$0xff]   ;;  %v8936_v26 = vld [vmem:[%s11536_s22 + $0x68] sm:$0x11] }
 0x1a9   : > { %v1318_v59 = vrot.slane %v1317_v22, 4  ;;  %v10867_v22 = vld [vmem:[%s11538_s21 + $0x854] ss:$8 sps:$4 sm:$0xff]   ;;  %v10865_v43 = vld [vmem:[%s11538_s21 + $0x850] ss:$8 sps:$4 sm:$0xff]  }
 0x1aa   : > { %3570 = vmatpush1.bf16.msra.mxu1 %v10817_v35  ;;  %v1353_v35 = vshrl.u32 %v12039_v34, 16  ;;  %v1332_v47 = vrot.slane %v1331_v28, 4  ;;  %v8933_v3 = vld [vmem:[%s11536_s22 + $0x50] sm:$0xee] }
 0x1ab   : > { %3862 = vmatpush1.bf16.msra.mxu0 %v10821_v40  ;;  %3571 = vmatprep.subr.bf16.mxu1 %v10826_v41  ;;  %v1356_v40 = vshll.u32 %v12039_v34, 16  ;;  %v1295_v41 = vsel %vm11627_vm2, %v1290_v17, %v1294_v18  ;;  %v1344_v34 = vrot.slane %v1342_v33, 5  ;;  %v1323_v7 = vsel %vm11627_vm2, %v1318_v59, %v1322_v51  ;;  %v8927_v17 = vld [vmem:[%s11536_s22 + $0x20] sm:$0xee]  ;;  %v8928_v18 = vld [vmem:[%s11536_s22 + $0x28] sm:$0x11] }
 0x1ac   : > { %3863 = vmatprep.subr.bf16.mxu0 %v10829_v42  ;;  %v1309_v42 = vsel %vm11627_vm2, %v1304_v19, %v1308_v13  ;;  %v1355_v48 = vrot.slane %v1353_v35, 4  ;;  %v8929_v13 = vld [vmem:[%s11536_s22 + $0x30] sm:$0xee]  ;;  %v8943_v31 = vrot.slane %v8927_v17, 9  ;;  %v1440_v33 = vrot.slane %v8928_v18, 5 }
 0x1ad   : > { %v8922_v62 = vcombine.high %v1295_v41, %v1309_v42  ;;  %v1358_v49 = vrot.slane %v1356_v40, 5  ;;  %v1345_v63 = vor.u32 %v1344_v34, %v1341_v61  ;;  %v8921_v4 = vcombine.low %v1295_v41, %v1309_v42  ;;  %v10875_v59 = vld [vmem:[%s11538_s21 + $0x874] ss:$8 sps:$4 sm:$0xff]   ;;  %v10897_v17 = vld [vmem:[%s11538_s21 + $0x8f0] ss:$8 sps:$4 sm:$0xff]  }
 0x1ae   : > { %3572 = vmatpush1.bf16.msra.mxu1 %v10824_v46  ;;  %v10846_v46 = vld [vmem:[%s11538_s21 + $0x800] ss:$8 sps:$4 sm:$0xff]   ;;  %v8947_v35 = vrot.slane %v8935_v25, 9  ;;  %v1456_v40 = vrot.slane %v8936_v26, 5  ;;  %v12177_v30 = vsel %vm11751_vm5, %v8943_v31, %v1440_v33  ;;  %v10887_v51 = vld [vmem:[%s11538_s21 + $0x8b4] ss:$8 sps:$4 sm:$0xff]  }
 0x1af   : > { %3864 = vmatpush1.bf16.msra.mxu0 %v10827_v52  ;;  %3573 = vmatprep.subr.bf16.mxu1 %v10833_v56  ;;  %v1336_v52 = vrot.slane %v1334_v44, 5  ;;  %v10849_v56 = vld [vmem:[%s11538_s21 + $0x810] ss:$8 sps:$4 sm:$0xff]   ;;  %v1359_v2 = vor.u32 %v1358_v49, %v1355_v48  ;;  %v10872_v44 = vld [vmem:[%s11538_s21 + $0x864] ss:$8 sps:$4 sm:$0xff]  }
 0x1b0   : > { %3865 = vmatprep.subr.bf16.mxu0 %v10837_v57  ;;  %v10856_v57 = vld [vmem:[%s11538_s21 + $0x824] ss:$8 sps:$4 sm:$0xff]   ;;  %v10876_v48 = vld [vmem:[%s11538_s21 + $0x880] ss:$8 sps:$4 sm:$0xff]  }
 0x1b1   : > { %v10882_v49 = vld [vmem:[%s11538_s21 + $0x8a0] ss:$8 sps:$4 sm:$0xff]  }
 0x1b2   : > { %3574 = vmatpush1.bf16.msra.mxu1 %v10831_v8  ;;  %v1337_v8 = vsel %vm11627_vm2, %v1332_v47, %v1336_v52  ;;  %v10878_v47 = vld [vmem:[%s11538_s21 + $0x884] ss:$8 sps:$4 sm:$0xff]   ;;  %v10885_v52 = vld [vmem:[%s11538_s21 + $0x8b0] ss:$8 sps:$4 sm:$0xff]  }
 0x1b3   : > { %3866 = vmatpush1.bf16.msra.mxu0 %v10835_v38  ;;  %3575 = vmatprep.subr.bf16.mxu1 %v10840_v45  ;;  %v10854_v38 = vld [vmem:[%s11538_s21 + $0x820] ss:$8 sps:$4 sm:$0xff]   ;;  %v8924_v10 = vcombine.high %v1323_v7, %v1337_v8  ;;  %v1350_v45 = vrot.slane %v1348_v0, 5  ;;  %v8923_v19 = vcombine.low %v1323_v7, %v1337_v8 }
 0x1b4   : > { %3867 = vmatprep.subr.bf16.mxu0 %v10843_v11  ;;  %v1360_v11 = vrot.slane %v1359_v2, 4  ;;  %v8931_v0 = vld [vmem:[%s11536_s22 + $0x40] sm:$0xee]  ;;  %v8932_v2 = vld [vmem:[%s11536_s22 + $0x48] sm:$0x11] }
 0x1b5   : > { %v8939_v7 = vld [vmem:[%s11536_s22 + $0x80] sm:$0xee]  ;;  %v8940_v8 = vld [vmem:[%s11536_s22 + $0x88] sm:$0x11] }
 0x1b6   : > { %3576 = vmatpush1.bf16.msra.mxu1 %v10838_v15  ;;  %v10864_v15 = vld [vmem:[%s11538_s21 + $0x844] ss:$8 sps:$4 sm:$0xff]  }
 0x1b7   : > { %3868 = vmatpush1.bf16.msra.mxu0 %v10841_v24  ;;  %10196 = vmatprep.subr.bf16.mxu1 %v10848_v27  ;;  %v8930_v24 = vld [vmem:[%s11536_s22 + $0x38] sm:$0x11] }
 0x1b8   : > { %3910 = vmatprep.subr.bf16.mxu0 %v10848_v27  ;;  %v8937_v27 = vld [vmem:[%s11536_s22 + $0x70] sm:$0xee] }
 0x1b9   : > { %3578 = vmatmul.mubr.bf16.vlgmr.msra.gmra.mrb[0].mxu1 %v8823_v5  ;;  %v8944_v5 = vrot.slane %v8929_v13, 9  ;;  %v8948_v41 = vrot.slane %v8937_v27, 9 }
 0x1ba   : > { %3870 = vmatmul.mubr.bf16.vlgmr.msra.gmra.mrb[0].mxu0 %v8919_v36  ;;  %10212 = vmatpush1.bf16.msra.mxu1 %v10846_v46  ;;  %v1444_v36 = vrot.slane %v8930_v24, 5 }
 0x1bb   : > { %3911 = vmatpush1.bf16.msra.mxu0 %v10846_v46  ;;  %10197 = vmatprep.subr.bf16.mxu1 %v10851_v20  ;;  %v12185_v46 = vsel %vm11751_vm5, %v8947_v35, %v1456_v40 }
 0x1bc   : > { %3912 = vmatprep.subr.bf16.mxu0 %v10851_v20  ;;  %3587 = vmatprep.mubr.bf16.mxu1 %v8826_v60  ;;  %v1346_v60 = vrot.slane %v1345_v63, 4  ;;  %v10896_v63 = vld [vmem:[%s11538_s21 + $0x8e4] ss:$8 sps:$4 sm:$0xff]  }
 0x1bd   : > { %3879 = vmatprep.mubr.bf16.mxu0 %v8922_v62  ;;  %v10873_v62 = vld [vmem:[%s11538_s21 + $0x870] ss:$8 sps:$4 sm:$0xff]  }
 0x1be   : > { %10213 = vmatpush1.bf16.msra.mxu1 %v10849_v56  ;;  %v1351_v58 = vsel %vm11627_vm2, %v1346_v60, %v1350_v45  ;;  %v10894_v60 = vld [vmem:[%s11538_s21 + $0x8e0] ss:$8 sps:$4 sm:$0xff]   ;;  %v1448_v45 = vrot.slane %v8932_v2, 5 }
 0x1bf   : > { %3913 = vmatpush1.bf16.msra.mxu0 %v10849_v56  ;;  %10198 = vmatprep.subr.bf16.mxu1 %v10856_v57  ;;  %v10893_v56 = vld [vmem:[%s11538_s21 + $0x8d4] ss:$8 sps:$4 sm:$0xff]   ;;  %v1518_v2 = vld [vmem:[#allocation2 + $0x40] sm:$0xff] }
 0x1c0   : > { %3914 = vmatprep.subr.bf16.mxu0 %v10856_v57  ;;  %v10891_v57 = vld [vmem:[%s11538_s21 + $0x8d0] ss:$8 sps:$4 sm:$0xff]  }
 0x1c1   : > { %3588 = vmatmul.mubr.bf16.gmra.mrb[4].mxu1 %v8825_v1  ;;  %v1365_v1 = vsel %vm11627_vm2, %v1360_v11, %v1364_v32  ;;  %v8946_v11 = vrot.slane %v8933_v3, 9 }
 0x1c2   : > { %3880 = vmatmul.mubr.bf16.gmra.mrb[4].mxu0 %v8921_v4  ;;  %10214 = vmatpush1.bf16.msra.mxu1 %v10854_v38  ;;  %v8926_v28 = vcombine.high %v1351_v58, %v1365_v1  ;;  %v8925_v14 = vcombine.low %v1351_v58, %v1365_v1  ;;  %v8934_v4 = vld [vmem:[%s11536_s22 + $0x58] sm:$0x11] }
 0x1c3   : > { %3915 = vmatpush1.bf16.msra.mxu0 %v10854_v38  ;;  %10199 = vmatprep.subr.bf16.mxu1 %v10859_v9  ;;  %v8941_v38 = vld [vmem:[%s11536_s22 + $0x90] sm:$0xee]  ;;  %v1452_v32 = vrot.slane %v8934_v4, 5 }
 0x1c4   : > { %3916 = vmatprep.subr.bf16.mxu0 %v10859_v9  ;;  %3597 = vmatprep.mubr.bf16.mxu1 %v8828_v16  ;;  %v8938_v16 = vld [vmem:[%s11536_s22 + $0x78] sm:$0x11]  ;;  %v8950_v58 = vrot.slane %v8941_v38, 9 }
 0x1c5   : > { %3889 = vmatprep.mubr.bf16.mxu0 %v8924_v10  ;;  %v1460_v42 = vrot.slane %v8938_v16, 5  ;;  %v8942_v9 = vld [vmem:[%s11536_s22 + $0x98] sm:$0x11]  ;;  %v8945_v10 = vrot.slane %v8931_v0, 9 }
 0x1c6   : > { %10215 = vmatpush1.bf16.msra.mxu1 %v10857_v12  ;;  %v1468_v1 = vrot.slane %v8942_v9, 5  ;;  %v1519_v9 = vld [vmem:[#allocation2 + $0x48] sm:$0xff] }
 0x1c7   : > { %3917 = vmatpush1.bf16.msra.mxu0 %v10857_v12  ;;  %10200 = vmatprep.subr.bf16.mxu1 %v10864_v15  ;;  %v12189_v20 = vsel %vm11751_vm5, %v8948_v41, %v1460_v42  ;;  %v10899_v12 = vld [vmem:[%s11538_s21 + $0x8f4] ss:$8 sps:$4 sm:$0xff]   ;;  %v1449_v18 = vsel %vm11751_vm5, %v8945_v10, %v1448_v45 }
 0x1c8   : > { %3918 = vmatprep.subr.bf16.mxu0 %v10864_v15  ;;  %v8956_v34 = vcombine.high %v12185_v46, %v12189_v20  ;;  %v8949_v15 = vrot.slane %v8939_v7, 9  ;;  %v1469_v24 = vsel %vm11751_vm5, %v8950_v58, %v1468_v1  ;;  %v8955_v26 = vcombine.low %v12185_v46, %v12189_v20 }
 0x1c9   : > { %3598 = vmatmul.mubr.bf16.gmra.mrb[8].mxu1 %v8827_v21  ;;  %v12181_v21 = vsel %vm11751_vm5, %v8944_v5, %v1444_v36 }
 0x1ca   : > { %3890 = vmatmul.mubr.bf16.gmra.mrb[8].mxu0 %v8923_v19  ;;  %10216 = vmatpush1.bf16.msra.mxu1 %v10862_v23  ;;  %v8952_v61 = vcombine.high %v12177_v30, %v12181_v21  ;;  %v1453_v19 = vsel %vm11751_vm5, %v8946_v11, %v1452_v32  ;;  %v8951_v25 = vcombine.low %v12177_v30, %v12181_v21  ;;  %v1512_v11 = vld [vmem:[#allocation2 + $0x10] sm:$0xff] }
 0x1cb   : > { %3919 = vmatpush1.bf16.msra.mxu0 %v10862_v23  ;;  %10201 = vmatprep.subr.bf16.mxu1 %v10867_v22  ;;  %v1464_v23 = vrot.slane %v8940_v8, 5  ;;  %v8954_v27 = vcombine.high %v1449_v18, %v1453_v19  ;;  %v1511_v8 = vld [vmem:[#allocation2 + $0x8] sm:$0xff] }
 0x1cc   : > { %3920 = vmatprep.subr.bf16.mxu0 %v10867_v22  ;;  %3607 = vmatprep.mubr.bf16.mxu1 %v8830_v6  ;;  %v10870_v6 = vld [vmem:[%s11538_s21 + $0x860] ss:$8 sps:$4 sm:$0xff]   ;;  %v8953_v22 = vcombine.low %v1449_v18, %v1453_v19  ;;  %v1513_v18 = vld [vmem:[#allocation2 + $0x18] sm:$0xff] }
 0x1cd   : > { %3899 = vmatprep.mubr.bf16.mxu0 %v8926_v28  ;;  %v1465_v13 = vsel %vm11751_vm5, %v8949_v15, %v1464_v23 }
 0x1ce   : > { %10217 = vmatpush1.bf16.msra.mxu1 %v10865_v43  ;;  %v8958_v16 = vcombine.high %v1465_v13, %v1469_v24  ;;  %v8957_v28 = vcombine.low %v1465_v13, %v1469_v24  ;;  %v1521_v13 = vld [vmem:[#allocation2 + $0x58] sm:$0xff] }
 0x1cf   : > { %3921 = vmatpush1.bf16.msra.mxu0 %v10865_v43  ;;  %10202 = vmatprep.subr.bf16.mxu1 %v10872_v44 }
 0x1d0   : > { %3922 = vmatprep.subr.bf16.mxu0 %v10872_v44 }
 0x1d1   : > { %3608 = vmatmul.mubr.bf16.gmra.mrb[12].mxu1 %v8829_v50  ;;  %v10884_v50 = vld [vmem:[%s11538_s21 + $0x8a4] ss:$8 sps:$4 sm:$0xff]  }
 0x1d2   : > { %3900 = vmatmul.mubr.bf16.gmra.mrb[12].mxu0 %v8925_v14  ;;  %10218 = vmatpush1.bf16.msra.mxu1 %v10870_v6 }
 0x1d3   : > { %3923 = vmatpush1.bf16.msra.mxu0 %v10870_v6  ;;  %10203 = vmatprep.subr.bf16.mxu1 %v10875_v59 }
 0x1d4   : > { %3924 = vmatprep.subr.bf16.mxu0 %v10875_v59  ;;  %3942 = vmatprep.mubr.bf16.mxu0 %v8952_v61 }
 0x1d5   : > { %3962 = vmatprep.mubr.bf16.mxu1 %v8956_v34 }
 0x1d6   : > { %10219 = vmatpush1.bf16.msra.mxu1 %v10873_v62 }
 0x1d7   : > { %3925 = vmatpush1.bf16.msra.mxu0 %v10873_v62  ;;  %10204 = vmatprep.subr.bf16.mxu1 %v10878_v47 }
 0x1d8   : > { %3926 = vmatprep.subr.bf16.mxu0 %v10878_v47 }
 0x1da   : > { %10220 = vmatpush1.bf16.msra.mxu1 %v10876_v48 }
 0x1db   : > { %3927 = vmatpush1.bf16.msra.mxu0 %v10876_v48  ;;  %10205 = vmatprep.subr.bf16.mxu1 %v10881_v37 }
 0x1dc   : > { %3928 = vmatprep.subr.bf16.mxu0 %v10881_v37 }
 0x1de   : > { %10221 = vmatpush1.bf16.msra.mxu1 %v10879_v39 }
 0x1df   : > { %3929 = vmatpush1.bf16.msra.mxu0 %v10879_v39  ;;  %10206 = vmatprep.subr.bf16.mxu1 %v10884_v50 }
 0x1e0   : > { %3930 = vmatprep.subr.bf16.mxu0 %v10884_v50 }
 0x1e2   : > { %10222 = vmatpush1.bf16.msra.mxu1 %v10882_v49 }
 0x1e3   : > { %3931 = vmatpush1.bf16.msra.mxu0 %v10882_v49  ;;  %10207 = vmatprep.subr.bf16.mxu1 %v10887_v51 }
 0x1e4   : > { %3932 = vmatprep.subr.bf16.mxu0 %v10887_v51 }
 0x1e6   : > { %10223 = vmatpush1.bf16.msra.mxu1 %v10885_v52 }
 0x1e7   : > { %3933 = vmatpush1.bf16.msra.mxu0 %v10885_v52  ;;  %10208 = vmatprep.subr.bf16.mxu1 %v10890_v53 }
 0x1e8   : > { %3934 = vmatprep.subr.bf16.mxu0 %v10890_v53 }
 0x1ea   : > { %10224 = vmatpush1.bf16.msra.mxu1 %v10888_v55 }
 0x1eb   : > { %3935 = vmatpush1.bf16.msra.mxu0 %v10888_v55  ;;  %10209 = vmatprep.subr.bf16.mxu1 %v10893_v56 }
 0x1ec   : > { %3936 = vmatprep.subr.bf16.mxu0 %v10893_v56 }
 0x1ee   : > { %10225 = vmatpush1.bf16.msra.mxu1 %v10891_v57 }
 0x1ef   : > { %3937 = vmatpush1.bf16.msra.mxu0 %v10891_v57  ;;  %10210 = vmatprep.subr.bf16.mxu1 %v10896_v63 }
 0x1f0   : > { %3938 = vmatprep.subr.bf16.mxu0 %v10896_v63  ;;  %v1510_v63 = vld [vmem:[#allocation2] sm:$0xff] }
 0x1f2   : > { %10226 = vmatpush1.bf16.msra.mxu1 %v10894_v60 }
 0x1f3   : > { %3939 = vmatpush1.bf16.msra.mxu0 %v10894_v60  ;;  %10211 = vmatprep.subr.bf16.mxu1 %v10899_v12 }
 0x1f4   : > { %3940 = vmatprep.subr.bf16.mxu0 %v10899_v12  ;;  %v1520_v12 = vld [vmem:[#allocation2 + $0x50] sm:$0xff] }
 0x1f6   : > { %10227 = vmatpush1.bf16.msra.mxu1 %v10897_v17 }
 0x1f7   : > { %3941 = vmatpush1.bf16.msra.mxu0 %v10897_v17 }
 0x1f9   : > { %3963 = vmatmul.mubr.bf16.vlgmr.msra.gmra.mrb[16].mxu1 %v8955_v26 }
 0x1fa   : > { %3943 = vmatmul.mubr.bf16.vlgmr.msra.gmra.mrb[0].mxu0 %v8951_v25  ;;  %3972 = vmatprep.mubr.bf16.mxu1 %v8958_v16 }
 0x1fb   : > { %3952 = vmatprep.mubr.bf16.mxu0 %v8954_v27 }
 0x201   : > { %3973 = vmatmul.mubr.bf16.gmra.mrb[20].mxu1 %v8957_v28 }
 0x202   : > { %3953 = vmatmul.mubr.bf16.gmra.mrb[4].mxu0 %v8953_v22 }
 0x28c   : > { %v3579_v31 = vpop.f32.mrb[0].mxu1 }
 0x28d   : > { %v3581_v33 = vpop.f32.mrb[1].mxu1 }
 0x28e   : > { %v3583_v5 = vpop.f32.mrb[2].mxu1 }
 0x28f   : > { %v3585_v36 = vpop.f32.mrb[3].mxu1 }
 0x294   : > { %v12237_v35 = vpop.f32.mrb[4].mxu1 }
 0x295   : > { %v12239_v40 = vpop.f32.mrb[5].mxu1 }
 0x296   : > { %v12241_v41 = vpop.f32.mrb[6].mxu1 }
 0x297   : > { %v12243_v42 = vpop.f32.mrb[7].mxu1 }
 0x29c   : > { %v3599_v43 = vpop.f32.mrb[8].mxu1 }
 0x29d   : > { %v3891_v44 = vpop.f32.mrb[8].mxu0  ;;  %v3601_v30 = vpop.f32.mrb[9].mxu1 }
 0x29e   : > { %v10236_v14 = vadd.f32 %v3891_v44, %v3599_v43  ;;  %v3893_v21 = vpop.f32.mrb[9].mxu0  ;;  %v3603_v20 = vpop.f32.mrb[10].mxu1  ;;  %v1522_v44 = vld [vmem:[#allocation2 + $0x60] sm:$0xff] }
 0x29f   : > { %v10238_v46 = vadd.f32 %v3893_v21, %v3601_v30  ;;  %v3895_v6 = vpop.f32.mrb[10].mxu0  ;;  %v3605_v61 = vpop.f32.mrb[11].mxu1  ;;  %v1515_v21 = vld [vmem:[#allocation2 + $0x28] sm:$0xff] }
 0x2a0   : > { %v10240_v59 = vadd.f32 %v3895_v6, %v3603_v20  ;;  %v3897_v34 = vpop.f32.mrb[11].mxu0  ;;  %v1523_v20 = vld [vmem:[#allocation2 + $0x68] sm:$0xff] }
 0x2a1   : > { %v10242_v62 = vadd.f32 %v3897_v34, %v3605_v61  ;;  %v1516_v34 = vld [vmem:[#allocation2 + $0x30] sm:$0xff] }
 0x2a4   : > { %v3609_v47 = vpop.f32.mrb[12].mxu1 }
 0x2a5   : > { %v3901_v48 = vpop.f32.mrb[12].mxu0  ;;  %v3611_v39 = vpop.f32.mrb[13].mxu1 }
 0x2a6   : > { %v10244_v37 = vadd.f32 %v3901_v48, %v3609_v47  ;;  %v3903_v50 = vpop.f32.mrb[13].mxu0  ;;  %v3613_v51 = vpop.f32.mrb[14].mxu1  ;;  %v1524_v47 = vld [vmem:[#allocation2 + $0x70] sm:$0xff] }
 0x2a7   : > { %v10246_v49 = vadd.f32 %v3903_v50, %v3611_v39  ;;  %v3905_v52 = vpop.f32.mrb[14].mxu0  ;;  %v3615_v55 = vpop.f32.mrb[15].mxu1 }
 0x2a8   : > { %v12245_v53 = vadd.f32 %v3905_v52, %v3613_v51  ;;  %v3907_v56 = vpop.f32.mrb[15].mxu0 }
 0x2a9   : > { %v12247_v57 = vadd.f32 %v3907_v56, %v3615_v55  ;;  %v1517_v55 = vld [vmem:[#allocation2 + $0x38] sm:$0xff] }
 0x2cc   : > { %v3964_v3 = vpop.f32.mrb[16].mxu1 }
 0x2cd   : > { %v3944_v0 = vpop.f32.mrb[0].mxu0  ;;  %v10237_v7 = vadd.f32 %v10236_v14, %v3964_v3  ;;  %v3966_v60 = vpop.f32.mrb[17].mxu1 }
 0x2ce   : > { %v10228_v4 = vadd.f32 %v3944_v0, %v3579_v31  ;;  %v3946_v38 = vpop.f32.mrb[1].mxu0  ;;  %v10239_v45 = vadd.f32 %v10238_v46, %v3966_v60  ;;  %v3968_v15 = vpop.f32.mrb[18].mxu1  ;;  %v10907_v60 = vld [vmem:[%s13160_s2 + $0x50] sm:$0xff] (!%p9247_p7)  }
 0x2cf   : > { %v10229_v10 = vadd.f32 %v3946_v38, %v3581_v33  ;;  %v3948_v32 = vpop.f32.mrb[2].mxu0  ;;  %v3991_v58 = vadd.f32 %v10237_v7, %v1518_v2  ;;  %v10241_v17 = vadd.f32 %v10240_v59, %v3968_v15  ;;  %v3970_v24 = vpop.f32.mrb[19].mxu1  ;;  %v10903_v7 = vld [vmem:[%s13160_s2 + $0x48] sm:$0xff] (!%p9247_p7)   ;;  %v10905_v38 = vld [vmem:[%s13160_s2 + $0xc0] sm:$0xff] (!%p9247_p7)   ;;  %v10913_v15 = vld [vmem:[%s13160_s2 + $0xd0] sm:$0xff] (!%p9247_p7)  }
 0x2d0   : > { %v3983_v23 = vadd.f32 %v10228_v4, %v1510_v63  ;;  %v10230_v1 = vadd.f32 %v3948_v32, %v3583_v5  ;;  %v3950_v19 = vpop.f32.mrb[3].mxu0  ;;  %v3992_v26 = vadd.f32 %v10239_v45, %v1519_v9  ;;  %v10243_v16 = vadd.f32 %v10242_v62, %v3970_v24  ;;  %v1514_v5 = vld [vmem:[#allocation2 + $0x20] sm:$0xff]  ;;  %9576 = vmatprep.subr.bf16.mxu1 (!%p9247_p7), %v10905_v38  ;;  %v10909_v45 = vld [vmem:[%s13160_s2 + $0xc8] sm:$0xff] (!%p9247_p7)   ;;  %v10911_v32 = vld [vmem:[%s13160_s2 + $0x58] sm:$0xff] (!%p9247_p7)  }
 0x2d1   : > { %v3984_v25 = vadd.f32 %v10229_v10, %v1511_v8  ;;  %v10231_v27 = vadd.f32 %v3950_v19, %v3585_v36  ;;  %4007 = vst [vmem:[#allocation2 + $0x40] sm:$0xff] %v3991_v58  ;;  %v3993_v28 = vadd.f32 %v10241_v17, %v1520_v12  ;;  %v10904_v8 = vld [vmem:[%s13160_s2 + $0x8] sm:$0xff] (!%p9247_p7)   ;;  %v10906_v9 = vld [vmem:[%s13160_s2 + $0x80] sm:$0xff] (!%p9247_p7)   ;;  %v10908_v10 = vld [vmem:[%s13160_s2 + $0x10] sm:$0xff] (!%p9247_p7)   ;;  %v4037_v19 = vlaneseq (!%p9247_p7) }
 0x2d2   : > { %3999 = vst [vmem:[#allocation2] sm:$0xff] %v3983_v23  ;;  %v3985_v22 = vadd.f32 %v10230_v1, %v1512_v11  ;;  %4008 = vst [vmem:[#allocation2 + $0x48] sm:$0xff] %v3992_v26  ;;  %v3994_v33 = vadd.f32 %v10243_v16, %v1521_v13  ;;  %9577 = vmatpush3.bf16.msra.mxu1 (!%p9247_p7), %v10906_v9  ;;  %v10910_v11 = vld [vmem:[%s13160_s2 + $0x88] sm:$0xff] (!%p9247_p7)   ;;  %v10912_v12 = vld [vmem:[%s13160_s2 + $0x18] sm:$0xff] (!%p9247_p7)  }
 0x2d3   : > { %4000 = vst [vmem:[#allocation2 + $0x8] sm:$0xff] %v3984_v25  ;;  %v3986_v31 = vadd.f32 %v10231_v27, %v1513_v18  ;;  %4009 = vst [vmem:[#allocation2 + $0x50] sm:$0xff] %v3993_v28  ;;  %9578 = vmatprep.subr.bf16.mxu1 (!%p9247_p7), %v10909_v45  ;;  %v10914_v23 = vld [vmem:[%s13160_s2 + $0x90] sm:$0xff] (!%p9247_p7)   ;;  %v10915_v58 = vld [vmem:[%s13160_s2 + $0x60] sm:$0xff] (!%p9247_p7)   ;;  %v4038_v27 = vshrl.u32 (!%p9247_p7), %v4037_v19, 7 }
 0x2d4   : > { %4001 = vst [vmem:[#allocation2 + $0x10] sm:$0xff] %v3985_v22  ;;  %4010 = vst [vmem:[#allocation2 + $0x58] sm:$0xff] %v3994_v33  ;;  %v3974_v14 = vpop.f32.mrb[20].mxu1  ;;  %v10916_v1 = vld [vmem:[%s13160_s2 + $0x20] sm:$0xff] (!%p9247_p7)   ;;  %v10917_v17 = vld [vmem:[%s13160_s2 + $0xd8] sm:$0xff] (!%p9247_p7)  }
 0x2d5   : > { %4002 = vst [vmem:[#allocation2 + $0x18] sm:$0xff] %v3986_v31  ;;  %v3954_v43 = vpop.f32.mrb[4].mxu0  ;;  %v10245_v36 = vadd.f32 %v10244_v37, %v3974_v14  ;;  %v3976_v6 = vpop.f32.mrb[21].mxu1  ;;  %v1525_v37 = vld [vmem:[#allocation2 + $0x78] sm:$0xff]  ;;  %v10919_v13 = vld [vmem:[%s13160_s2 + $0x68] sm:$0xff] (!%p9247_p7)   ;;  %v10921_v25 = vld [vmem:[%s13160_s2 + $0xe0] sm:$0xff] (!%p9247_p7)  }
 0x2d6   : > { %v10232_v30 = vadd.f32 %v3954_v43, %v12237_v35  ;;  %v3956_v46 = vpop.f32.mrb[5].mxu0  ;;  %v10247_v61 = vadd.f32 %v10246_v49, %v3976_v6  ;;  %v3978_v48 = vpop.f32.mrb[22].mxu1  ;;  %9579 = vmatpush3.bf16.msra.mxu1 (!%p9247_p7), %v10910_v11  ;;  %v10918_v18 = vld [vmem:[%s13160_s2 + $0x98] sm:$0xff] (!%p9247_p7)   ;;  %v10920_v24 = vld [vmem:[%s13160_s2 + $0x28] sm:$0xff] (!%p9247_p7)   ;;  %v10922_v26 = vld [vmem:[%s13160_s2 + $0xa0] sm:$0xff] (!%p9247_p7)   ;;  %v4039_v33 = vsub.s32 (!%p9247_p7), 0, %v4038_v27 }
 0x2d7   : > { %v10233_v59 = vadd.f32 %v3956_v46, %v12239_v40  ;;  %v3958_v62 = vpop.f32.mrb[6].mxu0  ;;  %v3995_v50 = vadd.f32 %v10245_v36, %v1522_v44  ;;  %v10249_v52 = vadd.f32 %v12245_v53, %v3978_v48  ;;  %v3980_v56 = vpop.f32.mrb[23].mxu1  ;;  %4018 = sbr.rel (%p9247_p7) target bundleno = 1702 (0x6a6), region = 118  ;;  %v10902_v53 = vld [vmem:[%s13160_s2] sm:$0xff] (!%p9247_p7)   ;;  %9580 = vmatprep.subr.bf16.mxu1 (!%p9247_p7), %v10913_v15  ;;  %v10923_v16 = vld [vmem:[%s13160_s2 + $0x70] sm:$0xff] (!%p9247_p7)   ;;  %v10925_v28 = vld [vmem:[%s13160_s2 + $0xe8] sm:$0xff] (!%p9247_p7)  }
 0x2d8   : > { %v3987_v39 = vadd.f32 %v10232_v30, %v1514_v5  ;;  %v10234_v51 = vadd.f32 %v3958_v62, %v12241_v41  ;;  %v3960_v35 = vpop.f32.mrb[7].mxu0  ;;  %v3996_v0 = vadd.f32 %v10247_v61, %v1523_v20  ;;  %v10251_v40 = vadd.f32 %v12247_v57, %v3980_v56  ;;  %v10924_v22 = vld [vmem:[%s13160_s2 + $0x30] sm:$0xff] (!%p9247_p7)   ;;  %v10926_v31 = vld [vmem:[%s13160_s2 + $0xa8] sm:$0xff] (!%p9247_p7)   ;;  %v10927_v5 = vld [vmem:[%s13160_s2 + $0x78] sm:$0xff] (!%p9247_p7)  }
 0x2d9   : > { %v3988_v63 = vadd.f32 %v10233_v59, %v1515_v21  ;;  %v10235_v2 = vadd.f32 %v3960_v35, %v12243_v42  ;;  %4011 = vst [vmem:[#allocation2 + $0x60] sm:$0xff] %v3995_v50  ;;  %v3997_v3 = vadd.f32 %v10249_v52, %v1524_v47  ;;  %v10901_v42 = vld [vmem:[%s13160_s2 + $0x40] sm:$0xff] (!%p9247_p7)   ;;  %v11246_v57 = vmov (!%p9247_p7), 0   ;;  %v10928_v44 = vld [vmem:[%s13160_s2 + $0x38] sm:$0xff] (!%p9247_p7)   ;;  %v10929_v14 = vld [vmem:[%s13160_s2 + $0xf0] sm:$0xff] (!%p9247_p7)  }
 0x2da   : > { %4003 = vst [vmem:[#allocation2 + $0x20] sm:$0xff] %v3987_v39  ;;  %v3989_v49 = vadd.f32 %v10234_v51, %v1516_v34  ;;  %4012 = vst [vmem:[#allocation2 + $0x68] sm:$0xff] %v3996_v0  ;;  %v3998_v41 = vadd.f32 %v10251_v40, %v1525_v37  ;;  %10900 = vset.pattern.permute.xlu0 (!%p9247_p7), %v11246_v57  ;;  %9536 = vmatprep.subr.bf16.mxu0 (!%p9247_p7), %v10901_v42  ;;  %v4043_v43 = vsub.s32 (!%p9247_p7), 1, %v4038_v27  ;;  %v4019_v30 = vld [vmem:[#allocation2] sm:$0xff] (!%p9247_p7)  ;;  %v4020_v36 = vld [vmem:[#allocation2 + $0x8] sm:$0xff] (!%p9247_p7) }
 0x2db   : > { %4004 = vst [vmem:[#allocation2 + $0x28] sm:$0xff] %v3988_v63  ;;  %v3990_v4 = vadd.f32 %v10235_v2, %v1517_v55  ;;  %4013 = vst [vmem:[#allocation2 + $0x70] sm:$0xff] %v3997_v3  ;;  %9537 = vmatpush3.bf16.msra.mxu0 (!%p9247_p7), %v10902_v53  ;;  %9581 = vmatpush3.bf16.msra.mxu1 (!%p9247_p7), %v10914_v23  ;;  %v4035_v21 = vld [vmem:[#allocation9] sm:$0x3] (!%p9247_p7)  ;;  %v10930_v6 = vld [vmem:[%s13160_s2 + $0xb0] sm:$0xff] (!%p9247_p7)   ;;  %v4357_v37 = vrot.slane (!%p9247_p7), %v11246_v57, 4 }
 0x2dc   : > { %4005 = vst [vmem:[#allocation2 + $0x30] sm:$0xff] %v3989_v49  ;;  %4014 = vst [vmem:[#allocation2 + $0x78] sm:$0xff] %v3998_v41  ;;  %9538 = vmatprep.subr.bf16.mxu0 (!%p9247_p7), %v10903_v7  ;;  %9582 = vmatprep.subr.bf16.mxu1 (!%p9247_p7), %v10917_v17  ;;  %v12356_v46 = vrot.slane (!%p9247_p7), %v4035_v21, %v4039_v33  ;;  %v12358_v20 = vrot.slane (!%p9247_p7), %v4035_v21, %v4043_v43  ;;  %v10931_v34 = vld [vmem:[%s13160_s2 + $0x140] sm:$0xff] (!%p9247_p7)   ;;  %v10933_v39 = vld [vmem:[%s13160_s2 + $0xf8] sm:$0xff] (!%p9247_p7)   ;;  %v4360_v56 = vrot.slane (!%p9247_p7), %v11246_v57, 5 }
 0x2dd   : > { %4006 = vst [vmem:[#allocation2 + $0x38] sm:$0xff] %v3990_v4  ;;  %4087 = vst [vmem:[#allocation4] sm:$0xff] (!%p9247_p7), %v11246_v57  ;;  %v10934_v51 = vld [vmem:[%s13160_s2 + $0xb8] sm:$0xff] (!%p9247_p7)   ;;  %v10937_v40 = vld [vmem:[%s13160_s2 + $0x1c0] sm:$0xff] (!%p9247_p7)  }
 0x2de   : > { %4088 = vst [vmem:[#allocation4 + $0x8] sm:$0x11] %v11246_v57  ;;  %4090 = vst [vmem:[#allocation4 + $0x18] sm:$0x11] %v11246_v57  ;;  %v4047_v59 = vadd.f32 %v12356_v46, %v4019_v30  ;;  %v4048_v61 = vadd.f32 %v12358_v20, %v4020_v36  ;;  %v4021_v49 = vld [vmem:[#allocation2 + $0x10] sm:$0xff]  ;;  %v4022_v3 = vld [vmem:[#allocation2 + $0x18] sm:$0xff]  ;;  %v4361_v9 = vor.u32 %v4360_v56, %v4357_v37 }
 0x2df   : > { %4092 = vst [vmem:[#allocation4 + $0x28] sm:$0x11] %v11246_v57  ;;  %4094 = vst [vmem:[#allocation4 + $0x38] sm:$0x11] %v11246_v57  ;;  %9539 = vmatpush3.bf16.msra.mxu0 %v10904_v8  ;;  %9583 = vmatpush3.bf16.msra.mxu1 %v10918_v18  ;;  %v4049_v42 = vadd.f32 %v12356_v46, %v4021_v49  ;;  %v4050_v8 = vadd.f32 %v12358_v20, %v4022_v3  ;;  %v10935_v19 = vld [vmem:[%s13160_s2 + $0x148] sm:$0xff]   ;;  %v10939_v30 = vld [vmem:[%s13160_s2 + $0x150] sm:$0xff]  }
 0x2e0   : > { %4096 = vst [vmem:[#allocation4 + $0x48] sm:$0x11] %v11246_v57  ;;  %4098 = vst [vmem:[#allocation4 + $0x58] sm:$0x11] %v11246_v57  ;;  %9540 = vmatprep.subr.bf16.mxu0 %v10907_v60  ;;  %9584 = vmatprep.subr.bf16.mxu1 %v10921_v25  ;;  %v4063_v47 = vmax.f32 %v4047_v59, 0.0  ;;  %v4064_v48 = vmax.f32 %v4048_v61, 0.0 }
 0x2e1   : > { %4100 = vst [vmem:[#allocation4 + $0x68] sm:$0x11] %v11246_v57  ;;  %4102 = vst [vmem:[#allocation4 + $0x78] sm:$0x11] %v11246_v57  ;;  %v4023_v4 = vld [vmem:[#allocation2 + $0x20] sm:$0xff]  ;;  %v4065_v45 = vmax.f32 %v4049_v42, 0.0 }
 0x2e2   : > { %4104 = vst [vmem:[#allocation4 + $0x88] sm:$0x11] %v11246_v57  ;;  %4105 = vst [vmem:[#allocation4 + $0x90] sm:$0xff] %v11246_v57  ;;  %v9527_v50 = vpack.c.bf16 %v4064_v48, %v4063_v47  ;;  %v4024_v41 = vld [vmem:[#allocation2 + $0x28] sm:$0xff]  ;;  %v4051_v38 = vadd.f32 %v12356_v46, %v4023_v4  ;;  %v10940_v21 = vld [vmem:[%s13160_s2 + $0x110] sm:$0xff]  }
 0x2e3   : > { %4106 = vst [vmem:[#allocation4 + $0x98] sm:$0x11] %v11246_v57  ;;  %9541 = vmatpush3.bf16.msra.mxu0 %v10908_v10  ;;  %9585 = vmatpush3.bf16.msra.mxu1 %v10922_v26  ;;  %v4052_v10 = vadd.f32 %v12358_v20, %v4024_v41  ;;  %v10936_v33 = vld [vmem:[%s13160_s2 + $0x108] sm:$0xff]   ;;  %v4025_v59 = vld [vmem:[#allocation2 + $0x30] sm:$0xff]  ;;  %v11018_v35 = vld [vmem:[%s13160_s2 + $0x3a0] sm:$0xff]  }
 0x2e4   : > { %9542 = vmatprep.subr.bf16.mxu0 %v10911_v32  ;;  %9586 = vmatprep.subr.bf16.mxu1 %v10925_v28  ;;  %v4140_v52 = vshrl.u32 %v9527_v50, 16  ;;  %v4143_v55 = vshll.u32 %v9527_v50, 16  ;;  %v4067_v15 = vmax.f32 %v4051_v38, 0.0  ;;  %v4027_v50 = vld [vmem:[#allocation2 + $0x40] sm:$0xff]  ;;  %v4028_v37 = vld [vmem:[#allocation2 + $0x48] sm:$0xff] }
 0x2e5   : > { %v4237_v63 = vld [vmem:[#allocation4 + $0x18] sm:$0x11]  ;;  %v4339_v0 = vld [vmem:[#allocation4 + $0x8] sm:$0x11] }
 0x2e6   : > { %v4142_v2 = vrot.slane %v4140_v52, 7  ;;  %v4364_v60 = vshll.u32 %v4339_v0, 16 }
 0x2e7   : > { %9543 = vmatpush3.bf16.msra.mxu0 %v10912_v12  ;;  %9587 = vmatpush3.bf16.msra.mxu1 %v10926_v31  ;;  %v4066_v12 = vmax.f32 %v4050_v8, 0.0  ;;  %v10938_v8 = vld [vmem:[%s13160_s2 + $0x180] sm:$0xff]  }
 0x2e8   : > { %9544 = vmatprep.subr.bf16.mxu0 %v10915_v58  ;;  %9588 = vmatprep.subr.bf16.mxu1 %v10929_v14  ;;  %v4145_v53 = vor.u32 %v4143_v55, %v4142_v2  ;;  %v4146_v7 = vrot.slane %v4142_v2, 4  ;;  %v4366_v28 = vrot.slane %v4364_v60, 5 }
 0x2ea   : > { %v12396_v11 = vsel %vm12369_vm15, %v4145_v53, 0  ;;  %v4238_v32 = vsel %vm12381_vm4, %v4146_v7, %v4237_v63  ;;  %v4055_v63 = vadd.f32 %v12356_v46, %v4027_v50  ;;  %v4056_v53 = vadd.f32 %v12358_v20, %v4028_v37 }
 0x2eb   : > { %9545 = vmatpush3.bf16.msra.mxu0 %v10916_v1  ;;  %9589 = vmatpush3.bf16.msra.mxu1 %v10930_v6  ;;  %4229 = vst [vmem:[#allocation4 + $0x10] sm:$0xff] %v12396_v11  ;;  %v9256_v23 = vcombine.low %v11246_v57, %v12396_v11  ;;  %v9257_v58 = vcombine.high %v11246_v57, %v12396_v11  ;;  %v10932_v1 = vld [vmem:[%s13160_s2 + $0x100] sm:$0xff]   ;;  %4239 = vst [vmem:[#allocation4 + $0x18] sm:$0x11] %v4238_v32  ;;  %v4369_v17 = vshrl.u32 %v12396_v11, 16 }
 0x2ec   : > { %9546 = vmatprep.subr.bf16.mxu0 %v10919_v13  ;;  %9590 = vmatprep.subr.bf16.mxu1 %v10933_v39  ;;  %v4372_v18 = vshll.u32 %v12396_v11, 16  ;;  %v4068_v13 = vmax.f32 %v4052_v10, 0.0  ;;  %v4362_v57 = vrot.slane %v4361_v9, 4  ;;  %v4249_v6 = vld [vmem:[#allocation4 + $0x38] sm:$0x11] }
 0x2ed   : > { %6530 = vmatprep.mubr.bf16.mxu0 %v9257_v58  ;;  %v4371_v25 = vrot.slane %v4369_v17, 4  ;;  %v4026_v39 = vld [vmem:[#allocation2 + $0x38] sm:$0xff] }
 0x2ee   : > { %v4374_v26 = vrot.slane %v4372_v18, 5  ;;  %v9529_v27 = vpack.c.bf16 %v4068_v13, %v4067_v15  ;;  %v4367_v52 = vsel %vm11627_vm2, %v4362_v57, %v4366_v28  ;;  %v4054_v56 = vadd.f32 %v12358_v20, %v4026_v39  ;;  %v10944_v9 = vld [vmem:[%s13160_s2 + $0x118] sm:$0xff]   ;;  %v10942_v57 = vld [vmem:[%s13160_s2 + $0x188] sm:$0xff]   ;;  %v10945_v28 = vld [vmem:[%s13160_s2 + $0x1d0] sm:$0xff]  }
 0x2ef   : > { %9547 = vmatpush3.bf16.msra.mxu0 %v10920_v24  ;;  %9591 = vmatpush3.bf16.msra.mxu1 %v10934_v51  ;;  %v9528_v24 = vpack.c.bf16 %v4066_v12, %v4065_v45  ;;  %v4053_v51 = vadd.f32 %v12356_v46, %v4025_v59 }
 0x2f0   : > { %9548 = vmatprep.subr.bf16.mxu0 %v10923_v16  ;;  %9656 = vmatprep.subr.bf16.mxu1 %v10937_v40  ;;  %v4375_v31 = vor.u32 %v4374_v26, %v4371_v25  ;;  %v4159_v14 = vshll.u32 %v9529_v27, 16  ;;  %v10943_v40 = vld [vmem:[%s13160_s2 + $0x158] sm:$0xff]   ;;  %v4070_v10 = vmax.f32 %v4054_v56, 0.0  ;;  %v4072_v25 = vmax.f32 %v4056_v53, 0.0 }
 0x2f1   : > { %v4148_v16 = vshrl.u32 %v9528_v24, 16  ;;  %v4069_v60 = vmax.f32 %v4053_v51, 0.0  ;;  %v10946_v51 = vld [vmem:[%s13160_s2 + $0x190] sm:$0xff]  }
 0x2f2   : > { %v4376_v36 = vrot.slane %v4375_v31, 4  ;;  %v4341_v61 = vld [vmem:[#allocation4 + $0x18] sm:$0x11] }
 0x2f3   : > { %9549 = vmatpush3.bf16.msra.mxu0 %v10924_v22  ;;  %v4151_v22 = vshll.u32 %v9528_v24, 16  ;;  %v4150_v43 = vrot.slane %v4148_v16, 7  ;;  %v4378_v55 = vshll.u32 %v4341_v61, 16  ;;  %v4071_v24 = vmax.f32 %v4055_v63, 0.0 }
 0x2f4   : > { %9550 = vmatprep.subr.bf16.mxu0 %v10927_v5  ;;  %v4243_v5 = vld [vmem:[#allocation4 + $0x28] sm:$0x11]  ;;  %v9530_v26 = vpack.c.bf16 %v4070_v10, %v4069_v60  ;;  %v10949_v60 = vld [vmem:[%s13160_s2 + $0x1d8] sm:$0xff]  }
 0x2f5   : > { %v4154_v48 = vrot.slane %v4150_v43, 4  ;;  %v4380_v4 = vrot.slane %v4378_v55, 5  ;;  %v9531_v31 = vpack.c.bf16 %v4072_v25, %v4071_v24 }
 0x2f7   : > { %9551 = vmatpush3.bf16.msra.mxu0 %v10928_v44  ;;  %v4156_v44 = vshrl.u32 %v9529_v27, 16  ;;  %v4244_v3 = vsel %vm12381_vm4, %v4154_v48, %v4243_v5  ;;  %v4381_v45 = vsel %vm11627_vm2, %v4376_v36, %v4380_v4  ;;  %v4167_v5 = vshll.u32 %v9530_v26, 16  ;;  %v4029_v36 = vld [vmem:[#allocation2 + $0x50] sm:$0xff]  ;;  %v4030_v48 = vld [vmem:[#allocation2 + $0x58] sm:$0xff] }
 0x2f8   : > { %9616 = vmatprep.subr.bf16.mxu0 %v10931_v34  ;;  %v4153_v34 = vor.u32 %v4151_v22, %v4150_v43  ;;  %4245 = vst [vmem:[#allocation4 + $0x28] sm:$0x11] %v4244_v3  ;;  %v9264_v58 = vcombine.low %v4367_v52, %v4381_v45  ;;  %v10948_v43 = vld [vmem:[%s13160_s2 + $0x120] sm:$0xff]   ;;  %v4172_v61 = vshrl.u32 %v9531_v31, 16  ;;  %v4175_v50 = vshll.u32 %v9531_v31, 16  ;;  %v4032_v3 = vld [vmem:[#allocation2 + $0x68] sm:$0xff] }
 0x2f9   : > { %v4158_v47 = vrot.slane %v4156_v44, 7  ;;  %v10951_v44 = vld [vmem:[%s13160_s2 + $0x168] sm:$0xff]   ;;  %v4057_v55 = vadd.f32 %v12356_v46, %v4029_v36  ;;  %v4058_v37 = vadd.f32 %v12358_v20, %v4030_v48  ;;  %v4060_v53 = vadd.f32 %v12358_v20, %v4032_v3  ;;  %v10959_v36 = vld [vmem:[%s13160_s2 + $0x178] sm:$0xff]   ;;  %v10961_v3 = vld [vmem:[%s13160_s2 + $0x1f0] sm:$0xff]  }
 0x2fa   : > { %6531 = vmatmul.mubr.bf16.vlgmr.msra.gmra.mrb[0].mxu0 %v9256_v23  ;;  %v12429_v2 = vsel %vm12369_vm15, %v4153_v34, 0  ;;  %v10947_v23 = vld [vmem:[%s13160_s2 + $0x160] sm:$0xff]   ;;  %v4255_v34 = vld [vmem:[#allocation4 + $0x48] sm:$0x11]  ;;  %v4174_v4 = vrot.slane %v4172_v61, 7  ;;  %v10960_v48 = vld [vmem:[%s13160_s2 + $0x138] sm:$0xff]  }
 0x2fb   : > { %9617 = vmatpush3.bf16.msra.mxu0 %v10932_v1  ;;  %v4161_v0 = vor.u32 %v4159_v14, %v4158_v47  ;;  %v4162_v49 = vrot.slane %v4158_v47, 4  ;;  %4242 = vst [vmem:[#allocation4 + $0x20] sm:$0xff] %v12429_v2  ;;  %v4383_v41 = vshrl.u32 %v12429_v2, 16  ;;  %v4386_v42 = vshll.u32 %v12429_v2, 16  ;;  %v10952_v47 = vld [vmem:[%s13160_s2 + $0x128] sm:$0xff]  }
 0x2fc   : > { %9618 = vmatprep.subr.bf16.mxu0 %v10935_v19  ;;  %v9265_v1 = vcombine.high %v4367_v52, %v4381_v45  ;;  %v10941_v19 = vld [vmem:[%s13160_s2 + $0x1c8] sm:$0xff]   ;;  %v4031_v52 = vld [vmem:[#allocation2 + $0x60] sm:$0xff]  ;;  %v4073_v10 = vmax.f32 %v4057_v55, 0.0  ;;  %v10955_v45 = vld [vmem:[%s13160_s2 + $0x170] sm:$0xff]  }
 0x2fd   : > { %v12442_v7 = vsel %vm12369_vm15, %v4161_v0, 0  ;;  %v4250_v38 = vsel %vm12381_vm4, %v4162_v49, %v4249_v6  ;;  %v4385_v15 = vrot.slane %v4383_v41, 4  ;;  %v4388_v17 = vrot.slane %v4386_v42, 5  ;;  %v4261_v49 = vld [vmem:[#allocation4 + $0x58] sm:$0x11] }
 0x2fe   : > { %4248 = vst [vmem:[#allocation4 + $0x30] sm:$0xff] %v12442_v7  ;;  %v9259_v32 = vcombine.high %v12429_v2, %v12442_v7  ;;  %v9258_v12 = vcombine.low %v12429_v2, %v12442_v7  ;;  %4251 = vst [vmem:[#allocation4 + $0x38] sm:$0x11] %v4250_v38  ;;  %v4397_v18 = vshrl.u32 %v12442_v7, 16  ;;  %v4400_v13 = vshll.u32 %v12442_v7, 16  ;;  %6595 = vmatprep.mubr.bf16.mxu1 %v9265_v1 }
 0x2ff   : > { %9619 = vmatpush3.bf16.msra.mxu0 %v10936_v33  ;;  %v4389_v27 = vor.u32 %v4388_v17, %v4385_v15  ;;  %6596 = vmatmul.mubr.bf16.vlgmr.msra.gmra.mrb[0].mxu1 %v9264_v58  ;;  %v4164_v33 = vshrl.u32 %v9530_v26, 16  ;;  %v4343_v14 = vld [vmem:[#allocation4 + $0x28] sm:$0x11]  ;;  %v4059_v42 = vadd.f32 %v12356_v46, %v4031_v52  ;;  %v4178_v15 = vrot.slane %v4174_v4, 4 }
 0x300   : > { %9620 = vmatprep.subr.bf16.mxu0 %v10939_v30  ;;  %6538 = vmatprep.mubr.bf16.mxu0 %v9259_v32  ;;  %v4399_v16 = vrot.slane %v4397_v18, 4  ;;  %v4402_v22 = vrot.slane %v4400_v13, 5  ;;  %v4177_v32 = vor.u32 %v4175_v50, %v4174_v4  ;;  %v10953_v18 = vld [vmem:[%s13160_s2 + $0x1e0] sm:$0xff]  }
 0x301   : > { %9657 = vmatpush3.bf16.msra.mxu1 %v10938_v8  ;;  %v12479_v30 = vrot.slane %v4389_v27, 4  ;;  %v4166_v59 = vrot.slane %v4164_v33, 7  ;;  %v4075_v13 = vmax.f32 %v4059_v42, 0.0  ;;  %v10956_v27 = vld [vmem:[%s13160_s2 + $0x130] sm:$0xff]  }
 0x302   : > { %6539 = vmatmul.mubr.bf16.gmra.mrb[4].mxu0 %v9258_v12  ;;  %9658 = vmatprep.subr.bf16.mxu1 %v10941_v19  ;;  %v4403_v6 = vor.u32 %v4402_v22, %v4399_v16  ;;  %v10950_v12 = vld [vmem:[%s13160_s2 + $0x198] sm:$0xff]   ;;  %v4074_v19 = vmax.f32 %v4058_v37, 0.0  ;;  %v12519_v26 = vsel %vm12369_vm15, %v4177_v32, 0  ;;  %v4507_v32 = vld [vmem:[#allocation4 + $0x8] sm:$0x11] }
 0x303   : > { %9621 = vmatpush3.bf16.msra.mxu0 %v10940_v21  ;;  %v4392_v21 = vshll.u32 %v4343_v14, 16  ;;  %v4170_v41 = vrot.slane %v4166_v59, 4  ;;  %4260 = vst [vmem:[#allocation4 + $0x50] sm:$0xff] %v12519_v26  ;;  %v4425_v33 = vshrl.u32 %v12519_v26, 16 }
 0x304   : > { %9622 = vmatprep.subr.bf16.mxu0 %v10943_v40  ;;  %v4404_v63 = vrot.slane %v4403_v6, 4  ;;  %v4169_v40 = vor.u32 %v4167_v5, %v4166_v59  ;;  %v4428_v5 = vshll.u32 %v12519_v26, 16 }
 0x305   : > { %v4345_v39 = vld [vmem:[#allocation4 + $0x38] sm:$0x11]  ;;  %v4394_v56 = vrot.slane %v4392_v21, 5  ;;  %9659 = vmatpush3.bf16.msra.mxu1 %v10942_v57  ;;  %v4262_v57 = vsel %vm12381_vm4, %v4178_v15, %v4261_v49  ;;  %v4427_v21 = vrot.slane %v4425_v33, 4 }
 0x306   : > { %v4406_v0 = vshll.u32 %v4345_v39, 16  ;;  %9660 = vmatprep.subr.bf16.mxu1 %v10945_v28  ;;  %4263 = vst [vmem:[#allocation4 + $0x58] sm:$0x11] %v4262_v57  ;;  %v4430_v6 = vrot.slane %v4428_v5, 5  ;;  %v4273_v49 = vld [vmem:[#allocation4 + $0x78] sm:$0x11] }
 0x307   : > { %9623 = vmatpush3.bf16.msra.mxu0 %v10944_v9  ;;  %v4395_v8 = vsel %vm11627_vm2, %v12479_v30, %v4394_v56  ;;  %v12496_v9 = vsel %vm12369_vm15, %v4169_v40, 0  ;;  %v10962_v5 = vld [vmem:[%s13160_s2 + $0x1b0] sm:$0xff]  }
 0x308   : > { %9624 = vmatprep.subr.bf16.mxu0 %v10947_v23  ;;  %v4408_v38 = vrot.slane %v4406_v0, 5  ;;  %4254 = vst [vmem:[#allocation4 + $0x40] sm:$0xff] %v12496_v9  ;;  %v4256_v23 = vsel %vm12381_vm4, %v4170_v41, %v4255_v34  ;;  %v4411_v58 = vshrl.u32 %v12496_v9, 16  ;;  %v4414_v17 = vshll.u32 %v12496_v9, 16  ;;  %v10954_v34 = vld [vmem:[%s13160_s2 + $0x1a0] sm:$0xff]   ;;  %v10958_v0 = vld [vmem:[%s13160_s2 + $0x1a8] sm:$0xff]  }
 0x309   : > { %4257 = vst [vmem:[#allocation4 + $0x48] sm:$0x11] %v4256_v23  ;;  %9661 = vmatpush3.bf16.msra.mxu1 %v10946_v51  ;;  %v9261_v16 = vcombine.high %v12496_v9, %v12519_v26  ;;  %v9260_v22 = vcombine.low %v12496_v9, %v12519_v26  ;;  %v4267_v51 = vld [vmem:[#allocation4 + $0x68] sm:$0x11]  ;;  %v4431_v55 = vor.u32 %v4430_v6, %v4427_v21 }
 0x30a   : > { %v4409_v1 = vsel %vm11627_vm2, %v4404_v63, %v4408_v38  ;;  %9662 = vmatprep.subr.bf16.mxu1 %v10949_v60  ;;  %v4413_v28 = vrot.slane %v4411_v58, 4  ;;  %v4416_v31 = vrot.slane %v4414_v17, 5  ;;  %v10963_v38 = vld [vmem:[%s13160_s2 + $0x240] sm:$0xff]   ;;  %v4509_v17 = vld [vmem:[#allocation4 + $0x18] sm:$0x11] }
 0x30b   : > { %9625 = vmatpush3.bf16.msra.mxu0 %v10948_v43  ;;  %v9267_v24 = vcombine.high %v4395_v8, %v4409_v1  ;;  %v9266_v25 = vcombine.low %v4395_v8, %v4409_v1  ;;  %v4076_v43 = vmax.f32 %v4060_v53, 0.0  ;;  %6546 = vmatprep.mubr.bf16.mxu0 %v9261_v16  ;;  %v4432_v41 = vrot.slane %v4431_v55, 4  ;;  %v4508_v1 = vld [vmem:[#allocation4 + $0x10] sm:$0xee] }
 0x30c   : > { %9626 = vmatprep.subr.bf16.mxu0 %v10951_v44  ;;  %v9532_v44 = vpack.c.bf16 %v4074_v19, %v4073_v10  ;;  %v4417_v14 = vor.u32 %v4416_v31, %v4413_v28  ;;  %6547 = vmatmul.mubr.bf16.gmra.mrb[8].mxu0 %v9260_v22  ;;  %v4540_v16 = vrot.slane %v4507_v32, 5  ;;  %v4513_v32 = vld [vmem:[#allocation4 + $0x38] sm:$0x11] }
 0x30d   : > { %6603 = vmatprep.mubr.bf16.mxu1 %v9267_v24  ;;  %9663 = vmatpush3.bf16.msra.mxu1 %v10950_v12  ;;  %v9533_v59 = vpack.c.bf16 %v4076_v43, %v4075_v13  ;;  %v4349_v4 = vld [vmem:[#allocation4 + $0x58] sm:$0x11] }
 0x30e   : > { %6604 = vmatmul.mubr.bf16.gmra.mrb[4].mxu1 %v9266_v25  ;;  %v4180_v61 = vshrl.u32 %v9532_v44, 16  ;;  %v12545_v39 = vrot.slane %v4417_v14, 4  ;;  %9664 = vmatprep.subr.bf16.mxu1 %v10953_v18  ;;  %v4183_v50 = vshll.u32 %v9532_v44, 16  ;;  %v4434_v10 = vshll.u32 %v4349_v4, 16 }
 0x30f   : > { %9627 = vmatpush3.bf16.msra.mxu0 %v10952_v47  ;;  %v10957_v47 = vld [vmem:[%s13160_s2 + $0x1e8] sm:$0xff]   ;;  %v4188_v56 = vshrl.u32 %v9533_v59, 16  ;;  %v4191_v63 = vshll.u32 %v9533_v59, 16  ;;  %v9273_v59 = vrot.slane %v4508_v1, 9 }
 0x310   : > { %9628 = vmatprep.subr.bf16.mxu0 %v10955_v45  ;;  %v4347_v52 = vld [vmem:[#allocation4 + $0x48] sm:$0x11]  ;;  %v4182_v37 = vrot.slane %v4180_v61, 7  ;;  %v4506_v45 = vld [vmem:[#allocation4] sm:$0xee]  ;;  %v4436_v19 = vrot.slane %v4434_v10, 5 }
 0x311   : > { %v4420_v40 = vshll.u32 %v4347_v52, 16  ;;  %v4190_v53 = vrot.slane %v4188_v56, 7  ;;  %9665 = vmatpush3.bf16.msra.mxu1 %v10954_v34  ;;  %v4544_v61 = vrot.slane %v4509_v17, 5  ;;  %v10965_v34 = vld [vmem:[%s13160_s2 + $0x1f8] sm:$0xff]   ;;  %v10969_v56 = vld [vmem:[%s13160_s2 + $0x2c0] sm:$0xff]   ;;  %v10967_v10 = vld [vmem:[%s13160_s2 + $0x248] sm:$0xff]  }
 0x312   : > { %v4185_v42 = vor.u32 %v4183_v50, %v4182_v37  ;;  %v4186_v8 = vrot.slane %v4182_v37, 4  ;;  %9666 = vmatprep.subr.bf16.mxu1 %v10957_v47  ;;  %v4437_v22 = vsel %vm11627_vm2, %v4432_v41, %v4436_v19  ;;  %v10966_v52 = vld [vmem:[%s13160_s2 + $0x1b8] sm:$0xff]   ;;  %v4510_v41 = vld [vmem:[#allocation4 + $0x20] sm:$0xee]  ;;  %v10968_v1 = vld [vmem:[%s13160_s2 + $0x208] sm:$0xff]  }
 0x313   : > { %9629 = vmatpush3.bf16.msra.mxu0 %v10956_v27  ;;  %v4422_v60 = vrot.slane %v4420_v40, 5  ;;  %v4193_v12 = vor.u32 %v4191_v63, %v4190_v53  ;;  %v4194_v23 = vrot.slane %v4190_v53, 4  ;;  %v9272_v27 = vrot.slane %v4506_v45, 9  ;;  %v4512_v45 = vld [vmem:[#allocation4 + $0x30] sm:$0xee] }
 0x314   : > { %9630 = vmatprep.subr.bf16.mxu0 %v10959_v36  ;;  %v12558_v15 = vsel %vm12369_vm15, %v4185_v42, 0  ;;  %v4268_v58 = vsel %vm12381_vm4, %v4186_v8, %v4267_v51  ;;  %v4545_v51 = vsel %vm11751_vm5, %v9273_v59, %v4544_v61  ;;  %v9275_v17 = vrot.slane %v4512_v45, 9 }
 0x315   : > { %v4423_v18 = vsel %vm11627_vm2, %v12545_v39, %v4422_v60  ;;  %4266 = vst [vmem:[#allocation4 + $0x60] sm:$0xff] %v12558_v15  ;;  %4269 = vst [vmem:[#allocation4 + $0x68] sm:$0x11] %v4268_v58  ;;  %v4439_v13 = vshrl.u32 %v12558_v15, 16  ;;  %v4442_v24 = vshll.u32 %v12558_v15, 16  ;;  %v12570_v25 = vsel %vm12369_vm15, %v4193_v12, 0  ;;  %9667 = vmatpush3.bf16.msra.mxu1 %v10958_v0 }
 0x316   : > { %v4274_v57 = vsel %vm12381_vm4, %v4194_v23, %v4273_v49  ;;  %4272 = vst [vmem:[#allocation4 + $0x70] sm:$0xff] %v12570_v25  ;;  %v9263_v28 = vcombine.high %v12558_v15, %v12570_v25  ;;  %v9262_v31 = vcombine.low %v12558_v15, %v12570_v25  ;;  %9668 = vmatprep.subr.bf16.mxu1 %v10961_v3  ;;  %v4453_v36 = vshrl.u32 %v12570_v25, 16  ;;  %v10964_v49 = vld [vmem:[%s13160_s2 + $0x200] sm:$0xff]  }
 0x317   : > { %9631 = vmatpush3.bf16.msra.mxu0 %v10960_v48  ;;  %4275 = vst [vmem:[#allocation4 + $0x78] sm:$0x11] %v4274_v57  ;;  %v4441_v33 = vrot.slane %v4439_v13, 4  ;;  %v9269_v43 = vcombine.high %v4423_v18, %v4437_v22  ;;  %v9268_v44 = vcombine.low %v4423_v18, %v4437_v22  ;;  %v4444_v14 = vrot.slane %v4442_v24, 5  ;;  %v10971_v13 = vld [vmem:[%s13160_s2 + $0x250] sm:$0xff]  }
 0x318   : > { %9696 = vmatprep.subr.bf16.mxu0 %v10963_v38  ;;  %6554 = vmatprep.mubr.bf16.mxu0 %v9263_v28  ;;  %v4456_v21 = vshll.u32 %v12570_v25, 16  ;;  %v4541_v6 = vsel %vm11751_vm5, %v9272_v27, %v4540_v16  ;;  %v4455_v48 = vrot.slane %v4453_v36, 4  ;;  %v4511_v38 = vld [vmem:[#allocation4 + $0x28] sm:$0x11]  ;;  %v9274_v60 = vrot.slane %v4510_v41, 9 }
 0x319   : > { %6611 = vmatprep.mubr.bf16.mxu1 %v9269_v43  ;;  %6555 = vmatmul.mubr.bf16.gmra.mrb[12].mxu0 %v9262_v31  ;;  %v4445_v47 = vor.u32 %v4444_v14, %v4441_v33  ;;  %v9281_v37 = vcombine.high %v4541_v6, %v4545_v51  ;;  %v9280_v4 = vcombine.low %v4541_v6, %v4545_v51  ;;  %v4548_v12 = vrot.slane %v4511_v38, 5  ;;  %v10972_v33 = vld [vmem:[%s13160_s2 + $0x210] sm:$0xff]   ;;  %v4514_v43 = vld [vmem:[#allocation4 + $0x40] sm:$0xee]  ;;  %v4517_v36 = vld [vmem:[#allocation4 + $0x58] sm:$0x11] }
 0x31a   : > { %6612 = vmatmul.mubr.bf16.gmra.mrb[8].mxu1 %v9268_v44  ;;  %v4458_v50 = vrot.slane %v4456_v21, 5  ;;  %v4552_v18 = vrot.slane %v4513_v32, 5  ;;  %v9289_v22 = vcombine.high %v12396_v11, %v12429_v2  ;;  %v4515_v44 = vld [vmem:[#allocation4 + $0x48] sm:$0x11]  ;;  %v4516_v14 = vld [vmem:[#allocation4 + $0x50] sm:$0xee]  ;;  %v9291_v51 = vcombine.high %v12442_v7, %v12496_v9 }
 0x31b   : > { %9669 = vmatpush3.bf16.msra.mxu1 %v10962_v5  ;;  %v12599_v63 = vrot.slane %v4445_v47, 4  ;;  %6660 = vmatprep.mubr.bf16.mxu0 %v9281_v37  ;;  %v4549_v19 = vsel %vm11751_vm5, %v9274_v60, %v4548_v12  ;;  %v10975_v5 = vld [vmem:[%s13160_s2 + $0x258] sm:$0xff]   ;;  %v9276_v21 = vrot.slane %v4514_v43, 9  ;;  %v4556_v6 = vrot.slane %v4515_v44, 5 }
 0x31c   : > { %v4351_v55 = vld [vmem:[#allocation4 + $0x68] sm:$0x11]  ;;  %v4459_v40 = vor.u32 %v4458_v50, %v4455_v48  ;;  %9670 = vmatprep.subr.bf16.mxu1 %v10965_v34  ;;  %v4553_v57 = vsel %vm11751_vm5, %v9275_v17, %v4552_v18  ;;  %v9277_v59 = vrot.slane %v4516_v14, 9  ;;  %v4560_v61 = vrot.slane %v4517_v36, 5  ;;  %v10976_v47 = vld [vmem:[%s13160_s2 + $0x218] sm:$0xff]   ;;  %v10970_v50 = vld [vmem:[%s13160_s2 + $0x280] sm:$0xff]  }
 0x31d   : > { %v4448_v0 = vshll.u32 %v4351_v55, 16  ;;  %v9283_v28 = vcombine.high %v4549_v19, %v4553_v57  ;;  %v9282_v31 = vcombine.low %v4549_v19, %v4553_v57  ;;  %v9288_v34 = vcombine.low %v12396_v11, %v12429_v2  ;;  %v10973_v11 = vld [vmem:[%s13160_s2 + $0x2c8] sm:$0xff]   ;;  %v4518_v41 = vld [vmem:[#allocation4 + $0x60] sm:$0xee]  ;;  %v10988_v18 = vld [vmem:[%s13160_s2 + $0x230] sm:$0xff]  }
 0x31e   : > { %v4353_v3 = vld [vmem:[#allocation4 + $0x78] sm:$0x11]  ;;  %v4460_v53 = vrot.slane %v4459_v40, 4  ;;  %v4557_v48 = vsel %vm11751_vm5, %v9276_v21, %v4556_v6  ;;  %v10974_v55 = vld [vmem:[%s13160_s2 + $0x288] sm:$0xff]   ;;  %v9278_v60 = vrot.slane %v4518_v41, 9  ;;  %v9293_v45 = vcombine.high %v12519_v26, %v12558_v15  ;;  %v4033_v57 = vld [vmem:[#allocation2 + $0x70] sm:$0xff] }
 0x31f   : > { %v4450_v42 = vrot.slane %v4448_v0, 5  ;;  %v4462_v8 = vshll.u32 %v4353_v3, 16  ;;  %9671 = vmatpush3.bf16.msra.mxu1 %v10966_v52  ;;  %v4561_v52 = vsel %vm11751_vm5, %v9277_v59, %v4560_v61  ;;  %v10980_v0 = vld [vmem:[%s13160_s2 + $0x220] sm:$0xff]   ;;  %v10983_v40 = vld [vmem:[%s13160_s2 + $0x268] sm:$0xff]   ;;  %v10978_v3 = vld [vmem:[%s13160_s2 + $0x290] sm:$0xff]  }
 0x320   : > { %9736 = vmatprep.subr.bf16.mxu1 %v10969_v56  ;;  %v9285_v2 = vcombine.high %v4557_v48, %v4561_v52  ;;  %v9284_v37 = vcombine.low %v4557_v48, %v4561_v52  ;;  %v10979_v56 = vld [vmem:[%s13160_s2 + $0x260] sm:$0xff]   ;;  %v4521_v38 = vld [vmem:[#allocation4 + $0x78] sm:$0x11]  ;;  %v10990_v61 = vld [vmem:[%s13160_s2 + $0x2a8] sm:$0xff]  }
 0x321   : > { %v4451_v23 = vsel %vm11627_vm2, %v12599_v63, %v4450_v42  ;;  %v4464_v58 = vrot.slane %v4462_v8, 5  ;;  %6661 = vmatmul.mubr.bf16.vlgmr.msra.gmra.mrb[16].mxu0 %v9280_v4  ;;  %v10984_v4 = vld [vmem:[%s13160_s2 + $0x228] sm:$0xff]   ;;  %v4520_v8 = vld [vmem:[#allocation4 + $0x70] sm:$0xee]  ;;  %v4568_v12 = vrot.slane %v4521_v38, 5  ;;  %v10982_v19 = vld [vmem:[%s13160_s2 + $0x298] sm:$0xff]  }
 0x322   : > { %9697 = vmatpush3.bf16.msra.mxu0 %v10964_v49  ;;  %6668 = vmatprep.mubr.bf16.mxu0 %v9283_v28  ;;  %v10977_v49 = vld [vmem:[%s13160_s2 + $0x2d0] sm:$0xff]   ;;  %v4519_v42 = vld [vmem:[#allocation4 + $0x68] sm:$0x11]  ;;  %v9279_v32 = vrot.slane %v4520_v8, 9  ;;  %v4667_v43 = vld [vmem:[#allocation4 + $0x18] sm:$0x11] }
 0x323   : > { %v4465_v24 = vsel %vm11627_vm2, %v4460_v53, %v4464_v58  ;;  %9698 = vmatprep.subr.bf16.mxu0 %v10967_v10  ;;  %v9290_v53 = vcombine.low %v12442_v7, %v12496_v9  ;;  %v4564_v10 = vrot.slane %v4519_v42, 5  ;;  %v10987_v58 = vld [vmem:[%s13160_s2 + $0x270] sm:$0xff]   ;;  %v4692_v36 = vshll.u32 %v4667_v43, 16  ;;  %v10995_v21 = vld [vmem:[%s13160_s2 + $0x340] sm:$0xff]   ;;  %v4835_v41 = vld [vmem:[#allocation4 + $0x18] sm:$0x11] }
 0x324   : > { %v9271_v27 = vcombine.high %v4451_v23, %v4465_v24  ;;  %v9270_v16 = vcombine.low %v4451_v23, %v4465_v24  ;;  %v10981_v23 = vld [vmem:[%s13160_s2 + $0x2d8] sm:$0xff]   ;;  %v4569_v9 = vsel %vm11751_vm5, %v9279_v32, %v4568_v12  ;;  %v4836_v8 = vld [vmem:[#allocation4 + $0x20] sm:$0xee]  ;;  %v4837_v38 = vld [vmem:[#allocation4 + $0x28] sm:$0x11] }
 0x325   : > { %v4565_v7 = vsel %vm11751_vm5, %v9278_v60, %v4564_v10  ;;  %v10991_v24 = vld [vmem:[%s13160_s2 + $0x278] sm:$0xff]   ;;  %v4694_v52 = vrot.slane %v4692_v36, 5  ;;  %v4868_v10 = vrot.slane %v4835_v41, 5  ;;  %v11002_v43 = vld [vmem:[%s13160_s2 + $0x380] sm:$0xff]  }
 0x326   : > { %6619 = vmatprep.mubr.bf16.mxu1 %v9271_v27  ;;  %9699 = vmatpush3.bf16.msra.mxu0 %v10968_v1  ;;  %v9287_v1 = vcombine.high %v4565_v7, %v4569_v9  ;;  %v9286_v17 = vcombine.low %v4565_v7, %v4569_v9  ;;  %v4034_v27 = vld [vmem:[#allocation2 + $0x78] sm:$0xff]  ;;  %v9305_v7 = vrot.slane %v4836_v8, 9  ;;  %v11001_v9 = vld [vmem:[%s13160_s2 + $0x3c0] sm:$0xff]   ;;  %v4677_v8 = vld [vmem:[#allocation4 + $0x68] sm:$0x11] }
 0x327   : > { %6620 = vmatmul.mubr.bf16.gmra.mrb[12].mxu1 %v9270_v16  ;;  %9700 = vmatprep.subr.bf16.mxu0 %v10971_v13  ;;  %v10985_v13 = vld [vmem:[%s13160_s2 + $0x2e0] sm:$0xff]   ;;  %v9292_v16 = vcombine.low %v12519_v26, %v12558_v15  ;;  %v4062_v28 = vadd.f32 %v12358_v20, %v4034_v27  ;;  %v10989_v26 = vld [vmem:[%s13160_s2 + $0x2e8] sm:$0xff]   ;;  %v4675_v41 = vld [vmem:[#allocation4 + $0x58] sm:$0x11] }
 0x328   : > { %6725 = vmatprep.mubr.bf16.mxu1 %v9289_v22  ;;  %v4061_v22 = vadd.f32 %v12356_v46, %v4033_v57  ;;  %v4666_v46 = vld [vmem:[#allocation4 + $0x10] sm:$0xff]  ;;  %v4669_v20 = vld [vmem:[#allocation4 + $0x28] sm:$0x11] }
 0x329   : > { %6669 = vmatmul.mubr.bf16.gmra.mrb[20].mxu0 %v9282_v31  ;;  %v10992_v31 = vld [vmem:[%s13160_s2 + $0x238] sm:$0xff]   ;;  %v4683_v44 = vshrl.u32 %v4666_v46, 16  ;;  %v4686_v14 = vshll.u32 %v4666_v46, 16  ;;  %v4706_v59 = vshll.u32 %v4669_v20, 16  ;;  %v11004_v20 = vld [vmem:[%s13160_s2 + $0x310] sm:$0xff]  }
 0x32a   : > { %9701 = vmatpush3.bf16.msra.mxu0 %v10972_v33  ;;  %6676 = vmatprep.mubr.bf16.mxu0 %v9285_v2  ;;  %v10986_v33 = vld [vmem:[%s13160_s2 + $0x2a0] sm:$0xff]   ;;  %v4077_v15 = vmax.f32 %v4061_v22, 0.0 }
 0x32b   : > { %9702 = vmatprep.subr.bf16.mxu0 %v10975_v5  ;;  %v4078_v5 = vmax.f32 %v4062_v28, 0.0  ;;  %v4688_v48 = vrot.slane %v4686_v14, 5  ;;  %v11000_v28 = vld [vmem:[%s13160_s2 + $0x308] sm:$0xff]  }
 0x32d   : > { %v9534_v6 = vpack.c.bf16 %v4078_v5, %v4077_v15  ;;  %v11003_v15 = vld [vmem:[%s13160_s2 + $0x350] sm:$0xff]  }
 0x32e   : > { %9703 = vmatpush3.bf16.msra.mxu0 %v10976_v47  ;;  %v4685_v47 = vrot.slane %v4683_v44, 4 }
 0x32f   : > { %6726 = vmatmul.mubr.bf16.vlgmr.msra.gmra.mrb[16].mxu1 %v9288_v34  ;;  %9704 = vmatprep.subr.bf16.mxu0 %v10979_v56  ;;  %v10993_v34 = vld [vmem:[%s13160_s2 + $0x2f0] sm:$0xff]  }
 0x330   : > { %9737 = vmatpush3.bf16.msra.mxu1 %v10970_v50  ;;  %6733 = vmatprep.mubr.bf16.mxu1 %v9291_v51  ;;  %v4196_v50 = vshrl.u32 %v9534_v6, 16  ;;  %v4199_v51 = vshll.u32 %v9534_v6, 16  ;;  %v4689_v2 = vor.u32 %v4688_v48, %v4685_v47  ;;  %v4839_v48 = vld [vmem:[#allocation4 + $0x38] sm:$0x11] }
 0x331   : > { %9738 = vmatprep.subr.bf16.mxu1 %v10973_v11  ;;  %6677 = vmatmul.mubr.bf16.gmra.mrb[24].mxu0 %v9284_v37  ;;  %v4708_v11 = vrot.slane %v4706_v59, 5  ;;  %v10994_v37 = vld [vmem:[%s13160_s2 + $0x2b0] sm:$0xff]   ;;  %v11007_v59 = vld [vmem:[%s13160_s2 + $0x358] sm:$0xff]  }
 0x332   : > { %9705 = vmatpush3.bf16.msra.mxu0 %v10980_v0  ;;  %6684 = vmatprep.mubr.bf16.mxu0 %v9287_v1  ;;  %v4690_v56 = vrot.slane %v4689_v2, 4 }
 0x333   : > { %9706 = vmatprep.subr.bf16.mxu0 %v10983_v40  ;;  %v4709_v0 = vsel %vm11627_vm2, %v12479_v30, %v4708_v11  ;;  %v10997_v40 = vld [vmem:[%s13160_s2 + $0x2f8] sm:$0xff]   ;;  %v11006_v11 = vld [vmem:[%s13160_s2 + $0x388] sm:$0xff]  }
 0x334   : > { %9739 = vmatpush3.bf16.msra.mxu1 %v10974_v55  ;;  %v12716_v55 = vrot.slane %v4196_v50, 7  ;;  %v4695_v42 = vsel %vm11627_vm2, %v4690_v56, %v4694_v52  ;;  %v10998_v30 = vld [vmem:[%s13160_s2 + $0x2b8] sm:$0xff]   ;;  %v4841_v50 = vld [vmem:[#allocation4 + $0x48] sm:$0x11] }
 0x335   : > { %9740 = vmatprep.subr.bf16.mxu1 %v10977_v49  ;;  %v9296_v12 = vcombine.low %v4695_v42, %v4709_v0 }
 0x336   : > { %9707 = vmatpush3.bf16.msra.mxu0 %v10984_v4  ;;  %v4201_v49 = vor.u32 %v4199_v51, %v12716_v55  ;;  %v4834_v4 = vld [vmem:[#allocation4 + $0x10] sm:$0xee] }
 0x337   : > { %6734 = vmatmul.mubr.bf16.gmra.mrb[20].mxu1 %v9290_v53  ;;  %9708 = vmatprep.subr.bf16.mxu0 %v10987_v58  ;;  %v10999_v53 = vld [vmem:[%s13160_s2 + $0x348] sm:$0xff]   ;;  %v9304_v60 = vrot.slane %v4834_v4, 9  ;;  %v12800_v4 = vld [vmem:[#allocation4 + $0x50] sm:$0xff] }
 0x338   : > { %9741 = vmatpush3.bf16.msra.mxu1 %v10978_v3  ;;  %6741 = vmatprep.mubr.bf16.mxu1 %v9293_v45  ;;  %v10996_v3 = vld [vmem:[%s13160_s2 + $0x300] sm:$0xff]  }
 0x339   : > { %9742 = vmatprep.subr.bf16.mxu1 %v10981_v23  ;;  %6685 = vmatmul.mubr.bf16.gmra.mrb[28].mxu0 %v9286_v17  ;;  %v12739_v45 = vld [vmem:[#allocation4] sm:$0xff]  ;;  %v9297_v23 = vcombine.high %v4695_v42, %v4709_v0  ;;  %v4869_v62 = vsel %vm11751_vm5, %v9304_v60, %v4868_v10  ;;  %v4872_v17 = vrot.slane %v4837_v38, 5  ;;  %v4880_v0 = vrot.slane %v4841_v50, 5  ;;  %v4679_v50 = vld [vmem:[#allocation4 + $0x78] sm:$0x11] }
 0x33a   : > { %9709 = vmatpush3.bf16.msra.mxu0 %v10988_v18  ;;  %v12744_v32 = vsel %vm12369_vm15, %v4201_v49, %v12739_v45  ;;  %v12756_v18 = vld [vmem:[#allocation4 + $0x30] sm:$0xff]  ;;  %v4739_v38 = vshrl.u32 %v12800_v4, 16  ;;  %v4742_v60 = vshll.u32 %v12800_v4, 16  ;;  %v4748_v10 = vshll.u32 %v4675_v41, 16 }
 0x33b   : > { %9710 = vmatprep.subr.bf16.mxu0 %v10991_v24  ;;  %4278 = vst [vmem:[#allocation4 + $0x80] sm:$0xff] %v12744_v32  ;;  %v9295_v58 = vcombine.high %v12570_v25, %v12744_v32  ;;  %v9294_v1 = vcombine.low %v12570_v25, %v12744_v32  ;;  %6790 = vmatprep.mubr.bf16.mxu0 %v9297_v23  ;;  %v4711_v24 = vshrl.u32 %v12756_v18, 16  ;;  %v4714_v57 = vshll.u32 %v12756_v18, 16 }
 0x33c   : > { %9743 = vmatpush3.bf16.msra.mxu1 %v10982_v19  ;;  %v4671_v19 = vld [vmem:[#allocation4 + $0x38] sm:$0x11]  ;;  %v4873_v25 = vsel %vm11751_vm5, %v9305_v7, %v4872_v17  ;;  %v4781_v6 = vshrl.u32 %v12744_v32, 16  ;;  %v4784_v42 = vshll.u32 %v12744_v32, 16  ;;  %v4762_v23 = vshll.u32 %v4677_v8, 16  ;;  %v11010_v7 = vld [vmem:[%s13160_s2 + $0x390] sm:$0xff]  }
 0x33d   : > { %9744 = vmatprep.subr.bf16.mxu1 %v10985_v13  ;;  %v4673_v13 = vld [vmem:[#allocation4 + $0x48] sm:$0x11]  ;;  %v4720_v27 = vshll.u32 %v4671_v19, 16  ;;  %v9313_v22 = vcombine.high %v4869_v62, %v4873_v25  ;;  %v9312_v44 = vcombine.low %v4869_v62, %v4873_v25  ;;  %v4744_v62 = vrot.slane %v4742_v60, 5  ;;  %v11012_v19 = vld [vmem:[%s13160_s2 + $0x320] sm:$0xff]   ;;  %v11014_v25 = vld [vmem:[%s13160_s2 + $0x398] sm:$0xff]  }
 0x33e   : > { %9711 = vmatpush3.bf16.msra.mxu0 %v10992_v31  ;;  %v4713_v31 = vrot.slane %v4711_v24, 4  ;;  %v12796_v49 = vrot.slane %v4781_v6, 4  ;;  %v4750_v17 = vrot.slane %v4748_v10, 5  ;;  %v11013_v24 = vld [vmem:[%s13160_s2 + $0x3d8] sm:$0xff]   ;;  %v11017_v6 = vld [vmem:[%s13160_s2 + $0x3e0] sm:$0xff]   ;;  %v5113_v41 = vshll.u32 %v12739_v45, 16 }
 0x33f   : > { %6742 = vmatmul.mubr.bf16.gmra.mrb[24].mxu1 %v9292_v16  ;;  %9776 = vmatprep.subr.bf16.mxu0 %v10995_v21  ;;  %v4734_v16 = vshll.u32 %v4673_v13, 16  ;;  %v4722_v46 = vrot.slane %v4720_v27, 5  ;;  %v11005_v21 = vld [vmem:[%s13160_s2 + $0x3c8] sm:$0xff]   ;;  %v4764_v13 = vrot.slane %v4762_v23, 5  ;;  %v4786_v27 = vrot.slane %v4784_v42, 5  ;;  %v11024_v23 = vld [vmem:[%s13160_s2 + $0x338] sm:$0xff]  }
 0x340   : > { %9745 = vmatpush3.bf16.msra.mxu1 %v10986_v33  ;;  %6749 = vmatprep.mubr.bf16.mxu1 %v9295_v58  ;;  %v4716_v33 = vrot.slane %v4714_v57, 5  ;;  %v4846_v10 = vld [vmem:[#allocation4 + $0x70] sm:$0xee] }
 0x341   : > { %9746 = vmatprep.subr.bf16.mxu1 %v10989_v26  ;;  %6791 = vmatmul.mubr.bf16.vlgmr.msra.gmra.mrb[32].mxu0 %v9296_v12  ;;  %v4736_v26 = vrot.slane %v4734_v16, 5 }
 0x342   : > { %9777 = vmatpush3.bf16.msra.mxu0 %v10996_v3  ;;  %v4717_v5 = vor.u32 %v4716_v33, %v4713_v31  ;;  %v4842_v31 = vld [vmem:[#allocation4 + $0x50] sm:$0xee]  ;;  %v4843_v33 = vld [vmem:[#allocation4 + $0x58] sm:$0x11] }
 0x343   : > { %9778 = vmatprep.subr.bf16.mxu0 %v10999_v53  ;;  %v4737_v36 = vsel %vm11627_vm2, %v12545_v39, %v4736_v26  ;;  %v4840_v39 = vld [vmem:[#allocation4 + $0x40] sm:$0xee]  ;;  %v11009_v53 = vld [vmem:[%s13160_s2 + $0x3d0] sm:$0xff]  }
 0x344   : > { %9747 = vmatpush3.bf16.msra.mxu1 %v10990_v61  ;;  %v12774_v14 = vrot.slane %v4717_v5, 4  ;;  %v4838_v61 = vld [vmem:[#allocation4 + $0x30] sm:$0xee]  ;;  %v9307_v56 = vrot.slane %v4840_v39, 9  ;;  %v4844_v26 = vld [vmem:[#allocation4 + $0x60] sm:$0xee] }
 0x345   : > { %9748 = vmatprep.subr.bf16.mxu1 %v10993_v34  ;;  %v4202_v34 = vrot.slane %v12716_v55, 4  ;;  %v9306_v2 = vrot.slane %v4838_v61, 9  ;;  %v4845_v5 = vld [vmem:[#allocation4 + $0x68] sm:$0x11]  ;;  %v12850_v39 = vld [vmem:[#allocation4 + $0x70] sm:$0xff] }
 0x346   : > { %9779 = vmatpush3.bf16.msra.mxu0 %v11000_v28  ;;  %v4723_v47 = vsel %vm11627_vm2, %v12774_v14, %v4722_v46  ;;  %v11015_v28 = vld [vmem:[%s13160_s2 + $0x368] sm:$0xff]   ;;  %v9308_v46 = vrot.slane %v4842_v31, 9  ;;  %v11019_v55 = vld [vmem:[%s13160_s2 + $0x370] sm:$0xff]  }
 0x347   : > { %6750 = vmatmul.mubr.bf16.gmra.mrb[28].mxu1 %v9294_v1  ;;  %9780 = vmatprep.subr.bf16.mxu0 %v11003_v15  ;;  %v9299_v51 = vcombine.high %v4723_v47, %v4737_v36  ;;  %v9298_v52 = vcombine.low %v4723_v47, %v4737_v36  ;;  %v4741_v1 = vrot.slane %v4739_v38, 4  ;;  %v4279_v61 = vld [vmem:[#allocation4 + $0x88] sm:$0x11]  ;;  %v11023_v38 = vld [vmem:[%s13160_s2 + $0x378] sm:$0xff]   ;;  %v11028_v31 = vld [vmem:[%s13160_s2 + $0x3b0] sm:$0xff]  }
 0x348   : > { %9749 = vmatpush3.bf16.msra.mxu1 %v10994_v37  ;;  %6855 = vmatprep.mubr.bf16.mxu1 %v9313_v22  ;;  %v4876_v37 = vrot.slane %v4839_v48, 5  ;;  %v4765_v22 = vsel %vm11627_vm2, %v12599_v63, %v4764_v13  ;;  %v11016_v63 = vld [vmem:[%s13160_s2 + $0x328] sm:$0xff]   ;;  %v4280_v48 = vsel %vm12381_vm4, %v4202_v34, %v4279_v61  ;;  %v4776_v34 = vshll.u32 %v4679_v50, 16 }
 0x349   : > { %9750 = vmatprep.subr.bf16.mxu1 %v10997_v40  ;;  %v11008_v40 = vld [vmem:[%s13160_s2 + $0x318] sm:$0xff]   ;;  %6798 = vmatprep.mubr.bf16.mxu0 %v9299_v51  ;;  %v4745_v57 = vor.u32 %v4744_v62, %v4741_v1  ;;  %v4787_v51 = vor.u32 %v4786_v27, %v12796_v49  ;;  %4281 = vst [vmem:[#allocation4 + $0x88] sm:$0x11] %v4280_v48  ;;  %v9310_v62 = vrot.slane %v4846_v10, 9  ;;  %v4996_v61 = vld [vmem:[#allocation4 + $0x28] sm:$0x11] }
 0x34a   : > { %9781 = vmatpush3.bf16.msra.mxu0 %v11004_v20  ;;  %v4877_v3 = vsel %vm11751_vm5, %v9306_v2, %v4876_v37  ;;  %v9309_v20 = vrot.slane %v4844_v26, 9  ;;  %v4767_v37 = vshrl.u32 %v12850_v39, 16  ;;  %v4778_v8 = vrot.slane %v4776_v34, 5  ;;  %v4998_v48 = vld [vmem:[#allocation4 + $0x38] sm:$0x11]  ;;  %v11030_v34 = vld [vmem:[%s13160_s2 + $0x400] sm:$0xff]  }
 0x34b   : > { %6799 = vmatmul.mubr.bf16.gmra.mrb[36].mxu0 %v9298_v52  ;;  %9782 = vmatprep.subr.bf16.mxu0 %v11007_v59  ;;  %v12825_v16 = vrot.slane %v4745_v57, 4  ;;  %v5110_v52 = vshrl.u32 %v12739_v45, 16  ;;  %v5021_v50 = vshll.u32 %v4996_v61, 16  ;;  %v11034_v10 = vld [vmem:[%s13160_s2 + $0x408] sm:$0xff]   ;;  %v5010_v61 = vld [vmem:[#allocation4 + $0x98] sm:$0x11] }
 0x34c   : > { %9751 = vmatpush3.bf16.msra.mxu1 %v10998_v30  ;;  %v4881_v30 = vsel %vm11751_vm5, %v9307_v56, %v4880_v0  ;;  %v4770_v56 = vshll.u32 %v12850_v39, 16  ;;  %v11020_v0 = vld [vmem:[%s13160_s2 + $0x330] sm:$0xff]  }
 0x34d   : > { %9816 = vmatprep.subr.bf16.mxu1 %v11001_v9  ;;  %v9315_v12 = vcombine.high %v4877_v3, %v4881_v30  ;;  %v11011_v9 = vld [vmem:[%s13160_s2 + $0x360] sm:$0xff]   ;;  %v9314_v58 = vcombine.low %v4877_v3, %v4881_v30  ;;  %v4751_v15 = vsel %vm11627_vm2, %v12825_v16, %v4750_v17  ;;  %v11021_v3 = vld [vmem:[%s13160_s2 + $0x3e8] sm:$0xff]   ;;  %v12869_v30 = vrot.slane %v4787_v51, 4 }
 0x34e   : > { %9783 = vmatpush3.bf16.msra.mxu0 %v11008_v40  ;;  %v9300_v36 = vcombine.low %v4751_v15, %v4765_v22  ;;  %v4769_v40 = vrot.slane %v4767_v37, 4  ;;  %v4772_v49 = vrot.slane %v4770_v56, 5  ;;  %v5115_v37 = vrot.slane %v5113_v41, 5  ;;  %v5002_v41 = vld [vmem:[#allocation4 + $0x58] sm:$0x11] }
 0x34f   : > { %6856 = vmatmul.mubr.bf16.vlgmr.msra.gmra.mrb[32].mxu1 %v9312_v44  ;;  %9784 = vmatprep.subr.bf16.mxu0 %v11011_v9  ;;  %v9301_v44 = vcombine.high %v4751_v15, %v4765_v22  ;;  %v4848_v9 = vld [vmem:[#allocation4 + $0x80] sm:$0xee]  ;;  %v5023_v56 = vrot.slane %v5021_v50, 5 }
 0x350   : > { %9817 = vmatpush3.bf16.msra.mxu1 %v11002_v43  ;;  %6863 = vmatprep.mubr.bf16.mxu1 %v9315_v12  ;;  %v4884_v43 = vrot.slane %v4843_v33, 5  ;;  %v4773_v42 = vor.u32 %v4772_v49, %v4769_v40  ;;  %v4847_v12 = vld [vmem:[#allocation4 + $0x78] sm:$0x11]  ;;  %v9311_v13 = vrot.slane %v4848_v9, 9  ;;  %v4939_v22 = vld [vmem:[#allocation4 + $0x20] sm:$0xff] }
 0x351   : > { %9818 = vmatprep.subr.bf16.mxu1 %v11005_v21  ;;  %v4888_v21 = vrot.slane %v4845_v5, 5  ;;  %6806 = vmatprep.mubr.bf16.mxu0 %v9301_v44  ;;  %v4892_v17 = vrot.slane %v4847_v12, 5  ;;  %v5012_v33 = vshrl.u32 %v4939_v22, 16  ;;  %v9321_v44 = vcombine.high %v4939_v22, %v12756_v18  ;;  %v5000_v49 = vld [vmem:[#allocation4 + $0x48] sm:$0x11] }
 0x352   : > { %9785 = vmatpush3.bf16.msra.mxu0 %v11012_v19  ;;  %v4885_v59 = vsel %vm11751_vm5, %v9308_v46, %v4884_v43  ;;  %v12877_v60 = vrot.slane %v4773_v42, 4  ;;  %v11025_v19 = vld [vmem:[%s13160_s2 + $0x3f0] sm:$0xff]   ;;  %v11029_v46 = vld [vmem:[%s13160_s2 + $0x440] sm:$0xff]   ;;  %v5015_v43 = vshll.u32 %v4939_v22, 16 }
 0x353   : > { %9786 = vmatprep.subr.bf16.mxu0 %v11015_v28  ;;  %v4889_v47 = vsel %vm11751_vm5, %v9309_v20, %v4888_v21  ;;  %6807 = vmatmul.mubr.bf16.gmra.mrb[40].mxu0 %v9300_v36  ;;  %v4893_v27 = vsel %vm11751_vm5, %v9310_v62, %v4892_v17  ;;  %v5014_v36 = vrot.slane %v5012_v33, 4  ;;  %v11031_v21 = vld [vmem:[%s13160_s2 + $0x3f8] sm:$0xff]  }
 0x354   : > { %9819 = vmatpush3.bf16.msra.mxu1 %v11006_v11  ;;  %v9317_v11 = vcombine.high %v4885_v59, %v4889_v47  ;;  %v9316_v2 = vcombine.low %v4885_v59, %v4889_v47  ;;  %v4779_v57 = vsel %vm11627_vm2, %v12877_v60, %v4778_v8  ;;  %v11032_v59 = vld [vmem:[%s13160_s2 + $0x3b8] sm:$0xff]  }
 0x355   : > { %9820 = vmatprep.subr.bf16.mxu1 %v11009_v53  ;;  %v11022_v53 = vld [vmem:[%s13160_s2 + $0x3a8] sm:$0xff]  }
 0x356   : > { %9787 = vmatpush3.bf16.msra.mxu0 %v11016_v63 }
 0x357   : > { %6864 = vmatmul.mubr.bf16.gmra.mrb[36].mxu1 %v9314_v58  ;;  %9788 = vmatprep.subr.bf16.mxu0 %v11019_v55  ;;  %v4849_v58 = vld [vmem:[#allocation4 + $0x88] sm:$0x11]  ;;  %v9320_v55 = vcombine.low %v4939_v22, %v12756_v18 }
 0x358   : > { %9821 = vmatpush3.bf16.msra.mxu1 %v11010_v7  ;;  %6871 = vmatprep.mubr.bf16.mxu1 %v9317_v11  ;;  %v4681_v7 = vld [vmem:[#allocation4 + $0x88] sm:$0x11]  ;;  %v5035_v11 = vshll.u32 %v4998_v48, 16 }
 0x359   : > { %9822 = vmatprep.subr.bf16.mxu1 %v11013_v24  ;;  %v4790_v1 = vshll.u32 %v4681_v7, 16  ;;  %v4896_v24 = vrot.slane %v4849_v58, 5  ;;  %v11037_v7 = vld [vmem:[%s13160_s2 + $0x450] sm:$0xff]   ;;  %v12929_v58 = vld [vmem:[#allocation4 + $0x60] sm:$0xff] }
 0x35a   : > { %9789 = vmatpush3.bf16.msra.mxu0 %v11020_v0  ;;  %v5037_v0 = vrot.slane %v5035_v11, 5  ;;  %v5119_v11 = vshll.u32 %v5010_v61, 16 }
 0x35b   : > { %9790 = vmatprep.subr.bf16.mxu0 %v11023_v38  ;;  %v4897_v28 = vsel %vm11751_vm5, %v9311_v13, %v4896_v24  ;;  %v5004_v24 = vld [vmem:[#allocation4 + $0x68] sm:$0x11] }
 0x35c   : > { %9823 = vmatpush3.bf16.msra.mxu1 %v11014_v25  ;;  %v4792_v25 = vrot.slane %v4790_v1, 5  ;;  %v9319_v15 = vcombine.high %v4893_v27, %v4897_v28  ;;  %v9318_v5 = vcombine.low %v4893_v27, %v4897_v28  ;;  %v5071_v28 = vshll.u32 %v12929_v58, 16 }
 0x35d   : > { %9824 = vmatprep.subr.bf16.mxu1 %v11017_v6  ;;  %v5017_v6 = vrot.slane %v5015_v43, 5 }
 0x35e   : > { %9791 = vmatpush3.bf16.msra.mxu0 %v11024_v23  ;;  %v4793_v26 = vsel %vm11627_vm2, %v12869_v30, %v4792_v25  ;;  %v5063_v23 = vshll.u32 %v5002_v41, 16  ;;  %v5068_v25 = vshrl.u32 %v12929_v58, 16 }
 0x35f   : > { %6872 = vmatmul.mubr.bf16.gmra.mrb[40].mxu1 %v9316_v2  ;;  %v9303_v20 = vcombine.high %v4779_v57, %v4793_v26  ;;  %v9302_v63 = vcombine.low %v4779_v57, %v4793_v26  ;;  %9856 = vmatprep.subr.bf16.mxu0 %v11029_v46  ;;  %v5018_v47 = vor.u32 %v5017_v6, %v5014_v36  ;;  %v5112_v2 = vrot.slane %v5110_v52, 4  ;;  %v5006_v57 = vld [vmem:[#allocation4 + $0x78] sm:$0x11]  ;;  %v11038_v26 = vld [vmem:[%s13160_s2 + $0x410] sm:$0xff]  }
 0x360   : > { %9825 = vmatpush3.bf16.msra.mxu1 %v11018_v35  ;;  %6879 = vmatprep.mubr.bf16.mxu1 %v9319_v15  ;;  %v4941_v35 = vld [vmem:[#allocation4 + $0x40] sm:$0xff]  ;;  %v5038_v52 = vsel %vm11627_vm2, %v12774_v14, %v5037_v0  ;;  %v5065_v62 = vrot.slane %v5063_v23, 5  ;;  %v5091_v33 = vshll.u32 %v5006_v57, 16  ;;  %v11040_v36 = vld [vmem:[%s13160_s2 + $0x418] sm:$0xff]  }
 0x361   : > { %9826 = vmatprep.subr.bf16.mxu1 %v11021_v3  ;;  %6814 = vmatprep.mubr.bf16.mxu0 %v9303_v20  ;;  %v5019_v51 = vrot.slane %v5018_v47, 4  ;;  %v11033_v3 = vld [vmem:[%s13160_s2 + $0x448] sm:$0xff]   ;;  %v5040_v42 = vshrl.u32 %v4941_v35, 16  ;;  %v5043_v18 = vshll.u32 %v4941_v35, 16  ;;  %v9323_v12 = vcombine.high %v4941_v35, %v12800_v4  ;;  %v11043_v47 = vld [vmem:[%s13160_s2 + $0x460] sm:$0xff]  }
 0x362   : > { %6815 = vmatmul.mubr.bf16.gmra.mrb[44].mxu0 %v9302_v63  ;;  %v5066_v13 = vsel %vm11627_vm2, %v12825_v16, %v5065_v62  ;;  %v5116_v27 = vor.u32 %v5115_v37, %v5112_v2  ;;  %v11039_v16 = vld [vmem:[%s13160_s2 + $0x458] sm:$0xff]   ;;  %v5093_v46 = vrot.slane %v5091_v33, 5  ;;  %v9325_v63 = vcombine.high %v12929_v58, %v12850_v39  ;;  %v5163_v37 = vld [vmem:[#allocation4 + $0x20] sm:$0xee]  ;;  %v11048_v62 = vld [vmem:[%s13160_s2 + $0x430] sm:$0xff]  }
 0x363   : > { %6920 = vmatprep.mubr.bf16.mxu0 %v9321_v44  ;;  %v5024_v40 = vsel %vm11627_vm2, %v5019_v51, %v5023_v56  ;;  %v5042_v9 = vrot.slane %v5040_v42, 4  ;;  %v5045_v14 = vrot.slane %v5043_v18, 5  ;;  %v9327_v2 = vcombine.high %v12744_v32, %v12739_v45  ;;  %v5164_v56 = vld [vmem:[#allocation4 + $0x28] sm:$0x11]  ;;  %v5173_v33 = vld [vmem:[#allocation4 + $0x70] sm:$0xee] }
 0x364   : > { %9827 = vmatpush3.bf16.msra.mxu1 %v11022_v53  ;;  %v5049_v53 = vshll.u32 %v5000_v49, 16  ;;  %v9328_v8 = vcombine.low %v5024_v40, %v5038_v52  ;;  %v9329_v38 = vcombine.high %v5024_v40, %v5038_v52  ;;  %v5117_v44 = vrot.slane %v5116_v27, 4  ;;  %v5166_v49 = vld [vmem:[#allocation4 + $0x38] sm:$0x11] }
 0x365   : > { %9828 = vmatprep.subr.bf16.mxu1 %v11025_v19  ;;  %v5046_v17 = vor.u32 %v5045_v14, %v5042_v9  ;;  %v9322_v19 = vcombine.low %v4941_v35, %v12800_v4  ;;  %v5070_v4 = vrot.slane %v5068_v25, 4  ;;  %v5094_v50 = vsel %vm11627_vm2, %v12877_v60, %v5093_v46  ;;  %v5165_v35 = vld [vmem:[#allocation4 + $0x30] sm:$0xee]  ;;  %v11044_v60 = vld [vmem:[%s13160_s2 + $0x420] sm:$0xff]   ;;  %v5168_v9 = vld [vmem:[#allocation4 + $0x48] sm:$0x11] }
 0x366   : > { %v5051_v1 = vrot.slane %v5049_v53, 5  ;;  %v5121_v40 = vrot.slane %v5119_v11, 5  ;;  %v9336_v41 = vrot.slane %v5163_v37, 9  ;;  %v5197_v42 = vrot.slane %v5164_v56, 5  ;;  %v5169_v14 = vld [vmem:[#allocation4 + $0x50] sm:$0xee] }
 0x367   : > { %6880 = vmatmul.mubr.bf16.gmra.mrb[44].mxu1 %v9318_v5  ;;  %v5047_v22 = vrot.slane %v5046_v17, 4  ;;  %v5073_v5 = vrot.slane %v5071_v28, 5  ;;  %v5205_v57 = vrot.slane %v5168_v9, 5  ;;  %v9339_v25 = vrot.slane %v5169_v14, 9  ;;  %v5171_v28 = vld [vmem:[#allocation4 + $0x60] sm:$0xee] }
 0x368   : > { %9829 = vmatpush3.bf16.msra.mxu1 %v11028_v31  ;;  %6985 = vmatprep.mubr.bf16.mxu1 %v9329_v38  ;;  %v5077_v31 = vshll.u32 %v5004_v24, 16  ;;  %v5122_v53 = vsel %vm11627_vm2, %v5117_v44, %v5121_v40  ;;  %v5201_v38 = vrot.slane %v5166_v49, 5  ;;  %v5198_v29 = vsel %vm11751_vm5, %v9336_v41, %v5197_v42  ;;  %v5175_v44 = vld [vmem:[#allocation4 + $0x80] sm:$0xee] }
 0x369   : > { %9830 = vmatprep.subr.bf16.mxu1 %v11031_v21  ;;  %v5052_v15 = vsel %vm11627_vm2, %v5047_v22, %v5051_v1  ;;  %v5074_v21 = vor.u32 %v5073_v5, %v5070_v4  ;;  %v9326_v1 = vcombine.low %v12744_v32, %v12739_v45  ;;  %v11050_v45 = vld [vmem:[%s13160_s2 + $0x438] sm:$0xff]   ;;  %v9341_v46 = vrot.slane %v5173_v33, 9 }
 0x36a   : > { %6921 = vmatmul.mubr.bf16.vlgmr.msra.gmra.mrb[48].mxu0 %v9320_v55  ;;  %v9331_v43 = vcombine.high %v5052_v15, %v5066_v13  ;;  %v9330_v20 = vcombine.low %v5052_v15, %v5066_v13  ;;  %v5079_v6 = vrot.slane %v5077_v31, 5  ;;  %v9324_v55 = vcombine.low %v12929_v58, %v12850_v39  ;;  %v11045_v39 = vld [vmem:[%s13160_s2 + $0x468] sm:$0xff]   ;;  %v5170_v58 = vld [vmem:[#allocation4 + $0x58] sm:$0x11] }
 0x36b   : > { %9857 = vmatpush3.bf16.msra.mxu0 %v11030_v34  ;;  %6928 = vmatprep.mubr.bf16.mxu0 %v9323_v12  ;;  %v5075_v48 = vrot.slane %v5074_v21, 4  ;;  %v11046_v12 = vld [vmem:[%s13160_s2 + $0x428] sm:$0xff]   ;;  %v11049_v13 = vld [vmem:[%s13160_s2 + $0x478] sm:$0xff]   ;;  %v5209_v27 = vrot.slane %v5170_v58, 5  ;;  %v9340_v15 = vrot.slane %v5171_v28, 9 }
 0x36c   : > { %9831 = vmatpush3.bf16.msra.mxu1 %v11032_v59  ;;  %9858 = vmatprep.subr.bf16.mxu0 %v11033_v3  ;;  %v5008_v59 = vld [vmem:[#allocation4 + $0x88] sm:$0x11]  ;;  %v5177_v21 = vld [vmem:[#allocation4 + $0x90] sm:$0xee] }
 0x36d   : > { %v5105_v51 = vshll.u32 %v5008_v59, 16  ;;  %v5080_v34 = vsel %vm11627_vm2, %v5075_v48, %v5079_v6  ;;  %v5210_v22 = vsel %vm11751_vm5, %v9339_v25, %v5209_v27  ;;  %v5172_v31 = vld [vmem:[#allocation4 + $0x68] sm:$0x11]  ;;  %v5178_v6 = vld [vmem:[#allocation4 + $0x98] sm:$0x11] }
 0x36e   : > { %v9333_v3 = vcombine.high %v5080_v34, %v5094_v50  ;;  %v9332_v52 = vcombine.low %v5080_v34, %v5094_v50  ;;  %v5213_v5 = vrot.slane %v5172_v31, 5  ;;  %v9343_v50 = vrot.slane %v5177_v21, 9 }
 0x36f   : > { %6986 = vmatmul.mubr.bf16.vlgmr.msra.gmra.mrb[48].mxu1 %v9328_v8  ;;  %9859 = vmatpush3.bf16.msra.mxu0 %v11034_v10  ;;  %v5107_v0 = vrot.slane %v5105_v51, 5  ;;  %v9337_v8 = vrot.slane %v5165_v35, 9  ;;  %v5225_v51 = vrot.slane %v5178_v6, 5 }
 0x370   : > { %9860 = vmatprep.subr.bf16.mxu0 %v11037_v7  ;;  %6993 = vmatprep.mubr.bf16.mxu1 %v9331_v43  ;;  %v5167_v7 = vld [vmem:[#allocation4 + $0x40] sm:$0xee] }
 0x371   : > { %v5108_v18 = vsel %vm11627_vm2, %v12869_v30, %v5107_v0  ;;  %v11047_v30 = vld [vmem:[%s13160_s2 + $0x470] sm:$0xff]   ;;  %v5202_v23 = vsel %vm11751_vm5, %v9337_v8, %v5201_v38  ;;  %vm11248_vm2 = vmmov 0  }
 0x372   : > { %6929 = vmatmul.mubr.bf16.gmra.mrb[52].mxu0 %v9322_v19  ;;  %v9335_v10 = vcombine.high %v5108_v18, %v5122_v53  ;;  %v9345_v17 = vcombine.high %v5198_v29, %v5202_v23  ;;  %v9338_v19 = vrot.slane %v5167_v7, 9  ;;  %v9334_v24 = vcombine.low %v5108_v18, %v5122_v53 }
 0x373   : > { %9861 = vmatpush3.bf16.msra.mxu0 %v11038_v26  ;;  %6936 = vmatprep.mubr.bf16.mxu0 %v9325_v63  ;;  %v5174_v26 = vld [vmem:[#allocation4 + $0x78] sm:$0x11]  ;;  %v9344_v4 = vcombine.low %v5198_v29, %v5202_v23 }
 0x374   : > { %9862 = vmatprep.subr.bf16.mxu0 %v11039_v16  ;;  %v5206_v32 = vsel %vm11751_vm5, %v9338_v19, %v5205_v57  ;;  %v5217_v43 = vrot.slane %v5174_v26, 5 }
 0x375   : > { %v9347_v16 = vcombine.high %v5206_v32, %v5210_v22  ;;  %v9346_v59 = vcombine.low %v5206_v32, %v5210_v22 }
 0x376   : > { %v5218_v63 = vsel %vm11751_vm5, %v9341_v46, %v5217_v43 }
 0x377   : > { %6994 = vmatmul.mubr.bf16.gmra.mrb[52].mxu1 %v9330_v20  ;;  %9863 = vmatpush3.bf16.msra.mxu0 %v11040_v36  ;;  %v5214_v20 = vsel %vm11751_vm5, %v9340_v15, %v5213_v5  ;;  %v5176_v36 = vld [vmem:[#allocation4 + $0x88] sm:$0x11] }
 0x378   : > { %9864 = vmatprep.subr.bf16.mxu0 %v11043_v47  ;;  %7001 = vmatprep.mubr.bf16.mxu1 %v9333_v3  ;;  %v9349_v61 = vcombine.high %v5214_v20, %v5218_v63  ;;  %v9342_v47 = vrot.slane %v5175_v44, 9  ;;  %v5221_v48 = vrot.slane %v5176_v36, 5  ;;  %v9348_v37 = vcombine.low %v5214_v20, %v5218_v63  ;;  %v9352_v3 = vld [vmem:[#allocation11] ss:$0 sm:$0xff] }
 0x37a   : > { %6937 = vmatmul.mubr.bf16.gmra.mrb[56].mxu0 %v9324_v55  ;;  %v5222_v11 = vsel %vm11751_vm5, %v9342_v47, %v5221_v48 }
 0x37b   : > { %9865 = vmatpush3.bf16.msra.mxu0 %v11044_v60  ;;  %6944 = vmatprep.mubr.bf16.mxu0 %v9327_v2  ;;  %v5226_v2 = vsel %vm11751_vm5, %v9343_v50, %v5225_v51  ;;  %vm7098_vm5 = vcmask 523264  }
 0x37c   : > { %9866 = vmatprep.subr.bf16.mxu0 %v11045_v39  ;;  %v9351_v56 = vcombine.high %v5222_v11, %v5226_v2  ;;  %v9350_v35 = vcombine.low %v5222_v11, %v5226_v2  ;;  %v11247_v11 = vmov 0.0|0.0   ;;  %vm13032_vm6 = vmpackc.low %vm7098_vm5, %vm7098_vm5 }
 0x37d   : > { %9924 = vmatprep.subr.bf16.mxu1 %v11247_v11 }
 0x37f   : > { %7002 = vmatmul.mubr.bf16.gmra.mrb[56].mxu1 %v9332_v52  ;;  %9867 = vmatpush3.bf16.msra.mxu0 %v11046_v12 }
 0x380   : > { %7009 = vmatprep.mubr.bf16.mxu1 %v9335_v10  ;;  %9868 = vmatprep.subr.bf16.mxu0 %v11047_v30 }
 0x382   : > { %6945 = vmatmul.mubr.bf16.gmra.mrb[60].mxu0 %v9326_v1 }
 0x383   : > { %9869 = vmatpush3.bf16.msra.mxu0 %v11048_v62  ;;  %7050 = vmatprep.mubr.bf16.mxu0 %v9345_v17 }
 0x384   : > { %9870 = vmatprep.subr.bf16.mxu0 %v11049_v13 }
 0x387   : > { %7010 = vmatmul.mubr.bf16.gmra.mrb[60].mxu1 %v9334_v24  ;;  %9871 = vmatpush3.bf16.msra.mxu0 %v11050_v45 }
 0x38a   : > { %7051 = vmatmul.mubr.bf16.vlgmr.msra.gmra.mrb[64].mxu0 %v9344_v4 }
 0x38b   : > { %7058 = vmatprep.mubr.bf16.mxu0 %v9347_v16 }
 0x392   : > { %7059 = vmatmul.mubr.bf16.gmra.mrb[68].mxu0 %v9346_v59 }
 0x393   : > { %7066 = vmatprep.mubr.bf16.mxu0 %v9349_v61 }
 0x39a   : > { %7067 = vmatmul.mubr.bf16.gmra.mrb[72].mxu0 %v9348_v37 }
 0x39b   : > { %7074 = vmatprep.mubr.bf16.mxu0 %v9351_v56 }
 0x3a2   : > { %7075 = vmatmul.mubr.bf16.gmra.mrb[76].mxu0 %v9350_v35 }
 0x3cd   : > { %v9552_v55 = vpop.f32.mrb[0].mxu0 }
 0x3ce   : > { %v9553_v34 = vpop.f32.mrb[1].mxu0 }
 0x3cf   : > { %v9554_v0 = vadd.f32 %v9553_v34, %v9552_v55  ;;  %v9555_v40 = vpop.f32.mrb[2].mxu0 }
 0x3d0   : > { %v9556_v49 = vpop.f32.mrb[3].mxu0 }
 0x3d1   : > { %v9557_v60 = vadd.f32 %v9556_v49, %v9555_v40  ;;  %v6533_v41 = vadd.f32 %v9554_v0, %v9352_v3 }
 0x3d2   : > { %v9592_v42 = vpop.f32.mrb[0].mxu1 }
 0x3d3   : > { %v9593_v18 = vpop.f32.mrb[1].mxu1  ;;  %v6536_v8 = vadd.f32 %v9557_v60, %v9352_v3 }
 0x3d4   : > { %v9594_v38 = vadd.f32 %v9593_v18, %v9592_v42  ;;  %v9595_v10 = vpop.f32.mrb[2].mxu1 }
 0x3d5   : > { %v9558_v52 = vpop.f32.mrb[4].mxu0  ;;  %v9596_v30 = vpop.f32.mrb[3].mxu1 }
 0x3d6   : > { %v9559_v39 = vpop.f32.mrb[5].mxu0  ;;  %v6598_v23 = vadd.f32 %v9594_v38, %v6533_v41  ;;  %v9597_v7 = vadd.f32 %v9596_v30, %v9595_v10 }
 0x3d7   : > { %v9560_v54 = vadd.f32 %v9559_v39, %v9558_v52  ;;  %v9561_v53 = vpop.f32.mrb[6].mxu0 }
 0x3d8   : > { %v9562_v12 = vpop.f32.mrb[7].mxu0  ;;  %v6601_v9 = vadd.f32 %v9597_v7, %v6536_v8 }
 0x3d9   : > { %v9563_v29 = vadd.f32 %v9562_v12, %v9561_v53  ;;  %v6541_v14 = vadd.f32 %v9560_v54, %v9352_v3 }
 0x3db   : > { %v6544_v17 = vadd.f32 %v9563_v29, %v9352_v3 }
 0x3df   : > { %v9564_v62 = vpop.f32.mrb[8].mxu0 }
 0x3e0   : > { %v9565_v24 = vpop.f32.mrb[9].mxu0 }
 0x3e1   : > { %v9598_v58 = vpop.f32.mrb[4].mxu1  ;;  %v9566_v57 = vadd.f32 %v9565_v24, %v9564_v62  ;;  %v9567_v27 = vpop.f32.mrb[10].mxu0 }
 0x3e2   : > { %v9599_v1 = vpop.f32.mrb[5].mxu1  ;;  %v9568_v22 = vpop.f32.mrb[11].mxu0 }
 0x3e3   : > { %v9600_v19 = vadd.f32 %v9599_v1, %v9598_v58  ;;  %v9601_v13 = vpop.f32.mrb[6].mxu1  ;;  %v9569_v28 = vadd.f32 %v9568_v22, %v9567_v27  ;;  %v6549_v26 = vadd.f32 %v9566_v57, %v9352_v3 }
 0x3e4   : > { %v9602_v25 = vpop.f32.mrb[7].mxu1 }
 0x3e5   : > { %v6606_v45 = vadd.f32 %v9600_v19, %v6541_v14  ;;  %v9603_v32 = vadd.f32 %v9602_v25, %v9601_v13  ;;  %v6552_v43 = vadd.f32 %v9569_v28, %v9352_v3 }
 0x3e7   : > { %v6609_v31 = vadd.f32 %v9603_v32, %v6544_v17 }
 0x3ec   : > { %v9570_v33 = vpop.f32.mrb[12].mxu0 }
 0x3ed   : > { %v9604_v4 = vpop.f32.mrb[8].mxu1  ;;  %v9571_v16 = vpop.f32.mrb[13].mxu0 }
 0x3ee   : > { %v9605_v15 = vpop.f32.mrb[9].mxu1  ;;  %v9572_v5 = vadd.f32 %v9571_v16, %v9570_v33  ;;  %v9573_v46 = vpop.f32.mrb[14].mxu0 }
 0x3ef   : > { %v9606_v20 = vadd.f32 %v9605_v15, %v9604_v4  ;;  %v9607_v63 = vpop.f32.mrb[10].mxu1  ;;  %v9574_v44 = vpop.f32.mrb[15].mxu0 }
 0x3f0   : > { %v9608_v36 = vpop.f32.mrb[11].mxu1  ;;  %v9575_v21 = vadd.f32 %v9574_v44, %v9573_v46  ;;  %v6557_v35 = vadd.f32 %v9572_v5, %v9352_v3  ;;  %v11249_v44 = vmov 0.0  }
 0x3f1   : > { %v6614_v6 = vadd.f32 %v9606_v20, %v6549_v26  ;;  %v9609_v59 = vadd.f32 %v9608_v36, %v9607_v63  ;;  %9921 = vmatprep.mubr.msk.f32.mxu1 %vm11248_vm2, %v11249_v44  ;;  %7590 = vmatprep.mubr.f32.mxu0 %v11249_v44 }
 0x3f2   : > { %v6560_v40 = vadd.f32 %v9575_v21, %v9352_v3 }
 0x3f3   : > { %v6617_v61 = vadd.f32 %v9609_v59, %v6552_v43 }
 0x3f4   : > { %v9632_v47 = vpop.f32.mrb[16].mxu0 }
 0x3f5   : > { %v9633_v48 = vpop.f32.mrb[17].mxu0 }
 0x3f6   : > { %v9634_v50 = vadd.f32 %v9633_v48, %v9632_v47  ;;  %v9635_v51 = vpop.f32.mrb[18].mxu0 }
 0x3f7   : > { %v9636_v2 = vpop.f32.mrb[19].mxu0 }
 0x3f8   : > { %v6663_v37 = vadd.f32 %v9634_v50, %v6598_v23  ;;  %v9637_v56 = vadd.f32 %v9636_v2, %v9635_v51  ;;  %v7092_v51 = vld [vmem:[%s13164_s6] sm:$0xf] }
 0x3f9   : > { %v7199_v2 = vld [vmem:[#allocation14 + $0x18] sm:$0xff]  ;;  %7095 = vperm.xlu0 %10900, %v7092_v51  }
 0x3fa   : > { %v9610_v55 = vpop.f32.mrb[12].mxu1  ;;  %v6666_v0 = vadd.f32 %v9637_v56, %v6601_v9 }
 0x3fb   : > { %v9611_v34 = vpop.f32.mrb[13].mxu1 }
 0x3fc   : > { %v9612_v49 = vadd.f32 %v9611_v34, %v9610_v55  ;;  %v9613_v60 = vpop.f32.mrb[14].mxu1  ;;  %v9638_v41 = vpop.f32.mrb[20].mxu0  ;;  %v7198_v55 = vld [vmem:[#allocation14 + $0x10] sm:$0xff] }
 0x3fd   : > { %v9614_v52 = vpop.f32.mrb[15].mxu1  ;;  %v9639_v18 = vpop.f32.mrb[21].mxu0  ;;  %v7230_v34 = vld [vmem:[#allocation14 + $0x110] sm:$0xff] }
 0x3fe   : > { %v6622_v42 = vadd.f32 %v9612_v49, %v6557_v35  ;;  %v9615_v39 = vadd.f32 %v9614_v52, %v9613_v60  ;;  %v9640_v54 = vadd.f32 %v9639_v18, %v9638_v41  ;;  %v9641_v53 = vpop.f32.mrb[22].mxu0  ;;  %v7295_v49 = vld [vmem:[#allocation14 + $0x318] sm:$0xff]  ;;  %v7262_v60 = vld [vmem:[#allocation14 + $0x210] sm:$0xff] }
 0x3ff   : > { %v9642_v38 = vpop.f32.mrb[23].mxu0  ;;  %v7294_v52 = vld [vmem:[#allocation14 + $0x310] sm:$0xff]  ;;  %v7359_v18 = vld [vmem:[#allocation14 + $0x518] sm:$0xff] }
 0x400   : > { %v6625_v8 = vadd.f32 %v9615_v39, %v6560_v40  ;;  %v6671_v10 = vadd.f32 %v9640_v54, %v6606_v45  ;;  %v9643_v12 = vadd.f32 %v9642_v38, %v9641_v53  ;;  %v9958_v40 = vpack.c.bf16 %v7230_v34, %v7198_v55  ;;  %v7327_v39 = vld [vmem:[#allocation14 + $0x418] sm:$0xff]  ;;  %v7326_v53 = vld [vmem:[#allocation14 + $0x410] sm:$0xff] }
 0x401   : > { %v9964_v54 = vpack.c.bf16 %v7359_v18, %v7327_v39 }
 0x402   : > { %v9672_v30 = vpop.f32.mrb[16].mxu1  ;;  %v6674_v23 = vadd.f32 %v9643_v12, %v6609_v31 }
 0x403   : > { %v9673_v29 = vpop.f32.mrb[17].mxu1 }
 0x404   : > { %v9674_v7 = vadd.f32 %v9673_v29, %v9672_v30  ;;  %v9675_v14 = vpop.f32.mrb[18].mxu1  ;;  %v9644_v3 = vpop.f32.mrb[24].mxu0 }
 0x405   : > { %v9676_v9 = vpop.f32.mrb[19].mxu1  ;;  %v9645_v62 = vpop.f32.mrb[25].mxu0 }
 0x406   : > { %v13007_v58 = vadd.f32 %v9674_v7, %v6663_v37  ;;  %v9677_v1 = vadd.f32 %v9676_v9, %v9675_v14  ;;  %v9646_v17 = vadd.f32 %v9645_v62, %v9644_v3  ;;  %v9647_v19 = vpop.f32.mrb[26].mxu0  ;;  %v7231_v37 = vld [vmem:[#allocation14 + $0x118] sm:$0xff] }
 0x407   : > { %v9648_v24 = vpop.f32.mrb[27].mxu0  ;;  %v9956_v35 = vpack.c.bf16 %v7231_v37, %v7199_v2  ;;  %v7423_v62 = vld [vmem:[#allocation14 + $0x718] sm:$0xff] }
 0x408   : > { %v13009_v13 = vadd.f32 %v9677_v1, %v6666_v0  ;;  %v6679_v57 = vadd.f32 %v9646_v17, %v6614_v6  ;;  %v9649_v25 = vadd.f32 %v9648_v24, %v9647_v19  ;;  %v7263_v0 = vld [vmem:[#allocation14 + $0x218] sm:$0xff]  ;;  %v7390_v17 = vld [vmem:[#allocation14 + $0x610] sm:$0xff] }
 0x409   : > { %9957 = vmatprep.subr.bf16.mxu0 %v9956_v35  ;;  %v9960_v41 = vpack.c.bf16 %v7295_v49, %v7263_v0  ;;  %v7391_v1 = vld [vmem:[#allocation14 + $0x618] sm:$0xff] }
 0x40a   : > { %v9678_v27 = vpop.f32.mrb[20].mxu1  ;;  %v6682_v32 = vadd.f32 %v9649_v25, %v6617_v61  ;;  %9959 = vmatpush1.bf16.msra.mxu0 %v9958_v40  ;;  %v9968_v25 = vpack.c.bf16 %v7423_v62, %v7391_v1 }
 0x40b   : > { %v9679_v45 = vpop.f32.mrb[21].mxu1  ;;  %9961 = vmatprep.subr.bf16.mxu0 %v9960_v41 }
 0x40c   : > { %v9680_v22 = vadd.f32 %v9679_v45, %v9678_v27  ;;  %v9681_v28 = vpop.f32.mrb[22].mxu1  ;;  %v9650_v33 = vpop.f32.mrb[28].mxu0  ;;  %v7422_v27 = vld [vmem:[#allocation14 + $0x710] sm:$0xff] }
 0x40d   : > { %v9682_v31 = vpop.f32.mrb[23].mxu1  ;;  %v9651_v16 = vpop.f32.mrb[29].mxu0 }
 0x40e   : > { %v13011_v26 = vadd.f32 %v9680_v22, %v6671_v10  ;;  %v9683_v4 = vadd.f32 %v9682_v31, %v9681_v28  ;;  %v9652_v15 = vadd.f32 %v9651_v16, %v9650_v33  ;;  %v9653_v5 = vpop.f32.mrb[30].mxu0  ;;  %v9970_v28 = vpack.c.bf16 %v7422_v27, %v7390_v17 }
 0x40f   : > { %v9654_v43 = vpop.f32.mrb[31].mxu0 }
 0x410   : > { %v13013_v46 = vadd.f32 %v9683_v4, %v6674_v23  ;;  %v6687_v20 = vadd.f32 %v9652_v15, %v6622_v42  ;;  %v9655_v63 = vadd.f32 %v9654_v43, %v9653_v5  ;;  %v9962_v42 = vpack.c.bf16 %v7294_v52, %v7262_v60 }
 0x412   : > { %v9684_v36 = vpop.f32.mrb[24].mxu1  ;;  %v6690_v6 = vadd.f32 %v9655_v63, %v6625_v8  ;;  %v7358_v8 = vld [vmem:[#allocation14 + $0x510] sm:$0xff]  ;;  %9963 = vmatpush1.bf16.msra.mxu0 %v9962_v42 }
 0x413   : > { %v9685_v21 = vpop.f32.mrb[25].mxu1  ;;  %v9966_v7 = vpack.c.bf16 %v7358_v8, %v7326_v53  ;;  %9965 = vmatprep.subr.bf16.mxu0 %v9964_v54 }
 0x414   : > { %v9686_v59 = vadd.f32 %v9685_v21, %v9684_v36  ;;  %v9687_v61 = vpop.f32.mrb[26].mxu1  ;;  %v9712_v38 = vpop.f32.mrb[32].mxu0 }
 0x415   : > { %v9688_v47 = vpop.f32.mrb[27].mxu1  ;;  %v9713_v12 = vpop.f32.mrb[33].mxu0 }
 0x416   : > { %v13017_v48 = vadd.f32 %v9686_v59, %v6679_v57  ;;  %v9689_v50 = vadd.f32 %v9688_v47, %v9687_v61  ;;  %v9714_v29 = vadd.f32 %v9713_v12, %v9712_v38  ;;  %v9715_v23 = vpop.f32.mrb[34].mxu0  ;;  %9967 = vmatpush1.bf16.msra.mxu0 %v9966_v7 }
 0x417   : > { %v9716_v3 = vpop.f32.mrb[35].mxu0  ;;  %9969 = vmatprep.subr.bf16.mxu0 %v9968_v25 }
 0x418   : > { %v13022_v56 = vadd.f32 %v9689_v50, %v6682_v32  ;;  %v6793_v24 = vadd.f32 %v9714_v29, %v13007_v58  ;;  %v9717_v57 = vadd.f32 %v9716_v3, %v9715_v23 }
 0x41a   : > { %v9690_v10 = vpop.f32.mrb[28].mxu1  ;;  %v6796_v22 = vadd.f32 %v9717_v57, %v13009_v13  ;;  %9971 = vmatpush1.bf16.msra.mxu0 %v9970_v28 }
 0x41b   : > { %v9691_v30 = vpop.f32.mrb[29].mxu1 }
 0x41c   : > { %v9692_v14 = vadd.f32 %v9691_v30, %v9690_v10  ;;  %v9693_v9 = vpop.f32.mrb[30].mxu1 }
 0x41d   : > { %v9694_v19 = vpop.f32.mrb[31].mxu1 }
 0x41e   : > { %v6752_v45 = vadd.f32 %v9692_v14, %v6687_v20  ;;  %v9695_v32 = vadd.f32 %v9694_v19, %v9693_v9  ;;  %v9718_v15 = vpop.f32.mrb[36].mxu0 }
 0x41f   : > { %v9719_v43 = vpop.f32.mrb[37].mxu0 }
 0x420   : > { %v6755_v31 = vadd.f32 %v9695_v32, %v6690_v6  ;;  %v9720_v36 = vadd.f32 %v9719_v43, %v9718_v15  ;;  %v9721_v59 = vpop.f32.mrb[38].mxu0 }
 0x421   : > { %v9722_v20 = vpop.f32.mrb[39].mxu0 }
 0x422   : > { %v9752_v33 = vpop.f32.mrb[32].mxu1  ;;  %v6801_v61 = vadd.f32 %v9720_v36, %v13011_v26  ;;  %v9723_v47 = vadd.f32 %v9722_v20, %v9721_v59 }
 0x423   : > { %v9753_v4 = vpop.f32.mrb[33].mxu1 }
 0x424   : > { %v9754_v16 = vadd.f32 %v9753_v4, %v9752_v33  ;;  %v9755_v5 = vpop.f32.mrb[34].mxu1  ;;  %v6804_v6 = vadd.f32 %v9723_v47, %v13013_v46 }
 0x425   : > { %v9756_v63 = vpop.f32.mrb[35].mxu1 }
 0x426   : > { %v6858_v58 = vadd.f32 %v9754_v16, %v6793_v24  ;;  %v9757_v21 = vadd.f32 %v9756_v63, %v9755_v5  ;;  %v9724_v0 = vpop.f32.mrb[40].mxu0 }
 0x427   : > { %v9725_v49 = vpop.f32.mrb[41].mxu0 }
 0x428   : > { %v6861_v13 = vadd.f32 %v9757_v21, %v6796_v22  ;;  %v9726_v60 = vadd.f32 %v9725_v49, %v9724_v0  ;;  %v9727_v52 = vpop.f32.mrb[42].mxu0 }
 0x429   : > { %v9728_v41 = vpop.f32.mrb[43].mxu0 }
 0x42a   : > { %v9758_v50 = vpop.f32.mrb[36].mxu1  ;;  %v6809_v26 = vadd.f32 %v9726_v60, %v13017_v48  ;;  %v9729_v39 = vadd.f32 %v9728_v41, %v9727_v52 }
 0x42b   : > { %v9759_v51 = vpop.f32.mrb[37].mxu1 }
 0x42c   : > { %v9760_v2 = vadd.f32 %v9759_v51, %v9758_v50  ;;  %v9761_v37 = vpop.f32.mrb[38].mxu1  ;;  %v6812_v53 = vadd.f32 %v9729_v39, %v13022_v56 }
 0x42d   : > { %v9762_v35 = vpop.f32.mrb[39].mxu1 }
 0x42e   : > { %v6866_v55 = vadd.f32 %v9760_v2, %v6801_v61  ;;  %v9763_v34 = vadd.f32 %v9762_v35, %v9761_v37 }
 0x430   : > { %v6869_v40 = vadd.f32 %v9763_v34, %v6804_v6 }
 0x432   : > { %v9764_v42 = vpop.f32.mrb[40].mxu1 }
 0x433   : > { %v9765_v18 = vpop.f32.mrb[41].mxu1 }
 0x434   : > { %v9766_v54 = vadd.f32 %v9765_v18, %v9764_v42  ;;  %v9767_v46 = vpop.f32.mrb[42].mxu1 }
 0x435   : > { %v9768_v8 = vpop.f32.mrb[43].mxu1  ;;  %v9730_v29 = vpop.f32.mrb[44].mxu0 }
 0x436   : > { %v6874_v38 = vadd.f32 %v9766_v54, %v6809_v26  ;;  %v9769_v10 = vadd.f32 %v9768_v8, %v9767_v46  ;;  %v9731_v7 = vpop.f32.mrb[45].mxu0 }
 0x437   : > { %v9732_v3 = vadd.f32 %v9731_v7, %v9730_v29  ;;  %v9733_v1 = vpop.f32.mrb[46].mxu0 }
 0x438   : > { %v6877_v12 = vadd.f32 %v9769_v10, %v6812_v53  ;;  %v9734_v48 = vpop.f32.mrb[47].mxu0 }
 0x439   : > { %v6817_v19 = vadd.f32 %v9732_v3, %v6752_v45  ;;  %v9735_v24 = vadd.f32 %v9734_v48, %v9733_v1 }
 0x43a   : > { %v9770_v30 = vpop.f32.mrb[44].mxu1 }
 0x43b   : > { %v9771_v23 = vpop.f32.mrb[45].mxu1  ;;  %v6820_v57 = vadd.f32 %v9735_v24, %v6755_v31 }
 0x43c   : > { %v9772_v14 = vadd.f32 %v9771_v23, %v9770_v30  ;;  %v9773_v9 = vpop.f32.mrb[46].mxu1 }
 0x43d   : > { %v9774_v62 = vpop.f32.mrb[47].mxu1  ;;  %v9792_v56 = vpop.f32.mrb[48].mxu0 }
 0x43e   : > { %v9775_v17 = vadd.f32 %v9774_v62, %v9773_v9  ;;  %v6882_v25 = vadd.f32 %v9772_v14, %v6817_v19  ;;  %v9793_v32 = vpop.f32.mrb[49].mxu0 }
 0x43f   : > { %v9794_v22 = vadd.f32 %v9793_v32, %v9792_v56  ;;  %v9795_v28 = vpop.f32.mrb[50].mxu0 }
 0x440   : > { %v6885_v27 = vadd.f32 %v9775_v17, %v6820_v57  ;;  %v9796_v4 = vpop.f32.mrb[51].mxu0 }
 0x441   : > { %v6923_v15 = vadd.f32 %v9794_v22, %v6858_v58  ;;  %v9797_v5 = vadd.f32 %v9796_v4, %v9795_v28 }
 0x442   : > { %v9832_v33 = vpop.f32.mrb[48].mxu1 }
 0x443   : > { %v9833_v16 = vpop.f32.mrb[49].mxu1  ;;  %v6926_v21 = vadd.f32 %v9797_v5, %v6861_v13 }
 0x444   : > { %v9834_v43 = vadd.f32 %v9833_v16, %v9832_v33  ;;  %v9835_v63 = vpop.f32.mrb[50].mxu1 }
 0x445   : > { %v9836_v36 = vpop.f32.mrb[51].mxu1  ;;  %v9798_v45 = vpop.f32.mrb[52].mxu0 }
 0x446   : > { %v6988_v59 = vadd.f32 %v9834_v43, %v6923_v15  ;;  %v9837_v20 = vadd.f32 %v9836_v36, %v9835_v63  ;;  %v9799_v31 = vpop.f32.mrb[53].mxu0 }
 0x447   : > { %v9800_v47 = vadd.f32 %v9799_v31, %v9798_v45  ;;  %v9801_v6 = vpop.f32.mrb[54].mxu0 }
 0x448   : > { %v6991_v61 = vadd.f32 %v9837_v20, %v6926_v21  ;;  %v9802_v51 = vpop.f32.mrb[55].mxu0 }
 0x449   : > { %v6931_v37 = vadd.f32 %v9800_v47, %v6866_v55  ;;  %v9803_v35 = vadd.f32 %v9802_v51, %v9801_v6 }
 0x44a   : > { %v9838_v50 = vpop.f32.mrb[52].mxu1 }
 0x44b   : > { %v9839_v2 = vpop.f32.mrb[53].mxu1  ;;  %v6934_v49 = vadd.f32 %v9803_v35, %v6869_v40 }
 0x44c   : > { %v9840_v34 = vadd.f32 %v9839_v2, %v9838_v50  ;;  %v9841_v0 = vpop.f32.mrb[54].mxu1 }
 0x44d   : > { %v9842_v58 = vpop.f32.mrb[55].mxu1  ;;  %v9804_v41 = vpop.f32.mrb[56].mxu0 }
 0x44e   : > { %v6996_v60 = vadd.f32 %v9840_v34, %v6931_v37  ;;  %v9843_v52 = vadd.f32 %v9842_v58, %v9841_v0  ;;  %v9805_v42 = vpop.f32.mrb[57].mxu0 }
 0x44f   : > { %v9806_v26 = vadd.f32 %v9805_v42, %v9804_v41  ;;  %v9807_v39 = vpop.f32.mrb[58].mxu0 }
 0x450   : > { %v6999_v13 = vadd.f32 %v9843_v52, %v6934_v49  ;;  %v9808_v54 = vpop.f32.mrb[59].mxu0 }
 0x451   : > { %v6939_v53 = vadd.f32 %v9806_v26, %v6874_v38  ;;  %v9809_v8 = vadd.f32 %v9808_v54, %v9807_v39 }
 0x452   : > { %v9844_v18 = vpop.f32.mrb[56].mxu1 }
 0x453   : > { %v9845_v46 = vpop.f32.mrb[57].mxu1  ;;  %v6942_v29 = vadd.f32 %v9809_v8, %v6877_v12 }
 0x454   : > { %v9846_v10 = vadd.f32 %v9845_v46, %v9844_v18  ;;  %v9847_v30 = vpop.f32.mrb[58].mxu1 }
 0x455   : > { %v9848_v55 = vpop.f32.mrb[59].mxu1  ;;  %v9810_v14 = vpop.f32.mrb[60].mxu0 }
 0x456   : > { %v7004_v23 = vadd.f32 %v9846_v10, %v6939_v53  ;;  %v9849_v7 = vadd.f32 %v9848_v55, %v9847_v30  ;;  %v9811_v9 = vpop.f32.mrb[61].mxu0 }
 0x457   : > { %v9812_v3 = vadd.f32 %v9811_v9, %v9810_v14  ;;  %v9813_v1 = vpop.f32.mrb[62].mxu0 }
 0x458   : > { %v7007_v40 = vadd.f32 %v9849_v7, %v6942_v29  ;;  %v9814_v48 = vpop.f32.mrb[63].mxu0  ;;  %v7197_v29 = vld [vmem:[#allocation14 + $0x8] sm:$0xff] }
 0x459   : > { %v6947_v19 = vadd.f32 %v9812_v3, %v6882_v25  ;;  %v9815_v24 = vadd.f32 %v9814_v48, %v9813_v1  ;;  %v7196_v3 = vld [vmem:[#allocation14] sm:$0xff]  ;;  %v7293_v48 = vld [vmem:[#allocation14 + $0x308] sm:$0xff] }
 0x45a   : > { %v9850_v62 = vpop.f32.mrb[60].mxu1  ;;  %v7228_v1 = vld [vmem:[#allocation14 + $0x100] sm:$0xff] }
 0x45b   : > { %v9851_v17 = vpop.f32.mrb[61].mxu1  ;;  %v6950_v32 = vadd.f32 %v9815_v24, %v6885_v27 }
 0x45c   : > { %v9852_v57 = vadd.f32 %v9851_v17, %v9850_v62  ;;  %v9853_v56 = vpop.f32.mrb[62].mxu1  ;;  %v7261_v62 = vld [vmem:[#allocation14 + $0x208] sm:$0xff]  ;;  %v7091_v17 = vld [vmem:[#allocation12] sm:$0xf] }
 0x45d   : > { %v9854_v38 = vpop.f32.mrb[63].mxu1  ;;  %v9872_v33 = vpop.f32.mrb[64].mxu0  ;;  %v9944_v24 = vpack.c.bf16 %v7293_v48, %v7261_v62  ;;  %v7392_v48 = vld [vmem:[#allocation14 + $0x620] sm:$0xff] }
 0x45e   : > { %v7012_v22 = vadd.f32 %v9852_v57, %v6947_v19  ;;  %v9855_v28 = vadd.f32 %v9854_v38, %v9853_v56  ;;  %v9873_v4 = vpop.f32.mrb[65].mxu0  ;;  %v9942_v19 = vpack.c.bf16 %v7228_v1, %v7196_v3  ;;  %v7260_v57 = vld [vmem:[#allocation14 + $0x200] sm:$0xff]  ;;  %v7325_v56 = vld [vmem:[#allocation14 + $0x408] sm:$0xff]  ;;  %v7427_v3 = vld [vmem:[#allocation14 + $0x738] sm:$0xff] }
 0x45f   : > { %v9874_v16 = vadd.f32 %v9873_v4, %v9872_v33  ;;  %v9875_v15 = vpop.f32.mrb[66].mxu0  ;;  %v7357_v38 = vld [vmem:[#allocation14 + $0x508] sm:$0xff]  ;;  %v7356_v33 = vld [vmem:[#allocation14 + $0x500] sm:$0xff] }
 0x460   : > { %v7015_v12 = vadd.f32 %v9855_v28, %v6950_v32  ;;  %v9876_v5 = vpop.f32.mrb[67].mxu0  ;;  %v7324_v28 = vld [vmem:[#allocation14 + $0x400] sm:$0xff]  ;;  %v7421_v4 = vld [vmem:[#allocation14 + $0x708] sm:$0xff] }
 0x461   : > { %v7053_v43 = vadd.f32 %v9874_v16, %v6988_v59  ;;  %v9877_v63 = vadd.f32 %v9876_v5, %v9875_v15  ;;  %v9950_v16 = vpack.c.bf16 %v7356_v33, %v7324_v28  ;;  %v7388_v5 = vld [vmem:[#allocation14 + $0x600] sm:$0xff] }
 0x463   : > { %v7056_v36 = vadd.f32 %v9877_v63, %v6991_v61  ;;  %v7083_v21 = vmax.f32 %v7053_v43, 0.0  ;;  %v7420_v43 = vld [vmem:[#allocation14 + $0x700] sm:$0xff] }
 0x464   : > { %v9954_v63 = vpack.c.bf16 %v7420_v43, %v7388_v5  ;;  %v7206_v5 = vld [vmem:[#allocation14 + $0x50] sm:$0xff] }
 0x465   : > { %v7084_v20 = vmax.f32 %v7056_v36, 0.0  ;;  %v9878_v25 = vpop.f32.mrb[68].mxu0  ;;  %v7201_v36 = vld [vmem:[#allocation14 + $0x28] sm:$0xff]  ;;  %v7238_v43 = vld [vmem:[#allocation14 + $0x150] sm:$0xff] }
 0x466   : > { %v9879_v45 = vpop.f32.mrb[69].mxu0 }
 0x467   : > { %v9925_v31 = vpack.c.bf16 %v7084_v20, %v7083_v21  ;;  %v9880_v47 = vadd.f32 %v9879_v45, %v9878_v25  ;;  %v9881_v6 = vpop.f32.mrb[70].mxu0  ;;  %v7233_v21 = vld [vmem:[#allocation14 + $0x128] sm:$0xff]  ;;  %v7203_v20 = vld [vmem:[#allocation14 + $0x38] sm:$0xff] }
 0x468   : > { %v9882_v50 = vpop.f32.mrb[71].mxu0  ;;  %v9972_v25 = vpack.c.bf16 %v7233_v21, %v7201_v36  ;;  %v7235_v45 = vld [vmem:[#allocation14 + $0x138] sm:$0xff]  ;;  %v7301_v36 = vld [vmem:[#allocation14 + $0x348] sm:$0xff] }
 0x469   : > { %v7061_v51 = vadd.f32 %v9880_v47, %v6996_v60  ;;  %v9883_v2 = vadd.f32 %v9882_v50, %v9881_v6  ;;  %9927 = vmatpush3.bf16.xpose.msk.msra.mxu1 %vm13032_vm6, %v9925_v31  ;;  %v9988_v27 = vpack.c.bf16 %v7235_v45, %v7203_v20  ;;  %v7200_v31 = vld [vmem:[#allocation14 + $0x20] sm:$0xff]  ;;  %v7202_v6 = vld [vmem:[#allocation14 + $0x30] sm:$0xff]  ;;  %v7271_v21 = vld [vmem:[#allocation14 + $0x258] sm:$0xff]  ;;  %v10022_v45 = vpack.c.bf16 %v7238_v43, %v7206_v5 }
 0x46a   : > { %9928 = vmatprep.subr.bf16.mxu1 %v11247_v11  ;;  %v7232_v47 = vld [vmem:[#allocation14 + $0x120] sm:$0xff]  ;;  %v7234_v50 = vld [vmem:[#allocation14 + $0x130] sm:$0xff]  ;;  %v7303_v20 = vld [vmem:[#allocation14 + $0x358] sm:$0xff] }
 0x46b   : > { %v7064_v59 = vadd.f32 %v9883_v2, %v6999_v13  ;;  %v7085_v61 = vmax.f32 %v7061_v51, 0.0  ;;  %9989 = vmatprep.subr.bf16.mxu0 %v9988_v27  ;;  %v7265_v51 = vld [vmem:[#allocation14 + $0x228] sm:$0xff]  ;;  %v7268_v27 = vld [vmem:[#allocation14 + $0x240] sm:$0xff] }
 0x46c   : > { %v7337_v5 = vld [vmem:[#allocation14 + $0x468] sm:$0xff] }
 0x46d   : > { %v7086_v37 = vmax.f32 %v7064_v59, 0.0  ;;  %v9884_v35 = vpop.f32.mrb[72].mxu0  ;;  %v7297_v59 = vld [vmem:[#allocation14 + $0x328] sm:$0xff] }
 0x46e   : > { %v9885_v34 = vpop.f32.mrb[73].mxu0  ;;  %v7369_v43 = vld [vmem:[#allocation14 + $0x568] sm:$0xff] }
 0x46f   : > { %v9929_v0 = vpack.c.bf16 %v7086_v37, %v7085_v61  ;;  %v9886_v58 = vadd.f32 %v9885_v34, %v9884_v35  ;;  %v9887_v49 = vpop.f32.mrb[74].mxu0  ;;  %v7267_v61 = vld [vmem:[#allocation14 + $0x238] sm:$0xff]  ;;  %v9974_v34 = vpack.c.bf16 %v7232_v47, %v7200_v31  ;;  %v7300_v31 = vld [vmem:[#allocation14 + $0x340] sm:$0xff] }
 0x470   : > { %v9888_v52 = vpop.f32.mrb[75].mxu0  ;;  %v7299_v37 = vld [vmem:[#allocation14 + $0x338] sm:$0xff] }
 0x471   : > { %v7069_v41 = vadd.f32 %v9886_v58, %v7004_v23  ;;  %v9889_v42 = vadd.f32 %v9888_v52, %v9887_v49  ;;  %9931 = vmatpush3.bf16.xpose.msk.msra.mxu1 %vm13032_vm6, %v9929_v0  ;;  %v7229_v23 = vld [vmem:[#allocation14 + $0x108] sm:$0xff]  ;;  %v9990_v0 = vpack.c.bf16 %v7234_v50, %v7202_v6  ;;  %v7264_v58 = vld [vmem:[#allocation14 + $0x220] sm:$0xff]  ;;  %v10024_v6 = vpack.c.bf16 %v7303_v20, %v7271_v21  ;;  %v7270_v50 = vld [vmem:[#allocation14 + $0x250] sm:$0xff] }
 0x472   : > { %9932 = vmatprep.subr.bf16.mxu1 %v11247_v11  ;;  %v7296_v49 = vld [vmem:[#allocation14 + $0x320] sm:$0xff] }
 0x473   : > { %v7072_v60 = vadd.f32 %v9889_v42, %v7007_v40  ;;  %v7087_v26 = vmax.f32 %v7069_v41, 0.0  ;;  %v9940_v40 = vpack.c.bf16 %v7229_v23, %v7197_v29  ;;  %v9976_v42 = vpack.c.bf16 %v7297_v59, %v7265_v51  ;;  %v7330_v23 = vld [vmem:[#allocation14 + $0x430] sm:$0xff]  ;;  %v7365_v59 = vld [vmem:[#allocation14 + $0x548] sm:$0xff] }
 0x474   : > { %v7302_v51 = vld [vmem:[#allocation14 + $0x350] sm:$0xff] }
 0x475   : > { %v7088_v39 = vmax.f32 %v7072_v60, 0.0  ;;  %v9890_v18 = vpop.f32.mrb[76].mxu0  ;;  %v9992_v60 = vpack.c.bf16 %v7299_v37, %v7267_v61  ;;  %v7335_v61 = vld [vmem:[#allocation14 + $0x458] sm:$0xff] }
 0x476   : > { %v9891_v13 = vpop.f32.mrb[77].mxu0  ;;  %v7367_v37 = vld [vmem:[#allocation14 + $0x558] sm:$0xff] }
 0x477   : > { %v9933_v54 = vpack.c.bf16 %v7088_v39, %v7087_v26  ;;  %v9892_v46 = vadd.f32 %v9891_v13, %v9890_v18  ;;  %v9893_v53 = vpop.f32.mrb[78].mxu0  ;;  %v7266_v26 = vld [vmem:[#allocation14 + $0x230] sm:$0xff]  ;;  %v7329_v18 = vld [vmem:[#allocation14 + $0x428] sm:$0xff] }
 0x478   : > { %v9894_v8 = vpop.f32.mrb[79].mxu0  ;;  %v7096_v2 = vpop.permute.xlu0 %7095  ;;  %v7298_v39 = vld [vmem:[#allocation14 + $0x330] sm:$0xff]  ;;  %v7361_v13 = vld [vmem:[#allocation14 + $0x528] sm:$0xff] }
 0x479   : > { %v7077_v10 = vadd.f32 %v9892_v46, %v7012_v22  ;;  %v9895_v30 = vadd.f32 %v9894_v8, %v9893_v53  ;;  %9935 = vmatpush3.bf16.xpose.msk.msra.mxu1 %vm13032_vm6, %v9933_v54  ;;  %v9948_v22 = vpack.c.bf16 %v7357_v38, %v7325_v56  ;;  %v7331_v54 = vld [vmem:[#allocation14 + $0x438] sm:$0xff]  ;;  %v9978_v53 = vpack.c.bf16 %v7296_v49, %v7264_v58  ;;  %v7205_v56 = vld [vmem:[#allocation14 + $0x48] sm:$0xff]  ;;  %v7364_v58 = vld [vmem:[#allocation14 + $0x540] sm:$0xff] }
 0x47a   : > { %9936 = vmatprep.subr.bf16.mxu1 %v11247_v11  ;;  %v7292_v11 = vld [vmem:[#allocation14 + $0x300] sm:$0xff]  ;;  %v7363_v46 = vld [vmem:[#allocation14 + $0x538] sm:$0xff]  ;;  %v9994_v8 = vpack.c.bf16 %v7298_v39, %v7266_v26  ;;  %v7237_v38 = vld [vmem:[#allocation14 + $0x148] sm:$0xff] }
 0x47b   : > { %v7080_v55 = vadd.f32 %v9895_v30, %v7015_v12  ;;  %v7089_v7 = vmax.f32 %v7077_v10, 0.0  ;;  %v9946_v32 = vpack.c.bf16 %v7292_v11, %v7260_v57  ;;  %v7389_v12 = vld [vmem:[#allocation14 + $0x608] sm:$0xff]  ;;  %v7328_v10 = vld [vmem:[#allocation14 + $0x420] sm:$0xff]  ;;  %v9996_v29 = vpack.c.bf16 %v7363_v46, %v7331_v54  ;;  %v7394_v57 = vld [vmem:[#allocation14 + $0x630] sm:$0xff] }
 0x47c   : > { %v9952_v15 = vpack.c.bf16 %v7421_v4, %v7389_v12  ;;  %v7360_v30 = vld [vmem:[#allocation14 + $0x520] sm:$0xff]  ;;  %v7426_v11 = vld [vmem:[#allocation14 + $0x730] sm:$0xff]  ;;  %v7397_v26 = vld [vmem:[#allocation14 + $0x648] sm:$0xff] }
 0x47d   : > { %v7090_v14 = vmax.f32 %v7080_v55, 0.0  ;;  %v9980_v55 = vpack.c.bf16 %v7361_v13, %v7329_v18  ;;  %v9982_v1 = vpack.c.bf16 %v7360_v30, %v7328_v10  ;;  %v10002_v33 = vpack.c.bf16 %v7426_v11, %v7394_v57  ;;  %v7204_v12 = vld [vmem:[#allocation14 + $0x40] sm:$0xff]  ;;  %v7429_v39 = vld [vmem:[#allocation14 + $0x748] sm:$0xff]  ;;  %v7399_v18 = vld [vmem:[#allocation14 + $0x658] sm:$0xff] }
 0x47e   : > { %v7236_v4 = vld [vmem:[#allocation14 + $0x140] sm:$0xff]  ;;  %v7431_v13 = vld [vmem:[#allocation14 + $0x758] sm:$0xff]  ;;  %v10016_v10 = vpack.c.bf16 %v7429_v39, %v7397_v26  ;;  %v7273_v57 = vld [vmem:[#allocation14 + $0x268] sm:$0xff] }
 0x47f   : > { %v9937_v9 = vpack.c.bf16 %v7090_v14, %v7089_v7  ;;  %v7362_v7 = vld [vmem:[#allocation14 + $0x530] sm:$0xff]  ;;  %v7393_v14 = vld [vmem:[#allocation14 + $0x628] sm:$0xff]  ;;  %v10032_v30 = vpack.c.bf16 %v7431_v13, %v7399_v18  ;;  %v7215_v26 = vld [vmem:[#allocation14 + $0x98] sm:$0xff] }
 0x480   : > { %v9998_v62 = vpack.c.bf16 %v7362_v7, %v7330_v23  ;;  %v7209_v23 = vld [vmem:[#allocation14 + $0x68] sm:$0xff]  ;;  %v7247_v39 = vld [vmem:[#allocation14 + $0x198] sm:$0xff] }
 0x481   : > { %9939 = vmatpush3.bf16.xpose.msk.msra.mxu1 %vm13032_vm6, %v9937_v9  ;;  %v7395_v9 = vld [vmem:[#allocation14 + $0x638] sm:$0xff]  ;;  %v7241_v7 = vld [vmem:[#allocation14 + $0x168] sm:$0xff] }
 0x482   : > { %9941 = vmatprep.subr.bf16.mxu1 %v9940_v40  ;;  %v7425_v40 = vld [vmem:[#allocation14 + $0x728] sm:$0xff] }
 0x483   : > { %v7305_v11 = vld [vmem:[#allocation14 + $0x368] sm:$0xff] }
 0x488   : > { %9922 = vmatmul.mubr.msk.f32.vlgmr.msra.gmra.mrb[64].mxu1 %vm7098_vm5, %v7091_v17  ;;  %v7424_v17 = vld [vmem:[#allocation14 + $0x720] sm:$0xff] }
 0x489   : > { %9943 = vmatpush1.bf16.msra.mxu1 %v9942_v19  ;;  %7519 = vmatprep.mubr.f32.mxu1 %v11249_v44  ;;  %v9984_v19 = vpack.c.bf16 %v7425_v40, %v7393_v14  ;;  %v9986_v28 = vpack.c.bf16 %v7424_v17, %v7392_v48  ;;  %v7211_v14 = vld [vmem:[#allocation14 + $0x78] sm:$0xff]  ;;  %v10036_v48 = vpack.c.bf16 %v7241_v7, %v7209_v23 }
 0x48a   : > { %9945 = vmatprep.subr.bf16.mxu1 %v9944_v24  ;;  %v10000_v24 = vpack.c.bf16 %v7427_v3, %v7395_v9  ;;  %v7243_v40 = vld [vmem:[#allocation14 + $0x178] sm:$0xff] }
 0x48b   : > { %v10052_v17 = vpack.c.bf16 %v7243_v40, %v7211_v14  ;;  %v7279_v23 = vld [vmem:[#allocation14 + $0x298] sm:$0xff] }
 0x48c   : > { %v7311_v7 = vld [vmem:[#allocation14 + $0x398] sm:$0xff] }
 0x48d   : > { %9947 = vmatpush1.bf16.msra.mxu1 %v9946_v32  ;;  %v7207_v32 = vld [vmem:[#allocation14 + $0x58] sm:$0xff] }
 0x48e   : > { %9949 = vmatprep.subr.bf16.mxu1 %v9948_v22  ;;  %v7239_v22 = vld [vmem:[#allocation14 + $0x158] sm:$0xff] }
 0x491   : > { %9951 = vmatpush1.bf16.msra.mxu1 %v9950_v16  ;;  %v10004_v16 = vpack.c.bf16 %v7237_v38, %v7205_v56  ;;  %v7275_v56 = vld [vmem:[#allocation14 + $0x278] sm:$0xff] }
 0x492   : > { %9953 = vmatprep.subr.bf16.mxu1 %v9952_v15  ;;  %v10020_v15 = vpack.c.bf16 %v7239_v22, %v7207_v32  ;;  %v7307_v38 = vld [vmem:[#allocation14 + $0x378] sm:$0xff] }
 0x495   : > { %9955 = vmatpush1.bf16.msra.mxu1 %v9954_v63  ;;  %v7269_v63 = vld [vmem:[#allocation14 + $0x248] sm:$0xff] }
 0x496   : > { %9973 = vmatprep.subr.bf16.mxu1 %v9972_v25  ;;  %v10006_v25 = vpack.c.bf16 %v7236_v4, %v7204_v12  ;;  %v10008_v47 = vpack.c.bf16 %v7301_v36, %v7269_v63  ;;  %v10040_v12 = vpack.c.bf16 %v7305_v11, %v7273_v57  ;;  %v10056_v4 = vpack.c.bf16 %v7307_v38, %v7275_v56  ;;  %v7339_v63 = vld [vmem:[#allocation14 + $0x478] sm:$0xff] }
 0x497   : > { %v7371_v36 = vld [vmem:[#allocation14 + $0x578] sm:$0xff] }
 0x498   : > { %v7343_v57 = vld [vmem:[#allocation14 + $0x498] sm:$0xff] }
 0x499   : > { %v7375_v11 = vld [vmem:[#allocation14 + $0x598] sm:$0xff] }
 0x55b   : > { %v7192_v35 = vpop.f32.mrb[64].mxu1 }
 0x55c   : > { %v13049_v52 = vadd.f32 %v7192_v35, %v7096_v2  ;;  %v9923_v41 = vpop.f32.mrb[65].mxu1  ;;  %v7333_v2 = vld [vmem:[#allocation14 + $0x448] sm:$0xff]  ;;  %v10010_v35 = vpack.c.bf16 %v7300_v31, %v7268_v27  ;;  %v10044_v27 = vpack.c.bf16 %v7369_v43, %v7337_v5  ;;  %v10060_v31 = vpack.c.bf16 %v7371_v36, %v7339_v63  ;;  %v7407_v5 = vld [vmem:[#allocation14 + $0x698] sm:$0xff] }
 0x55d   : > { %v10012_v49 = vpack.c.bf16 %v7365_v59, %v7333_v2  ;;  %v10028_v41 = vpack.c.bf16 %v7367_v37, %v7335_v61  ;;  %v7403_v2 = vld [vmem:[#allocation14 + $0x678] sm:$0xff] }
 0x55e   : > { %9506 = vmatmul.mubr.msk.f32.vlgmr.msra.gmra.mrb[66].mxu1 %vm7098_vm5, %v13049_v52  ;;  %9507 = vmatmul.mubr.msk.f32.vlgmr.msra.gmra.mrb[80].mxu0 %vm7098_vm5, %v13049_v52  ;;  %v7435_v59 = vld [vmem:[#allocation14 + $0x778] sm:$0xff] }
 0x55f   : > { %9975 = vmatpush1.bf16.msra.mxu1 %v9974_v34  ;;  %9991 = vmatpush1.bf16.msra.mxu0 %v9990_v0  ;;  %v10026_v34 = vpack.c.bf16 %v7302_v51, %v7270_v50  ;;  %v7332_v0 = vld [vmem:[#allocation14 + $0x440] sm:$0xff]  ;;  %v7401_v50 = vld [vmem:[#allocation14 + $0x668] sm:$0xff]  ;;  %v7439_v43 = vld [vmem:[#allocation14 + $0x798] sm:$0xff] }
 0x560   : > { %9977 = vmatprep.subr.bf16.mxu1 %v9976_v42  ;;  %9993 = vmatprep.subr.bf16.mxu0 %v9992_v60  ;;  %v7334_v42 = vld [vmem:[#allocation14 + $0x450] sm:$0xff]  ;;  %v10014_v54 = vpack.c.bf16 %v7364_v58, %v7332_v0  ;;  %v7433_v51 = vld [vmem:[#allocation14 + $0x768] sm:$0xff]  ;;  %v10064_v58 = vpack.c.bf16 %v7435_v59, %v7403_v2 }
 0x561   : > { %7661 = vmatprep.mubr.f32.mxu1 %v11249_v44  ;;  %7732 = vmatprep.mubr.f32.mxu0 %v11249_v44  ;;  %v7366_v60 = vld [vmem:[#allocation14 + $0x550] sm:$0xff]  ;;  %v10048_v0 = vpack.c.bf16 %v7433_v51, %v7401_v50  ;;  %v7219_v50 = vld [vmem:[#allocation14 + $0xb8] sm:$0xff] }
 0x562   : > { %v10030_v46 = vpack.c.bf16 %v7366_v60, %v7334_v42  ;;  %v7213_v42 = vld [vmem:[#allocation14 + $0x88] sm:$0xff]  ;;  %v7251_v51 = vld [vmem:[#allocation14 + $0x1b8] sm:$0xff] }
 0x563   : > { %9979 = vmatpush1.bf16.msra.mxu1 %v9978_v53  ;;  %9995 = vmatpush1.bf16.msra.mxu0 %v9994_v8  ;;  %v7396_v53 = vld [vmem:[#allocation14 + $0x640] sm:$0xff]  ;;  %v7245_v60 = vld [vmem:[#allocation14 + $0x188] sm:$0xff] }
 0x564   : > { %9981 = vmatprep.subr.bf16.mxu1 %v9980_v55  ;;  %9997 = vmatprep.subr.bf16.mxu0 %v9996_v29  ;;  %v7428_v8 = vld [vmem:[#allocation14 + $0x740] sm:$0xff]  ;;  %v7398_v55 = vld [vmem:[#allocation14 + $0x650] sm:$0xff] }
 0x565   : > { %v7430_v29 = vld [vmem:[#allocation14 + $0x750] sm:$0xff]  ;;  %v10018_v9 = vpack.c.bf16 %v7428_v8, %v7396_v53  ;;  %v10068_v53 = vpack.c.bf16 %v7245_v60, %v7213_v42  ;;  %v10084_v8 = vpack.c.bf16 %v7247_v39, %v7215_v26  ;;  %v7283_v42 = vld [vmem:[#allocation14 + $0x2b8] sm:$0xff] }
 0x566   : > { %v10034_v3 = vpack.c.bf16 %v7430_v29, %v7398_v55  ;;  %v7277_v55 = vld [vmem:[#allocation14 + $0x288] sm:$0xff]  ;;  %v7315_v60 = vld [vmem:[#allocation14 + $0x3b8] sm:$0xff] }
 0x567   : > { %9983 = vmatpush1.bf16.msra.mxu1 %v9982_v1  ;;  %9999 = vmatpush1.bf16.msra.mxu0 %v9998_v62  ;;  %v7208_v1 = vld [vmem:[#allocation14 + $0x60] sm:$0xff]  ;;  %v7309_v29 = vld [vmem:[#allocation14 + $0x388] sm:$0xff] }
 0x568   : > { %9985 = vmatprep.subr.bf16.mxu1 %v9984_v19  ;;  %10001 = vmatprep.subr.bf16.mxu0 %v10000_v24  ;;  %v7240_v62 = vld [vmem:[#allocation14 + $0x160] sm:$0xff]  ;;  %v7210_v19 = vld [vmem:[#allocation14 + $0x70] sm:$0xff] }
 0x569   : > { %v7242_v24 = vld [vmem:[#allocation14 + $0x170] sm:$0xff]  ;;  %v10038_v32 = vpack.c.bf16 %v7240_v62, %v7208_v1  ;;  %v10072_v1 = vpack.c.bf16 %v7309_v29, %v7277_v55  ;;  %v10088_v62 = vpack.c.bf16 %v7311_v7, %v7279_v23  ;;  %v7347_v55 = vld [vmem:[#allocation14 + $0x4b8] sm:$0xff] }
 0x56a   : > { %v10054_v22 = vpack.c.bf16 %v7242_v24, %v7210_v19  ;;  %v7341_v19 = vld [vmem:[#allocation14 + $0x488] sm:$0xff]  ;;  %v7379_v29 = vld [vmem:[#allocation14 + $0x5b8] sm:$0xff] }
 0x56b   : > { %9987 = vmatpush1.bf16.msra.mxu1 %v9986_v28  ;;  %10003 = vmatpush1.bf16.msra.mxu0 %v10002_v33  ;;  %v7272_v28 = vld [vmem:[#allocation14 + $0x260] sm:$0xff]  ;;  %v7373_v24 = vld [vmem:[#allocation14 + $0x588] sm:$0xff] }
 0x56c   : > { %10005 = vmatprep.subr.bf16.mxu1 %v10004_v16  ;;  %10021 = vmatprep.subr.bf16.mxu0 %v10020_v15  ;;  %v7304_v33 = vld [vmem:[#allocation14 + $0x360] sm:$0xff]  ;;  %v7274_v16 = vld [vmem:[#allocation14 + $0x270] sm:$0xff] }
 0x56d   : > { %v7306_v15 = vld [vmem:[#allocation14 + $0x370] sm:$0xff]  ;;  %v10042_v21 = vpack.c.bf16 %v7304_v33, %v7272_v28  ;;  %v10076_v28 = vpack.c.bf16 %v7373_v24, %v7341_v19  ;;  %v10092_v33 = vpack.c.bf16 %v7375_v11, %v7343_v57  ;;  %v7411_v19 = vld [vmem:[#allocation14 + $0x6b8] sm:$0xff] }
 0x56e   : > { %9508 = vmatmul.mubr.msk.f32.vlgmr.msra.gmra.mrb[68].mxu1 %vm7098_vm5, %v13049_v52  ;;  %9509 = vmatmul.mubr.msk.f32.vlgmr.msra.gmra.mrb[82].mxu0 %vm7098_vm5, %v13049_v52  ;;  %v10058_v20 = vpack.c.bf16 %v7306_v15, %v7274_v16  ;;  %v7405_v16 = vld [vmem:[#allocation14 + $0x688] sm:$0xff]  ;;  %v7443_v24 = vld [vmem:[#allocation14 + $0x7b8] sm:$0xff] }
 0x56f   : > { %10007 = vmatpush1.bf16.msra.mxu1 %v10006_v25  ;;  %10023 = vmatpush1.bf16.msra.mxu0 %v10022_v45  ;;  %v7336_v25 = vld [vmem:[#allocation14 + $0x460] sm:$0xff]  ;;  %v7437_v15 = vld [vmem:[#allocation14 + $0x788] sm:$0xff] }
 0x570   : > { %10009 = vmatprep.subr.bf16.mxu1 %v10008_v47  ;;  %10025 = vmatprep.subr.bf16.mxu0 %v10024_v6  ;;  %v7368_v45 = vld [vmem:[#allocation14 + $0x560] sm:$0xff]  ;;  %v7338_v47 = vld [vmem:[#allocation14 + $0x470] sm:$0xff] }
 0x571   : > { %7803 = vmatprep.mubr.f32.mxu1 %v11249_v44  ;;  %7874 = vmatprep.mubr.f32.mxu0 %v11249_v44  ;;  %v7370_v6 = vld [vmem:[#allocation14 + $0x570] sm:$0xff]  ;;  %v10046_v61 = vpack.c.bf16 %v7368_v45, %v7336_v25  ;;  %v10080_v25 = vpack.c.bf16 %v7437_v15, %v7405_v16  ;;  %v10096_v45 = vpack.c.bf16 %v7439_v43, %v7407_v5  ;;  %v7223_v16 = vld [vmem:[#allocation14 + $0xd8] sm:$0xff] }
 0x572   : > { %v10062_v37 = vpack.c.bf16 %v7370_v6, %v7338_v47  ;;  %v7217_v47 = vld [vmem:[#allocation14 + $0xa8] sm:$0xff]  ;;  %v7255_v15 = vld [vmem:[#allocation14 + $0x1d8] sm:$0xff] }
 0x573   : > { %10011 = vmatpush1.bf16.msra.mxu1 %v10010_v35  ;;  %10027 = vmatpush1.bf16.msra.mxu0 %v10026_v34  ;;  %v7400_v35 = vld [vmem:[#allocation14 + $0x660] sm:$0xff]  ;;  %v7249_v6 = vld [vmem:[#allocation14 + $0x1a8] sm:$0xff] }
 0x574   : > { %10013 = vmatprep.subr.bf16.mxu1 %v10012_v49  ;;  %10029 = vmatprep.subr.bf16.mxu0 %v10028_v41  ;;  %v7432_v34 = vld [vmem:[#allocation14 + $0x760] sm:$0xff]  ;;  %v7402_v49 = vld [vmem:[#allocation14 + $0x670] sm:$0xff] }
 0x575   : > { %v7434_v41 = vld [vmem:[#allocation14 + $0x770] sm:$0xff]  ;;  %v10050_v18 = vpack.c.bf16 %v7432_v34, %v7400_v35  ;;  %v10100_v35 = vpack.c.bf16 %v7249_v6, %v7217_v47  ;;  %v10116_v34 = vpack.c.bf16 %v7251_v51, %v7219_v50  ;;  %v7287_v47 = vld [vmem:[#allocation14 + $0x2d8] sm:$0xff] }
 0x576   : > { %v10066_v13 = vpack.c.bf16 %v7434_v41, %v7402_v49  ;;  %v7281_v49 = vld [vmem:[#allocation14 + $0x2a8] sm:$0xff]  ;;  %v7319_v6 = vld [vmem:[#allocation14 + $0x3d8] sm:$0xff] }
 0x577   : > { %10015 = vmatpush1.bf16.msra.mxu1 %v10014_v54  ;;  %10031 = vmatpush1.bf16.msra.mxu0 %v10030_v46  ;;  %v7212_v54 = vld [vmem:[#allocation14 + $0x80] sm:$0xff]  ;;  %v7313_v41 = vld [vmem:[#allocation14 + $0x3a8] sm:$0xff] }
 0x578   : > { %10017 = vmatprep.subr.bf16.mxu1 %v10016_v10  ;;  %10033 = vmatprep.subr.bf16.mxu0 %v10032_v30  ;;  %v7244_v46 = vld [vmem:[#allocation14 + $0x180] sm:$0xff]  ;;  %v7214_v10 = vld [vmem:[#allocation14 + $0x90] sm:$0xff] }
 0x579   : > { %v7246_v30 = vld [vmem:[#allocation14 + $0x190] sm:$0xff]  ;;  %v10070_v14 = vpack.c.bf16 %v7244_v46, %v7212_v54  ;;  %v10104_v54 = vpack.c.bf16 %v7313_v41, %v7281_v49  ;;  %v10120_v46 = vpack.c.bf16 %v7315_v60, %v7283_v42  ;;  %v7351_v49 = vld [vmem:[#allocation14 + $0x4d8] sm:$0xff] }
 0x57a   : > { %v10086_v40 = vpack.c.bf16 %v7246_v30, %v7214_v10  ;;  %v7345_v10 = vld [vmem:[#allocation14 + $0x4a8] sm:$0xff]  ;;  %v7383_v41 = vld [vmem:[#allocation14 + $0x5d8] sm:$0xff] }
 0x57b   : > { %10019 = vmatpush1.bf16.msra.mxu1 %v10018_v9  ;;  %10035 = vmatpush1.bf16.msra.mxu0 %v10034_v3  ;;  %v7276_v9 = vld [vmem:[#allocation14 + $0x280] sm:$0xff]  ;;  %v7377_v30 = vld [vmem:[#allocation14 + $0x5a8] sm:$0xff] }
 0x57c   : > { %10037 = vmatprep.subr.bf16.mxu1 %v10036_v48  ;;  %10053 = vmatprep.subr.bf16.mxu0 %v10052_v17  ;;  %v7308_v3 = vld [vmem:[#allocation14 + $0x380] sm:$0xff]  ;;  %v7278_v48 = vld [vmem:[#allocation14 + $0x290] sm:$0xff] }
 0x57d   : > { %v7310_v17 = vld [vmem:[#allocation14 + $0x390] sm:$0xff]  ;;  %v10074_v56 = vpack.c.bf16 %v7308_v3, %v7276_v9  ;;  %v10108_v9 = vpack.c.bf16 %v7377_v30, %v7345_v10  ;;  %v10124_v3 = vpack.c.bf16 %v7379_v29, %v7347_v55  ;;  %v7415_v10 = vld [vmem:[#allocation14 + $0x6d8] sm:$0xff] }
 0x57e   : > { %9510 = vmatmul.mubr.msk.f32.vlgmr.msra.gmra.mrb[70].mxu1 %vm7098_vm5, %v13049_v52  ;;  %9511 = vmatmul.mubr.msk.f32.vlgmr.msra.gmra.mrb[84].mxu0 %vm7098_vm5, %v13049_v52  ;;  %v10090_v38 = vpack.c.bf16 %v7310_v17, %v7278_v48  ;;  %v7409_v48 = vld [vmem:[#allocation14 + $0x6a8] sm:$0xff]  ;;  %v7447_v30 = vld [vmem:[#allocation14 + $0x7d8] sm:$0xff] }
 0x57f   : > { %10039 = vmatpush1.bf16.msra.mxu1 %v10038_v32  ;;  %10055 = vmatpush1.bf16.msra.mxu0 %v10054_v22  ;;  %v7340_v32 = vld [vmem:[#allocation14 + $0x480] sm:$0xff]  ;;  %v7441_v17 = vld [vmem:[#allocation14 + $0x7a8] sm:$0xff] }
 0x580   : > { %10041 = vmatprep.subr.bf16.mxu1 %v10040_v12  ;;  %10057 = vmatprep.subr.bf16.mxu0 %v10056_v4  ;;  %v7372_v22 = vld [vmem:[#allocation14 + $0x580] sm:$0xff]  ;;  %v7342_v12 = vld [vmem:[#allocation14 + $0x490] sm:$0xff] }
 0x581   : > { %7945 = vmatprep.mubr.f32.mxu1 %v11249_v44  ;;  %8016 = vmatprep.mubr.f32.mxu0 %v11249_v44  ;;  %v7374_v4 = vld [vmem:[#allocation14 + $0x590] sm:$0xff]  ;;  %v10078_v63 = vpack.c.bf16 %v7372_v22, %v7340_v32  ;;  %v10112_v32 = vpack.c.bf16 %v7441_v17, %v7409_v48  ;;  %v10128_v22 = vpack.c.bf16 %v7443_v24, %v7411_v19  ;;  %v7227_v48 = vld [vmem:[#allocation14 + $0xf8] sm:$0xff] }
 0x582   : > { %v10094_v36 = vpack.c.bf16 %v7374_v4, %v7342_v12  ;;  %v7221_v12 = vld [vmem:[#allocation14 + $0xc8] sm:$0xff]  ;;  %v7259_v17 = vld [vmem:[#allocation14 + $0x1f8] sm:$0xff] }
 0x583   : > { %10043 = vmatpush1.bf16.msra.mxu1 %v10042_v21  ;;  %10059 = vmatpush1.bf16.msra.mxu0 %v10058_v20  ;;  %v7404_v21 = vld [vmem:[#allocation14 + $0x680] sm:$0xff]  ;;  %v7253_v4 = vld [vmem:[#allocation14 + $0x1c8] sm:$0xff] }
 0x584   : > { %10045 = vmatprep.subr.bf16.mxu1 %v10044_v27  ;;  %10061 = vmatprep.subr.bf16.mxu0 %v10060_v31  ;;  %v7436_v20 = vld [vmem:[#allocation14 + $0x780] sm:$0xff]  ;;  %v7406_v27 = vld [vmem:[#allocation14 + $0x690] sm:$0xff] }
 0x585   : > { %v7438_v31 = vld [vmem:[#allocation14 + $0x790] sm:$0xff]  ;;  %v10082_v2 = vpack.c.bf16 %v7436_v20, %v7404_v21  ;;  %v10132_v21 = vpack.c.bf16 %v7253_v4, %v7221_v12  ;;  %v10148_v20 = vpack.c.bf16 %v7255_v15, %v7223_v16  ;;  %v7291_v12 = vld [vmem:[#allocation14 + $0x2f8] sm:$0xff] }
 0x586   : > { %v10098_v59 = vpack.c.bf16 %v7438_v31, %v7406_v27  ;;  %v7285_v27 = vld [vmem:[#allocation14 + $0x2c8] sm:$0xff]  ;;  %v7323_v4 = vld [vmem:[#allocation14 + $0x3f8] sm:$0xff] }
 0x587   : > { %10047 = vmatpush1.bf16.msra.mxu1 %v10046_v61  ;;  %10063 = vmatpush1.bf16.msra.mxu0 %v10062_v37  ;;  %v7216_v61 = vld [vmem:[#allocation14 + $0xa0] sm:$0xff]  ;;  %v7317_v31 = vld [vmem:[#allocation14 + $0x3c8] sm:$0xff] }
 0x588   : > { %10049 = vmatprep.subr.bf16.mxu1 %v10048_v0  ;;  %10065 = vmatprep.subr.bf16.mxu0 %v10064_v58  ;;  %v7248_v37 = vld [vmem:[#allocation14 + $0x1a0] sm:$0xff]  ;;  %v7218_v0 = vld [vmem:[#allocation14 + $0xb0] sm:$0xff] }
 0x589   : > { %v7250_v58 = vld [vmem:[#allocation14 + $0x1b0] sm:$0xff]  ;;  %v10102_v26 = vpack.c.bf16 %v7248_v37, %v7216_v61  ;;  %v10136_v61 = vpack.c.bf16 %v7317_v31, %v7285_v27  ;;  %v10152_v37 = vpack.c.bf16 %v7319_v6, %v7287_v47  ;;  %v7355_v27 = vld [vmem:[#allocation14 + $0x4f8] sm:$0xff] }
 0x58a   : > { %v10118_v39 = vpack.c.bf16 %v7250_v58, %v7218_v0  ;;  %v7349_v0 = vld [vmem:[#allocation14 + $0x4c8] sm:$0xff]  ;;  %v7387_v31 = vld [vmem:[#allocation14 + $0x5f8] sm:$0xff] }
 0x58b   : > { %10051 = vmatpush1.bf16.msra.mxu1 %v10050_v18  ;;  %10067 = vmatpush1.bf16.msra.mxu0 %v10066_v13  ;;  %v7280_v18 = vld [vmem:[#allocation14 + $0x2a0] sm:$0xff]  ;;  %v7381_v58 = vld [vmem:[#allocation14 + $0x5c8] sm:$0xff] }
 0x58c   : > { %10069 = vmatprep.subr.bf16.mxu1 %v10068_v53  ;;  %10085 = vmatprep.subr.bf16.mxu0 %v10084_v8  ;;  %v7312_v13 = vld [vmem:[#allocation14 + $0x3a0] sm:$0xff]  ;;  %v7282_v53 = vld [vmem:[#allocation14 + $0x2b0] sm:$0xff] }
 0x58d   : > { %v7314_v8 = vld [vmem:[#allocation14 + $0x3b0] sm:$0xff]  ;;  %v10106_v23 = vpack.c.bf16 %v7312_v13, %v7280_v18  ;;  %v10140_v18 = vpack.c.bf16 %v7381_v58, %v7349_v0  ;;  %v10156_v13 = vpack.c.bf16 %v7383_v41, %v7351_v49  ;;  %v7419_v0 = vld [vmem:[#allocation14 + $0x6f8] sm:$0xff] }
 0x58e   : > { %9512 = vmatmul.mubr.msk.f32.vlgmr.msra.gmra.mrb[72].mxu1 %vm7098_vm5, %v13049_v52  ;;  %9513 = vmatmul.mubr.msk.f32.vlgmr.msra.gmra.mrb[86].mxu0 %vm7098_vm5, %v13049_v52  ;;  %v10122_v7 = vpack.c.bf16 %v7314_v8, %v7282_v53  ;;  %v7413_v53 = vld [vmem:[#allocation14 + $0x6c8] sm:$0xff]  ;;  %v7451_v58 = vld [vmem:[#allocation14 + $0x7f8] sm:$0xff] }
 0x58f   : > { %10071 = vmatpush1.bf16.msra.mxu1 %v10070_v14  ;;  %10087 = vmatpush1.bf16.msra.mxu0 %v10086_v40  ;;  %v7344_v14 = vld [vmem:[#allocation14 + $0x4a0] sm:$0xff]  ;;  %v7445_v8 = vld [vmem:[#allocation14 + $0x7c8] sm:$0xff] }
 0x590   : > { %10073 = vmatprep.subr.bf16.mxu1 %v10072_v1  ;;  %10089 = vmatprep.subr.bf16.mxu0 %v10088_v62  ;;  %v7376_v40 = vld [vmem:[#allocation14 + $0x5a0] sm:$0xff]  ;;  %v7346_v1 = vld [vmem:[#allocation14 + $0x4b0] sm:$0xff] }
 0x591   : > { %8087 = vmatprep.mubr.f32.mxu1 %v11249_v44  ;;  %8158 = vmatprep.mubr.f32.mxu0 %v11249_v44  ;;  %v7378_v62 = vld [vmem:[#allocation14 + $0x5b0] sm:$0xff]  ;;  %v10110_v57 = vpack.c.bf16 %v7376_v40, %v7344_v14  ;;  %v10144_v14 = vpack.c.bf16 %v7445_v8, %v7413_v53  ;;  %v10160_v40 = vpack.c.bf16 %v7447_v30, %v7415_v10 }
 0x592   : > { %v10126_v11 = vpack.c.bf16 %v7378_v62, %v7346_v1  ;;  %v7225_v1 = vld [vmem:[#allocation14 + $0xe8] sm:$0xff] }
 0x593   : > { %10075 = vmatpush1.bf16.msra.mxu1 %v10074_v56  ;;  %10091 = vmatpush1.bf16.msra.mxu0 %v10090_v38  ;;  %v7408_v56 = vld [vmem:[#allocation14 + $0x6a0] sm:$0xff]  ;;  %v7257_v62 = vld [vmem:[#allocation14 + $0x1e8] sm:$0xff] }
 0x594   : > { %10077 = vmatprep.subr.bf16.mxu1 %v10076_v28  ;;  %10093 = vmatprep.subr.bf16.mxu0 %v10092_v33  ;;  %v7440_v38 = vld [vmem:[#allocation14 + $0x7a0] sm:$0xff]  ;;  %v7410_v28 = vld [vmem:[#allocation14 + $0x6b0] sm:$0xff] }
 0x595   : > { %v7442_v33 = vld [vmem:[#allocation14 + $0x7b0] sm:$0xff]  ;;  %v10114_v5 = vpack.c.bf16 %v7440_v38, %v7408_v56  ;;  %v10164_v56 = vpack.c.bf16 %v7257_v62, %v7225_v1  ;;  %v10180_v38 = vpack.c.bf16 %v7259_v17, %v7227_v48 }
 0x596   : > { %v10130_v43 = vpack.c.bf16 %v7442_v33, %v7410_v28  ;;  %v7289_v28 = vld [vmem:[#allocation14 + $0x2e8] sm:$0xff] }
 0x597   : > { %10079 = vmatpush1.bf16.msra.mxu1 %v10078_v63  ;;  %10095 = vmatpush1.bf16.msra.mxu0 %v10094_v36  ;;  %v7220_v63 = vld [vmem:[#allocation14 + $0xc0] sm:$0xff]  ;;  %v7321_v33 = vld [vmem:[#allocation14 + $0x3e8] sm:$0xff] }
 0x598   : > { %10081 = vmatprep.subr.bf16.mxu1 %v10080_v25  ;;  %10097 = vmatprep.subr.bf16.mxu0 %v10096_v45  ;;  %v7252_v36 = vld [vmem:[#allocation14 + $0x1c0] sm:$0xff]  ;;  %v7222_v25 = vld [vmem:[#allocation14 + $0xd0] sm:$0xff] }
 0x599   : > { %v7254_v45 = vld [vmem:[#allocation14 + $0x1d0] sm:$0xff]  ;;  %v10134_v50 = vpack.c.bf16 %v7252_v36, %v7220_v63  ;;  %v10168_v63 = vpack.c.bf16 %v7321_v33, %v7289_v28  ;;  %v10184_v36 = vpack.c.bf16 %v7323_v4, %v7291_v12 }
 0x59a   : > { %v10150_v51 = vpack.c.bf16 %v7254_v45, %v7222_v25  ;;  %v7353_v25 = vld [vmem:[#allocation14 + $0x4e8] sm:$0xff] }
 0x59b   : > { %10083 = vmatpush1.bf16.msra.mxu1 %v10082_v2  ;;  %10099 = vmatpush1.bf16.msra.mxu0 %v10098_v59  ;;  %v7284_v2 = vld [vmem:[#allocation14 + $0x2c0] sm:$0xff]  ;;  %v7385_v45 = vld [vmem:[#allocation14 + $0x5e8] sm:$0xff] }
 0x59c   : > { %10101 = vmatprep.subr.bf16.mxu1 %v10100_v35  ;;  %10117 = vmatprep.subr.bf16.mxu0 %v10116_v34  ;;  %v7316_v59 = vld [vmem:[#allocation14 + $0x3c0] sm:$0xff]  ;;  %v7286_v35 = vld [vmem:[#allocation14 + $0x2d0] sm:$0xff] }
 0x59d   : > { %v7318_v34 = vld [vmem:[#allocation14 + $0x3d0] sm:$0xff]  ;;  %v10138_v42 = vpack.c.bf16 %v7316_v59, %v7284_v2  ;;  %v10172_v2 = vpack.c.bf16 %v7385_v45, %v7353_v25  ;;  %v10188_v59 = vpack.c.bf16 %v7387_v31, %v7355_v27 }
 0x59e   : > { %9514 = vmatmul.mubr.msk.f32.vlgmr.msra.gmra.mrb[74].mxu1 %vm7098_vm5, %v13049_v52  ;;  %9515 = vmatmul.mubr.msk.f32.vlgmr.msra.gmra.mrb[88].mxu0 %vm7098_vm5, %v13049_v52  ;;  %v10154_v60 = vpack.c.bf16 %v7318_v34, %v7286_v35  ;;  %v7417_v35 = vld [vmem:[#allocation14 + $0x6e8] sm:$0xff] }
 0x59f   : > { %10103 = vmatpush1.bf16.msra.mxu1 %v10102_v26  ;;  %10119 = vmatpush1.bf16.msra.mxu0 %v10118_v39  ;;  %v7348_v26 = vld [vmem:[#allocation14 + $0x4c0] sm:$0xff]  ;;  %v7449_v34 = vld [vmem:[#allocation14 + $0x7e8] sm:$0xff] }
 0x5a0   : > { %10105 = vmatprep.subr.bf16.mxu1 %v10104_v54  ;;  %10121 = vmatprep.subr.bf16.mxu0 %v10120_v46  ;;  %v7380_v39 = vld [vmem:[#allocation14 + $0x5c0] sm:$0xff]  ;;  %v7350_v54 = vld [vmem:[#allocation14 + $0x4d0] sm:$0xff] }
 0x5a1   : > { %8229 = vmatprep.mubr.f32.mxu1 %v11249_v44  ;;  %8300 = vmatprep.mubr.f32.mxu0 %v11249_v44  ;;  %v7382_v46 = vld [vmem:[#allocation14 + $0x5d0] sm:$0xff]  ;;  %v10142_v55 = vpack.c.bf16 %v7380_v39, %v7348_v26  ;;  %v10192_v26 = vpack.c.bf16 %v7451_v58, %v7419_v0  ;;  %v7448_v39 = vld [vmem:[#allocation14 + $0x7e0] sm:$0xff] }
 0x5a2   : > { %v10158_v29 = vpack.c.bf16 %v7382_v46, %v7350_v54 }
 0x5a3   : > { %10107 = vmatpush1.bf16.msra.mxu1 %v10106_v23  ;;  %10123 = vmatpush1.bf16.msra.mxu0 %v10122_v7  ;;  %v7412_v23 = vld [vmem:[#allocation14 + $0x6c0] sm:$0xff] }
 0x5a4   : > { %10109 = vmatprep.subr.bf16.mxu1 %v10108_v9  ;;  %10125 = vmatprep.subr.bf16.mxu0 %v10124_v3  ;;  %v7444_v7 = vld [vmem:[#allocation14 + $0x7c0] sm:$0xff]  ;;  %v7414_v9 = vld [vmem:[#allocation14 + $0x6d0] sm:$0xff] }
 0x5a5   : > { %v7446_v3 = vld [vmem:[#allocation14 + $0x7d0] sm:$0xff]  ;;  %v10146_v19 = vpack.c.bf16 %v7444_v7, %v7412_v23 }
 0x5a6   : > { %v10162_v24 = vpack.c.bf16 %v7446_v3, %v7414_v9 }
 0x5a7   : > { %10111 = vmatpush1.bf16.msra.mxu1 %v10110_v57  ;;  %10127 = vmatpush1.bf16.msra.mxu0 %v10126_v11  ;;  %v7224_v57 = vld [vmem:[#allocation14 + $0xe0] sm:$0xff] }
 0x5a8   : > { %10113 = vmatprep.subr.bf16.mxu1 %v10112_v32  ;;  %10129 = vmatprep.subr.bf16.mxu0 %v10128_v22  ;;  %v7256_v11 = vld [vmem:[#allocation14 + $0x1e0] sm:$0xff]  ;;  %v7226_v32 = vld [vmem:[#allocation14 + $0xf0] sm:$0xff] }
 0x5a9   : > { %v7258_v22 = vld [vmem:[#allocation14 + $0x1f0] sm:$0xff]  ;;  %v10166_v16 = vpack.c.bf16 %v7256_v11, %v7224_v57 }
 0x5aa   : > { %v10182_v15 = vpack.c.bf16 %v7258_v22, %v7226_v32 }
 0x5ab   : > { %10115 = vmatpush1.bf16.msra.mxu1 %v10114_v5  ;;  %10131 = vmatpush1.bf16.msra.mxu0 %v10130_v43  ;;  %v7288_v5 = vld [vmem:[#allocation14 + $0x2e0] sm:$0xff] }
 0x5ac   : > { %10133 = vmatprep.subr.bf16.mxu1 %v10132_v21  ;;  %10149 = vmatprep.subr.bf16.mxu0 %v10148_v20  ;;  %v7320_v43 = vld [vmem:[#allocation14 + $0x3e0] sm:$0xff]  ;;  %v7290_v21 = vld [vmem:[#allocation14 + $0x2f0] sm:$0xff] }
 0x5ad   : > { %v7322_v20 = vld [vmem:[#allocation14 + $0x3f0] sm:$0xff]  ;;  %v10170_v47 = vpack.c.bf16 %v7320_v43, %v7288_v5 }
 0x5ae   : > { %9516 = vmatmul.mubr.msk.f32.vlgmr.msra.gmra.mrb[76].mxu1 %vm7098_vm5, %v13049_v52  ;;  %9517 = vmatmul.mubr.msk.f32.vlgmr.msra.gmra.mrb[90].mxu0 %vm7098_vm5, %v13049_v52  ;;  %v10186_v6 = vpack.c.bf16 %v7322_v20, %v7290_v21 }
 0x5af   : > { %10135 = vmatpush1.bf16.msra.mxu1 %v10134_v50  ;;  %10151 = vmatpush1.bf16.msra.mxu0 %v10150_v51  ;;  %v7352_v50 = vld [vmem:[#allocation14 + $0x4e0] sm:$0xff] }
 0x5b0   : > { %10137 = vmatprep.subr.bf16.mxu1 %v10136_v61  ;;  %10153 = vmatprep.subr.bf16.mxu0 %v10152_v37  ;;  %v7384_v51 = vld [vmem:[#allocation14 + $0x5e0] sm:$0xff]  ;;  %v7354_v61 = vld [vmem:[#allocation14 + $0x4f0] sm:$0xff] }
 0x5b1   : > { %8371 = vmatprep.mubr.f32.mxu1 %v11249_v44  ;;  %8442 = vmatprep.mubr.f32.mxu0 %v11249_v44  ;;  %v7386_v37 = vld [vmem:[#allocation14 + $0x5f0] sm:$0xff]  ;;  %v10174_v49 = vpack.c.bf16 %v7384_v51, %v7352_v50 }
 0x5b2   : > { %v10190_v41 = vpack.c.bf16 %v7386_v37, %v7354_v61 }
 0x5b3   : > { %10139 = vmatpush1.bf16.msra.mxu1 %v10138_v42  ;;  %10155 = vmatpush1.bf16.msra.mxu0 %v10154_v60  ;;  %v7416_v42 = vld [vmem:[#allocation14 + $0x6e0] sm:$0xff]  ;;  %v10176_v60 = vpack.c.bf16 %v7449_v34, %v7417_v35 }
 0x5b4   : > { %10141 = vmatprep.subr.bf16.mxu1 %v10140_v18  ;;  %10157 = vmatprep.subr.bf16.mxu0 %v10156_v13  ;;  %v7418_v18 = vld [vmem:[#allocation14 + $0x6f0] sm:$0xff]  ;;  %v10178_v54 = vpack.c.bf16 %v7448_v39, %v7416_v42 }
 0x5b5   : > { %v7450_v13 = vld [vmem:[#allocation14 + $0x7f0] sm:$0xff] }
 0x5b6   : > { %v10194_v46 = vpack.c.bf16 %v7450_v13, %v7418_v18 }
 0x5b7   : > { %10143 = vmatpush1.bf16.msra.mxu1 %v10142_v55  ;;  %10159 = vmatpush1.bf16.msra.mxu0 %v10158_v29 }
 0x5b8   : > { %10145 = vmatprep.subr.bf16.mxu1 %v10144_v14  ;;  %10161 = vmatprep.subr.bf16.mxu0 %v10160_v40 }
 0x5bb   : > { %10147 = vmatpush1.bf16.msra.mxu1 %v10146_v19  ;;  %10163 = vmatpush1.bf16.msra.mxu0 %v10162_v24 }
 0x5bc   : > { %10165 = vmatprep.subr.bf16.mxu1 %v10164_v56  ;;  %10181 = vmatprep.subr.bf16.mxu0 %v10180_v38 }
 0x5be   : > { %9518 = vmatmul.mubr.msk.f32.vlgmr.msra.gmra.mrb[78].mxu1 %vm7098_vm5, %v13049_v52  ;;  %9519 = vmatmul.mubr.msk.f32.vlgmr.msra.gmra.mrb[92].mxu0 %vm7098_vm5, %v13049_v52 }
 0x5bf   : > { %10167 = vmatpush1.bf16.msra.mxu1 %v10166_v16  ;;  %10183 = vmatpush1.bf16.msra.mxu0 %v10182_v15 }
 0x5c0   : > { %10169 = vmatprep.subr.bf16.mxu1 %v10168_v63  ;;  %10185 = vmatprep.subr.bf16.mxu0 %v10184_v36 }
 0x5c1   : > { %8513 = vmatprep.mubr.f32.mxu1 %v11249_v44  ;;  %8584 = vmatprep.mubr.f32.mxu0 %v11249_v44 }
 0x5c3   : > { %10171 = vmatpush1.bf16.msra.mxu1 %v10170_v47  ;;  %10187 = vmatpush1.bf16.msra.mxu0 %v10186_v6 }
 0x5c4   : > { %10173 = vmatprep.subr.bf16.mxu1 %v10172_v2  ;;  %10189 = vmatprep.subr.bf16.mxu0 %v10188_v59 }
 0x5c7   : > { %10175 = vmatpush1.bf16.msra.mxu1 %v10174_v49  ;;  %10191 = vmatpush1.bf16.msra.mxu0 %v10190_v41 }
 0x5c8   : > { %10177 = vmatprep.subr.bf16.mxu1 %v10176_v60  ;;  %10193 = vmatprep.subr.bf16.mxu0 %v10192_v26 }
 0x5cb   : > { %10179 = vmatpush1.bf16.msra.mxu1 %v10178_v54  ;;  %10195 = vmatpush1.bf16.msra.mxu0 %v10194_v46 }
 0x5ce   : > { %9520 = vmatmul.mubr.msk.f32.vlgmr.msra.gmra.mrb[80].mxu1 %vm7098_vm5, %v13049_v52  ;;  %9521 = vmatmul.mubr.msk.f32.vlgmr.msra.gmra.mrb[94].mxu0 %vm7098_vm5, %v13049_v52 }
 0x631   : > { %v7521_v44 = vpop.f32.mrb[66].mxu1  ;;  %v7592_v53 = vpop.f32.mrb[80].mxu0 }
 0x632   : > { %v7523_v8 = vpop.f32.mrb[67].mxu1  ;;  %v7594_v10 = vpop.f32.mrb[81].mxu0 }
 0x633   : > { %v8623_v30 = vcombine.low %v7521_v44, %v7523_v8  ;;  %v8624_v55 = vcombine.low %v7592_v53, %v7594_v10 }
 0x635   : > { %8655 = vst [vmem:[%s13166_s8] sm:$0xff] %v8623_v30  ;;  %8656 = vst [vmem:[%s13166_s8 + $0x8] sm:$0xff] %v8624_v55 }
 0x641   : > { %v7663_v29 = vpop.f32.mrb[68].mxu1  ;;  %v7734_v23 = vpop.f32.mrb[82].mxu0 }
 0x642   : > { %v7665_v7 = vpop.f32.mrb[69].mxu1  ;;  %v7736_v14 = vpop.f32.mrb[83].mxu0 }
 0x643   : > { %v8625_v40 = vcombine.low %v7663_v29, %v7665_v7  ;;  %v8626_v52 = vcombine.low %v7734_v23, %v7736_v14 }
 0x645   : > { %8657 = vst [vmem:[%s13166_s8 + $0x10] sm:$0xff] %v8625_v40  ;;  %8658 = vst [vmem:[%s13166_s8 + $0x18] sm:$0xff] %v8626_v52 }
 0x651   : > { %v7805_v9 = vpop.f32.mrb[70].mxu1  ;;  %v7876_v3 = vpop.f32.mrb[84].mxu0 }
 0x652   : > { %v7807_v1 = vpop.f32.mrb[71].mxu1  ;;  %v7878_v62 = vpop.f32.mrb[85].mxu0 }
 0x653   : > { %v8627_v48 = vcombine.low %v7805_v9, %v7807_v1  ;;  %v8628_v17 = vcombine.low %v7876_v3, %v7878_v62 }
 0x655   : > { %8659 = vst [vmem:[%s13166_s8 + $0x20] sm:$0xff] %v8627_v48  ;;  %8660 = vst [vmem:[%s13166_s8 + $0x28] sm:$0xff] %v8628_v17 }
 0x661   : > { %v7947_v19 = vpop.f32.mrb[72].mxu1  ;;  %v8018_v24 = vpop.f32.mrb[86].mxu0 }
 0x662   : > { %v7949_v57 = vpop.f32.mrb[73].mxu1  ;;  %v8020_v11 = vpop.f32.mrb[87].mxu0 }
 0x663   : > { %v8629_v56 = vcombine.low %v7947_v19, %v7949_v57  ;;  %v8630_v38 = vcombine.low %v8018_v24, %v8020_v11 }
 0x665   : > { %8661 = vst [vmem:[%s13166_s8 + $0x30] sm:$0xff] %v8629_v56  ;;  %8662 = vst [vmem:[%s13166_s8 + $0x38] sm:$0xff] %v8630_v38 }
 0x671   : > { %v8089_v32 = vpop.f32.mrb[74].mxu1  ;;  %v8160_v22 = vpop.f32.mrb[88].mxu0 }
 0x672   : > { %v8091_v28 = vpop.f32.mrb[75].mxu1  ;;  %v8162_v33 = vpop.f32.mrb[89].mxu0 }
 0x673   : > { %v8631_v12 = vcombine.low %v8089_v32, %v8091_v28  ;;  %v8632_v4 = vcombine.low %v8160_v22, %v8162_v33 }
 0x675   : > { %8663 = vst [vmem:[%s13166_s8 + $0x40] sm:$0xff] %v8631_v12  ;;  %8664 = vst [vmem:[%s13166_s8 + $0x48] sm:$0xff] %v8632_v4 }
 0x681   : > { %v8231_v16 = vpop.f32.mrb[76].mxu1  ;;  %v8302_v15 = vpop.f32.mrb[90].mxu0 }
 0x682   : > { %v8233_v5 = vpop.f32.mrb[77].mxu1  ;;  %v8304_v43 = vpop.f32.mrb[91].mxu0 }
 0x683   : > { %v8633_v63 = vcombine.low %v8231_v16, %v8233_v5  ;;  %v8634_v36 = vcombine.low %v8302_v15, %v8304_v43 }
 0x685   : > { %8665 = vst [vmem:[%s13166_s8 + $0x50] sm:$0xff] %v8633_v63  ;;  %8666 = vst [vmem:[%s13166_s8 + $0x58] sm:$0xff] %v8634_v36 }
 0x691   : > { %v8373_v21 = vpop.f32.mrb[78].mxu1  ;;  %v8444_v20 = vpop.f32.mrb[92].mxu0 }
 0x692   : > { %v8375_v25 = vpop.f32.mrb[79].mxu1  ;;  %v8446_v45 = vpop.f32.mrb[93].mxu0 }
 0x693   : > { %v8635_v27 = vcombine.low %v8373_v21, %v8375_v25  ;;  %v8636_v31 = vcombine.low %v8444_v20, %v8446_v45 }
 0x695   : > { %8667 = vst [vmem:[%s13166_s8 + $0x60] sm:$0xff] %v8635_v27  ;;  %8668 = vst [vmem:[%s13166_s8 + $0x68] sm:$0xff] %v8636_v31 }
 0x6a1   : > { %v8515_v47 = vpop.f32.mrb[80].mxu1  ;;  %v8586_v6 = vpop.f32.mrb[94].mxu0 }
 0x6a2   : > { %v8517_v50 = vpop.f32.mrb[81].mxu1  ;;  %v8588_v51 = vpop.f32.mrb[95].mxu0 }
 0x6a3   : > { %v8637_v2 = vcombine.low %v8515_v47, %v8517_v50  ;;  %v8638_v59 = vcombine.low %v8586_v6, %v8588_v51 }
 0x6a5   : > { %8669 = vst [vmem:[%s13166_s8 + $0x70] sm:$0xff] %v8637_v2  ;;  %8670 = vst [vmem:[%s13166_s8 + $0x78] sm:$0xff] %v8638_v59 }
 0x6a6 PF: > { %s13196_s21 = sld [smem:[#allocation18_spill]]  ;;  %p20_p11 = scmp.ge.s32.totalorder %s11317_s10, 5  }
 0x6a7   : > { %s13197_s27 = smov %s11226_s28  ;;  %s13198_s28 = smov %s11230_s29 }
 0x6a8   : > { %s13200_s30 = smov %s11317_s10  ;;  %22 = sbr.rel (!%p20_p11) target bundleno = 5 (0x5), region = 162 }
 0x6ac   : > { %s13199_s29 = smov %s13196_s21 }
 0x6af   :  { %8682 = vsyncpa [#allocation8], 1 }
 0x6b0   :  { %8684 = vsyncpa [#allocation8 + $0x1], 1 }
 0x6b1   :  { %8685 = vsyncpa [#allocation10], 1 }
 0x6b2   :  { %8686 = vsyncpa [#allocation13], 1 }

</bundles_post_ra>
